<compile_context>
chip_gen: v7x
topology: tpu7x:2x2x1
jax: 0.10.0
libtpu: 0.0.40
codegen_flags: <defaults>
</compile_context>

<pallas_src>
import functools

import jax
import jax.numpy as jnp
import numpy as np
from jax import lax
from jax.experimental import pallas as pl
from jax.experimental.pallas import tpu as pltpu

_LANE = 128
_SUBLANE = 8


def _round_up(x, m):
    return ((x + m - 1) // m) * m


def _lstm_fc_kernel(tok_ref, emb_ref, wih_ref, whh_ref, b_ref, wfc_ref, bfc_ref,
                    out_ref, gx_sc, *, seq_len, batch, hidden, vocab):
    S, B, H, V = seq_len, batch, hidden, vocab
    SB = S * B

    # ---- fused embedding lookup: one-hot (SB, V) @ table (V, E) on the MXU ----
    tok = tok_ref[...]                                          # (SB, 1) int32, time-major
    lane = lax.broadcasted_iota(jnp.int32, (SB, V), 1)
    onehot = (lane == tok).astype(jnp.bfloat16)                 # (SB, V)
    x = jnp.dot(onehot, emb_ref[...],
                preferred_element_type=jnp.float32).astype(jnp.bfloat16)   # (SB, E)
    # Dropout(p=0.4) sits between embedding and LSTM in the module: identity at eval.

    # ---- hoisted input projection: all timesteps in one MXU matmul ----------
    # TODO(synk): for long-sequence / v7x configs store gx in bf16 and/or tile
    # the projection over S*B chunks; kept f32 + single shot here (tiny shapes).
    gx_sc[...] = (jnp.dot(x, wih_ref[...], preferred_element_type=jnp.float32)
                  + b_ref[...])

    # ---- serial LSTM recurrence: only h @ W_hh^T on the critical path -------
    # TODO(synk): optionally keep W_hh resident in MXU weight regs
    # (pltpu.matmul_push_rhs / matmul_acc_lhs / matmul_pop) to shave the
    # per-step weight-push latency.
    def step(t, carry):
        h, c = carry
        off = pl.multiple_of(t * B, B)                          # sublane-aligned (B % 8 == 0)
        gx = gx_sc[pl.ds(off, B), :]                            # (B, 4H) f32
        gates = gx + jnp.dot(h.astype(jnp.bfloat16), whh_ref[...],
                             preferred_element_type=jnp.float32)
        # gate columns pre-ordered offline as (i, f, o, g): one contiguous EUP push
        sig = jax.nn.sigmoid(gates[:, :3 * H])
        i = sig[:, 0 * H:1 * H]
        f = sig[:, 1 * H:2 * H]
        o = sig[:, 2 * H:3 * H]
        g = jnp.tanh(gates[:, 3 * H:4 * H])
        c_new = f * c + i * g
        h_new = o * jnp.tanh(c_new)
        return h_new, c_new

    h0 = jnp.zeros((B, H), jnp.float32)
    c0 = jnp.zeros((B, H), jnp.float32)
    unroll = True if S <= 32 else 4
    h_last, _ = lax.fori_loop(0, S, step, (h0, c0), unroll=unroll)

    # ---- classifier on the final hidden state, lane-dense padded output -----
    out_ref[...] = (jnp.dot(h_last.astype(jnp.bfloat16), wfc_ref[...],
                            preferred_element_type=jnp.float32)
                    + bfc_ref[...]).astype(out_ref.dtype)


def _reorder_ifog(w):
    """Reorder PyTorch gate columns (i, f, g, o) -> (i, f, o, g) along last axis.

    Contract: applied identically to W_ih, W_hh and the combined bias; the
    kernel's sigmoid/tanh split assumes exactly this ordering.
    """
    i, f, g, o = jnp.split(w, 4, axis=-1)
    return jnp.concatenate([i, f, o, g], axis=-1)


def sentiment_lstm_forward(tokens, params):
    """tokens: (B, S) int32. Returns (B, num_classes) f32 logits."""
    emb_table = params["embedding"]                     # (V, E)
    w_ih_t = params["w_ih_t"]                           # (E, 4H)  PyTorch i,f,g,o
    w_hh_t = params["w_hh_t"]                           # (H, 4H)
    b_gates = params["b_gates"]                         # (1, 4H)  = b_ih + b_hh
    w_fc_t = params["w_fc_t"]                           # (H, C)
    b_fc = params["b_fc"]                               # (1, C)

    B, S = tokens.shape
    V, E = emb_table.shape
    H = w_hh_t.shape[0]
    C = w_fc_t.shape[1]
    C_pad = _round_up(max(C, _LANE), _LANE)
    B_pad = _round_up(B, _SUBLANE)

    # Pad batch to a multiple of 8 (f32 sublane); padded rows use token 0 and
    # are sliced off after the call.
    if B_pad != B:
        tokens = jnp.pad(tokens, ((0, B_pad - B), (0, 0)))

    # Only tiny integer ops remain in the wrapper: time-major flatten of tokens.
    tok_tm = jnp.transpose(tokens, (1, 0)).reshape(S * B_pad, 1).astype(jnp.int32)

    # bf16 MXU operands, f32 accumulation. Embedding table bf16 at the boundary.
    emb = emb_table.astype(jnp.bfloat16)                 # (V, E)
    wih = _reorder_ifog(w_ih_t).astype(jnp.bfloat16)     # (E, 4H)  i,f,o,g
    whh = _reorder_ifog(w_hh_t).astype(jnp.bfloat16)     # (H, 4H)
    b = _reorder_ifog(b_gates).astype(jnp.float32)       # (1, 4H)

    # Pad the tiny classifier to a lane-dense 128-multiple output tile.
    wfc = jnp.zeros((H, C_pad), jnp.bfloat16).at[:, :C].set(
        w_fc_t.astype(jnp.bfloat16))
    bfc = jnp.zeros((1, C_pad), jnp.float32).at[:, :C].set(b_fc)

    kernel = functools.partial(_lstm_fc_kernel, seq_len=S, batch=B_pad,
                               hidden=H, vocab=V)
    vmem_spec = pl.BlockSpec(memory_space=pltpu.MemorySpace.VMEM)

    SB = S * B_pad
    gx_bytes = SB * 4 * H * 4
    in_bytes = (tok_tm.size * 4 + emb.size * 2 + wih.size * 2 + whh.size * 2
                + b.size * 4 + wfc.size * 2 + bfc.size * 4)
    out_bytes = B_pad * C_pad * 4
    vmem_bytes = int(min(max(2 * (in_bytes + out_bytes + gx_bytes) + (4 << 20),
                             16 << 20), 64 << 20))

    flops = (2 * SB * V * E            # one-hot gather matmul
             + 2 * SB * E * 4 * H      # hoisted input projection
             + 2 * SB * H * 4 * H      # recurrence
             + 2 * B_pad * H * C_pad)  # classifier
    transcendentals = SB * (4 * H + H)

    out_padded = pl.pallas_call(
        kernel,
        out_shape=jax.ShapeDtypeStruct((B_pad, C_pad), jnp.float32),
        in_specs=[vmem_spec] * 7,
        out_specs=vmem_spec,
        scratch_shapes=[pltpu.VMEM((SB, 4 * H), jnp.float32)],  # gates_x
        compiler_params=pltpu.CompilerParams(vmem_limit_bytes=vmem_bytes),
        cost_estimate=pl.CostEstimate(flops=flops,
                                      transcendentals=transcendentals,
                                      bytes_accessed=in_bytes + out_bytes),
    )(tok_tm, emb, wih, whh, b, wfc, bfc)

    return out_padded[:B, :C]


def reference_forward(tokens, params):
    """Pure-JAX f32 reference matching torch.nn.LSTM semantics."""
    emb = jnp.take(params["embedding"], tokens, axis=0)  # (B, S, E)
    H = params["w_hh_t"].shape[0]
    B = tokens.shape[0]

    def step(carry, x_t):
        h, c = carry
        gates = x_t @ params["w_ih_t"] + h @ params["w_hh_t"] + params["b_gates"][0]
        i = jax.nn.sigmoid(gates[:, 0 * H:1 * H])
        f = jax.nn.sigmoid(gates[:, 1 * H:2 * H])
        g = jnp.tanh(gates[:, 2 * H:3 * H])
        o = jax.nn.sigmoid(gates[:, 3 * H:4 * H])
        c = f * c + i * g
        h = o * jnp.tanh(c)
        return (h, c), None

    init = (jnp.zeros((B, H), jnp.float32), jnp.zeros((B, H), jnp.float32))
    (h_last, _), _ = lax.scan(step, init, jnp.transpose(emb, (1, 0, 2)))
    return h_last @ params["w_fc_t"] + params["b_fc"][0]


def make_params(key, vocab, embed_dim, hidden, num_classes):
    ks = jax.random.split(key, 6)
    scale = 0.1
    return {
        "embedding": scale * jax.random.normal(ks[0], (vocab, embed_dim), jnp.float32),
        # PyTorch stores W_ih as (4H, E); we keep the transposed (E, 4H) layout.
        "w_ih_t": scale * jax.random.normal(ks[1], (embed_dim, 4 * hidden), jnp.float32),
        "w_hh_t": scale * jax.random.normal(ks[2], (hidden, 4 * hidden), jnp.float32),
        "b_gates": scale * jax.random.normal(ks[3], (1, 4 * hidden), jnp.float32),
        "w_fc_t": scale * jax.random.normal(ks[4], (hidden, num_classes), jnp.float32),
        "b_fc": scale * jax.random.normal(ks[5], (1, num_classes), jnp.float32),
    }


if __name__ == "__main__":
    B, S = 8, 16            # batch, sequence length (small)
    VOCAB = 32              # small synthetic vocab
    E, H, C = 128, 128, 2   # embed_dim, lstm_out, num_classes

    key = jax.random.PRNGKey(0)
    pkey, tkey = jax.random.split(key)
    params = make_params(pkey, VOCAB, E, H, C)
    tokens = jax.random.randint(tkey, (B, S), 0, VOCAB, dtype=jnp.int32)

    # TODO(synk): training-mode dropout (p=0.4) not implemented; eval semantics.
    out = jax.block_until_ready(sentiment_lstm_forward(tokens, params))
    ref = jax.block_until_ready(reference_forward(tokens, params))

    # bf16 MXU operands with f32 accumulation => loose tolerance vs f32 ref.
    np.testing.assert_allclose(np.asarray(out), np.asarray(ref), rtol=2e-2, atol=2e-2)

    print("KERNEL_OK")
</pallas_src>

<mosaic_0001>
module attributes {stable_mosaic.version = 11 : i64} {
  func.func @_lstm_fc_kernel(%arg0: memref<128x1xi32, #tpu.memory_space<vmem>>, %arg1: memref<32x128xbf16, #tpu.memory_space<vmem>>, %arg2: memref<128x512xbf16, #tpu.memory_space<vmem>>, %arg3: memref<128x512xbf16, #tpu.memory_space<vmem>>, %arg4: memref<1x512xf32, #tpu.memory_space<vmem>>, %arg5: memref<128x128xbf16, #tpu.memory_space<vmem>>, %arg6: memref<1x128xf32, #tpu.memory_space<vmem>>, %arg7: memref<8x128xf32, #tpu.memory_space<vmem>>, %arg8: memref<128x512xf32, #tpu.memory_space<vmem>>) attributes {dimension_semantics = [], scalar_prefetch = 0 : i64, scratch_operands = 1 : i64, tpu.core_type = #tpu.core_type<tc>} {
    %c0 = arith.constant 0 : index
    %c0_0 = arith.constant 0 : index
    %0 = vector.load %arg0[%c0, %c0_0] : memref<128x1xi32, #tpu.memory_space<vmem>>, vector<128x1xi32>
    %1 = tpu.iota {dimensions = array<i32: 1>} : vector<128x32xi32>
    %2 = vector.broadcast %0 : vector<128x1xi32> to vector<128x32xi32>
    %3 = arith.cmpi eq, %1, %2 : vector<128x32xi32>
    %4 = arith.extui %3 : vector<128x32xi1> to vector<128x32xi32>
    %5 = arith.sitofp %4 : vector<128x32xi32> to vector<128x32xf32>
    %6 = arith.truncf %5 : vector<128x32xf32> to vector<128x32xbf16>
    %c0_1 = arith.constant 0 : index
    %c0_2 = arith.constant 0 : index
    %7 = vector.load %arg1[%c0_1, %c0_2] : memref<32x128xbf16, #tpu.memory_space<vmem>>, vector<32x128xbf16>
    %cst = arith.constant dense<0.000000e+00> : vector<128x128xf32>
    %8 = tpu.matmul %6, %7, %cst {dimension_numbers = #tpu.dot_dimension_numbers<[1], [0], [0], [1], [0, 0, 1, 1], [], []>} : vector<128x32xbf16>, vector<32x128xbf16>, vector<128x128xf32> -> vector<128x128xf32>
    %9 = arith.truncf %8 : vector<128x128xf32> to vector<128x128xbf16>
    %c0_3 = arith.constant 0 : index
    %c0_4 = arith.constant 0 : index
    %10 = vector.load %arg2[%c0_3, %c0_4] : memref<128x512xbf16, #tpu.memory_space<vmem>>, vector<128x512xbf16>
    %cst_5 = arith.constant dense<0.000000e+00> : vector<128x512xf32>
    %11 = tpu.matmul %9, %10, %cst_5 {dimension_numbers = #tpu.dot_dimension_numbers<[1], [0], [0], [1], [0, 0, 1, 1], [], []>} : vector<128x128xbf16>, vector<128x512xbf16>, vector<128x512xf32> -> vector<128x512xf32>
    %c0_6 = arith.constant 0 : index
    %c0_7 = arith.constant 0 : index
    %12 = vector.load %arg4[%c0_6, %c0_7] : memref<1x512xf32, #tpu.memory_space<vmem>>, vector<1x512xf32>
    %13 = vector.broadcast %12 : vector<1x512xf32> to vector<128x512xf32>
    %14 = arith.addf %11, %13 : vector<128x512xf32>
    %c0_8 = arith.constant 0 : index
    %c0_9 = arith.constant 0 : index
    %15 = vector.load %arg8[%c0_8, %c0_9] : memref<128x512xf32, #tpu.memory_space<vmem>>, vector<128x512xf32>
    tpu.vector_store %arg8[%c0_8, %c0_9], %14 {strides = array<i32>} : memref<128x512xf32, #tpu.memory_space<vmem>>, vector<128x512xf32>,
    %cst_10 = arith.constant 0.000000e+00 : f32
    %16 = vector.broadcast %cst_10 : f32 to vector<8x128xf32>
    %cst_11 = arith.constant 0.000000e+00 : f32
    %17 = vector.broadcast %cst_11 : f32 to vector<8x128xf32>
    %c0_i32 = arith.constant 0 : i32
    %c8_i32 = arith.constant 8 : i32
    %18 = arith.muli %c0_i32, %c8_i32 : i32
    %19 = tpu.assume_multiple %18, 8 : i32
    %20 = arith.index_cast %19 : i32 to index
    %c0_12 = arith.constant 0 : index
    %21 = vector.load %arg8[%20, %c0_12] : memref<128x512xf32, #tpu.memory_space<vmem>>, vector<8x512xf32>
    %22 = arith.truncf %16 : vector<8x128xf32> to vector<8x128xbf16>
    %c0_13 = arith.constant 0 : index
    %c0_14 = arith.constant 0 : index
    %23 = vector.load %arg3[%c0_13, %c0_14] : memref<128x512xbf16, #tpu.memory_space<vmem>>, vector<128x512xbf16>
    %cst_15 = arith.constant dense<0.000000e+00> : vector<8x512xf32>
    %24 = tpu.matmul %22, %23, %cst_15 {dimension_numbers = #tpu.dot_dimension_numbers<[1], [0], [0], [1], [0, 0, 1, 1], [], []>} : vector<8x128xbf16>, vector<128x512xbf16>, vector<8x512xf32> -> vector<8x512xf32>
    %25 = arith.addf %21, %24 : vector<8x512xf32>
    %26 = vector.extract_strided_slice %25 {offsets = [0, 0], sizes = [8, 384], strides = [1, 1]} : vector<8x512xf32> to vector<8x384xf32>
    %27 = arith.negf %26 : vector<8x384xf32>
    %28 = math.exp %27 : vector<8x384xf32>
    %cst_16 = arith.constant 1.000000e+00 : f32
    %29 = vector.broadcast %cst_16 : f32 to vector<8x384xf32>
    %30 = arith.addf %29, %28 : vector<8x384xf32>
    %31 = arith.divf %29, %30 : vector<8x384xf32>
    %32 = vector.extract_strided_slice %31 {offsets = [0, 0], sizes = [8, 128], strides = [1, 1]} : vector<8x384xf32> to vector<8x128xf32>
    %33 = vector.extract_strided_slice %31 {offsets = [0, 128], sizes = [8, 128], strides = [1, 1]} : vector<8x384xf32> to vector<8x128xf32>
    %34 = vector.extract_strided_slice %31 {offsets = [0, 256], sizes = [8, 128], strides = [1, 1]} : vector<8x384xf32> to vector<8x128xf32>
    %35 = vector.extract_strided_slice %25 {offsets = [0, 384], sizes = [8, 128], strides = [1, 1]} : vector<8x512xf32> to vector<8x128xf32>
    %36 = math.tanh %35 : vector<8x128xf32>
    %37 = arith.mulf %33, %17 : vector<8x128xf32>
    %38 = arith.mulf %32, %36 : vector<8x128xf32>
    %39 = arith.addf %37, %38 : vector<8x128xf32>
    %40 = math.tanh %39 : vector<8x128xf32>
    %41 = arith.mulf %34, %40 : vector<8x128xf32>
    %c1_i32 = arith.constant 1 : i32
    %c8_i32_17 = arith.constant 8 : i32
    %42 = arith.muli %c1_i32, %c8_i32_17 : i32
    %43 = tpu.assume_multiple %42, 8 : i32
    %44 = arith.index_cast %43 : i32 to index
    %c0_18 = arith.constant 0 : index
    %45 = vector.load %arg8[%44, %c0_18] : memref<128x512xf32, #tpu.memory_space<vmem>>, vector<8x512xf32>
    %46 = arith.truncf %41 : vector<8x128xf32> to vector<8x128xbf16>
    %c0_19 = arith.constant 0 : index
    %c0_20 = arith.constant 0 : index
    %47 = vector.load %arg3[%c0_19, %c0_20] : memref<128x512xbf16, #tpu.memory_space<vmem>>, vector<128x512xbf16>
    %cst_21 = arith.constant dense<0.000000e+00> : vector<8x512xf32>
    %48 = tpu.matmul %46, %47, %cst_21 {dimension_numbers = #tpu.dot_dimension_numbers<[1], [0], [0], [1], [0, 0, 1, 1], [], []>} : vector<8x128xbf16>, vector<128x512xbf16>, vector<8x512xf32> -> vector<8x512xf32>
    %49 = arith.addf %45, %48 : vector<8x512xf32>
    %50 = vector.extract_strided_slice %49 {offsets = [0, 0], sizes = [8, 384], strides = [1, 1]} : vector<8x512xf32> to vector<8x384xf32>
    %51 = arith.negf %50 : vector<8x384xf32>
    %52 = math.exp %51 : vector<8x384xf32>
    %cst_22 = arith.constant 1.000000e+00 : f32
    %53 = vector.broadcast %cst_22 : f32 to vector<8x384xf32>
    %54 = arith.addf %53, %52 : vector<8x384xf32>
    %55 = arith.divf %53, %54 : vector<8x384xf32>
    %56 = vector.extract_strided_slice %55 {offsets = [0, 0], sizes = [8, 128], strides = [1, 1]} : vector<8x384xf32> to vector<8x128xf32>
    %57 = vector.extract_strided_slice %55 {offsets = [0, 128], sizes = [8, 128], strides = [1, 1]} : vector<8x384xf32> to vector<8x128xf32>
    %58 = vector.extract_strided_slice %55 {offsets = [0, 256], sizes = [8, 128], strides = [1, 1]} : vector<8x384xf32> to vector<8x128xf32>
    %59 = vector.extract_strided_slice %49 {offsets = [0, 384], sizes = [8, 128], strides = [1, 1]} : vector<8x512xf32> to vector<8x128xf32>
    %60 = math.tanh %59 : vector<8x128xf32>
    %61 = arith.mulf %57, %39 : vector<8x128xf32>
    %62 = arith.mulf %56, %60 : vector<8x128xf32>
    %63 = arith.addf %61, %62 : vector<8x128xf32>
    %64 = math.tanh %63 : vector<8x128xf32>
    %65 = arith.mulf %58, %64 : vector<8x128xf32>
    %c2_i32 = arith.constant 2 : i32
    %c8_i32_23 = arith.constant 8 : i32
    %66 = arith.muli %c2_i32, %c8_i32_23 : i32
    %67 = tpu.assume_multiple %66, 8 : i32
    %68 = arith.index_cast %67 : i32 to index
    %c0_24 = arith.constant 0 : index
    %69 = vector.load %arg8[%68, %c0_24] : memref<128x512xf32, #tpu.memory_space<vmem>>, vector<8x512xf32>
    %70 = arith.truncf %65 : vector<8x128xf32> to vector<8x128xbf16>
    %c0_25 = arith.constant 0 : index
    %c0_26 = arith.constant 0 : index
    %71 = vector.load %arg3[%c0_25, %c0_26] : memref<128x512xbf16, #tpu.memory_space<vmem>>, vector<128x512xbf16>
    %cst_27 = arith.constant dense<0.000000e+00> : vector<8x512xf32>
    %72 = tpu.matmul %70, %71, %cst_27 {dimension_numbers = #tpu.dot_dimension_numbers<[1], [0], [0], [1], [0, 0, 1, 1], [], []>} : vector<8x128xbf16>, vector<128x512xbf16>, vector<8x512xf32> -> vector<8x512xf32>
    %73 = arith.addf %69, %72 : vector<8x512xf32>
    %74 = vector.extract_strided_slice %73 {offsets = [0, 0], sizes = [8, 384], strides = [1, 1]} : vector<8x512xf32> to vector<8x384xf32>
    %75 = arith.negf %74 : vector<8x384xf32>
    %76 = math.exp %75 : vector<8x384xf32>
    %cst_28 = arith.constant 1.000000e+00 : f32
    %77 = vector.broadcast %cst_28 : f32 to vector<8x384xf32>
    %78 = arith.addf %77, %76 : vector<8x384xf32>
    %79 = arith.divf %77, %78 : vector<8x384xf32>
    %80 = vector.extract_strided_slice %79 {offsets = [0, 0], sizes = [8, 128], strides = [1, 1]} : vector<8x384xf32> to vector<8x128xf32>
    %81 = vector.extract_strided_slice %79 {offsets = [0, 128], sizes = [8, 128], strides = [1, 1]} : vector<8x384xf32> to vector<8x128xf32>
    %82 = vector.extract_strided_slice %79 {offsets = [0, 256], sizes = [8, 128], strides = [1, 1]} : vector<8x384xf32> to vector<8x128xf32>
    %83 = vector.extract_strided_slice %73 {offsets = [0, 384], sizes = [8, 128], strides = [1, 1]} : vector<8x512xf32> to vector<8x128xf32>
    %84 = math.tanh %83 : vector<8x128xf32>
    %85 = arith.mulf %81, %63 : vector<8x128xf32>
    %86 = arith.mulf %80, %84 : vector<8x128xf32>
    %87 = arith.addf %85, %86 : vector<8x128xf32>
    %88 = math.tanh %87 : vector<8x128xf32>
    %89 = arith.mulf %82, %88 : vector<8x128xf32>
    %c3_i32 = arith.constant 3 : i32
    %c8_i32_29 = arith.constant 8 : i32
    %90 = arith.muli %c3_i32, %c8_i32_29 : i32
    %91 = tpu.assume_multiple %90, 8 : i32
    %92 = arith.index_cast %91 : i32 to index
    %c0_30 = arith.constant 0 : index
    %93 = vector.load %arg8[%92, %c0_30] : memref<128x512xf32, #tpu.memory_space<vmem>>, vector<8x512xf32>
    %94 = arith.truncf %89 : vector<8x128xf32> to vector<8x128xbf16>
    %c0_31 = arith.constant 0 : index
    %c0_32 = arith.constant 0 : index
    %95 = vector.load %arg3[%c0_31, %c0_32] : memref<128x512xbf16, #tpu.memory_space<vmem>>, vector<128x512xbf16>
    %cst_33 = arith.constant dense<0.000000e+00> : vector<8x512xf32>
    %96 = tpu.matmul %94, %95, %cst_33 {dimension_numbers = #tpu.dot_dimension_numbers<[1], [0], [0], [1], [0, 0, 1, 1], [], []>} : vector<8x128xbf16>, vector<128x512xbf16>, vector<8x512xf32> -> vector<8x512xf32>
    %97 = arith.addf %93, %96 : vector<8x512xf32>
    %98 = vector.extract_strided_slice %97 {offsets = [0, 0], sizes = [8, 384], strides = [1, 1]} : vector<8x512xf32> to vector<8x384xf32>
    %99 = arith.negf %98 : vector<8x384xf32>
    %100 = math.exp %99 : vector<8x384xf32>
    %cst_34 = arith.constant 1.000000e+00 : f32
    %101 = vector.broadcast %cst_34 : f32 to vector<8x384xf32>
    %102 = arith.addf %101, %100 : vector<8x384xf32>
    %103 = arith.divf %101, %102 : vector<8x384xf32>
    %104 = vector.extract_strided_slice %103 {offsets = [0, 0], sizes = [8, 128], strides = [1, 1]} : vector<8x384xf32> to vector<8x128xf32>
    %105 = vector.extract_strided_slice %103 {offsets = [0, 128], sizes = [8, 128], strides = [1, 1]} : vector<8x384xf32> to vector<8x128xf32>
    %106 = vector.extract_strided_slice %103 {offsets = [0, 256], sizes = [8, 128], strides = [1, 1]} : vector<8x384xf32> to vector<8x128xf32>
    %107 = vector.extract_strided_slice %97 {offsets = [0, 384], sizes = [8, 128], strides = [1, 1]} : vector<8x512xf32> to vector<8x128xf32>
    %108 = math.tanh %107 : vector<8x128xf32>
    %109 = arith.mulf %105, %87 : vector<8x128xf32>
    %110 = arith.mulf %104, %108 : vector<8x128xf32>
    %111 = arith.addf %109, %110 : vector<8x128xf32>
    %112 = math.tanh %111 : vector<8x128xf32>
    %113 = arith.mulf %106, %112 : vector<8x128xf32>
    %c4_i32 = arith.constant 4 : i32
    %c8_i32_35 = arith.constant 8 : i32
    %114 = arith.muli %c4_i32, %c8_i32_35 : i32
    %115 = tpu.assume_multiple %114, 8 : i32
    %116 = arith.index_cast %115 : i32 to index
    %c0_36 = arith.constant 0 : index
    %117 = vector.load %arg8[%116, %c0_36] : memref<128x512xf32, #tpu.memory_space<vmem>>, vector<8x512xf32>
    %118 = arith.truncf %113 : vector<8x128xf32> to vector<8x128xbf16>
    %c0_37 = arith.constant 0 : index
    %c0_38 = arith.constant 0 : index
    %119 = vector.load %arg3[%c0_37, %c0_38] : memref<128x512xbf16, #tpu.memory_space<vmem>>, vector<128x512xbf16>
    %cst_39 = arith.constant dense<0.000000e+00> : vector<8x512xf32>
    %120 = tpu.matmul %118, %119, %cst_39 {dimension_numbers = #tpu.dot_dimension_numbers<[1], [0], [0], [1], [0, 0, 1, 1], [], []>} : vector<8x128xbf16>, vector<128x512xbf16>, vector<8x512xf32> -> vector<8x512xf32>
    %121 = arith.addf %117, %120 : vector<8x512xf32>
    %122 = vector.extract_strided_slice %121 {offsets = [0, 0], sizes = [8, 384], strides = [1, 1]} : vector<8x512xf32> to vector<8x384xf32>
    %123 = arith.negf %122 : vector<8x384xf32>
    %124 = math.exp %123 : vector<8x384xf32>
    %cst_40 = arith.constant 1.000000e+00 : f32
    %125 = vector.broadcast %cst_40 : f32 to vector<8x384xf32>
    %126 = arith.addf %125, %124 : vector<8x384xf32>
    %127 = arith.divf %125, %126 : vector<8x384xf32>
    %128 = vector.extract_strided_slice %127 {offsets = [0, 0], sizes = [8, 128], strides = [1, 1]} : vector<8x384xf32> to vector<8x128xf32>
    %129 = vector.extract_strided_slice %127 {offsets = [0, 128], sizes = [8, 128], strides = [1, 1]} : vector<8x384xf32> to vector<8x128xf32>
    %130 = vector.extract_strided_slice %127 {offsets = [0, 256], sizes = [8, 128], strides = [1, 1]} : vector<8x384xf32> to vector<8x128xf32>
    %131 = vector.extract_strided_slice %121 {offsets = [0, 384], sizes = [8, 128], strides = [1, 1]} : vector<8x512xf32> to vector<8x128xf32>
    %132 = math.tanh %131 : vector<8x128xf32>
    %133 = arith.mulf %129, %111 : vector<8x128xf32>
    %134 = arith.mulf %128, %132 : vector<8x128xf32>
    %135 = arith.addf %133, %134 : vector<8x128xf32>
    %136 = math.tanh %135 : vector<8x128xf32>
    %137 = arith.mulf %130, %136 : vector<8x128xf32>
    %c5_i32 = arith.constant 5 : i32
    %c8_i32_41 = arith.constant 8 : i32
    %138 = arith.muli %c5_i32, %c8_i32_41 : i32
    %139 = tpu.assume_multiple %138, 8 : i32
    %140 = arith.index_cast %139 : i32 to index
    %c0_42 = arith.constant 0 : index
    %141 = vector.load %arg8[%140, %c0_42] : memref<128x512xf32, #tpu.memory_space<vmem>>, vector<8x512xf32>
    %142 = arith.truncf %137 : vector<8x128xf32> to vector<8x128xbf16>
    %c0_43 = arith.constant 0 : index
    %c0_44 = arith.constant 0 : index
    %143 = vector.load %arg3[%c0_43, %c0_44] : memref<128x512xbf16, #tpu.memory_space<vmem>>, vector<128x512xbf16>
    %cst_45 = arith.constant dense<0.000000e+00> : vector<8x512xf32>
    %144 = tpu.matmul %142, %143, %cst_45 {dimension_numbers = #tpu.dot_dimension_numbers<[1], [0], [0], [1], [0, 0, 1, 1], [], []>} : vector<8x128xbf16>, vector<128x512xbf16>, vector<8x512xf32> -> vector<8x512xf32>
    %145 = arith.addf %141, %144 : vector<8x512xf32>
    %146 = vector.extract_strided_slice %145 {offsets = [0, 0], sizes = [8, 384], strides = [1, 1]} : vector<8x512xf32> to vector<8x384xf32>
    %147 = arith.negf %146 : vector<8x384xf32>
    %148 = math.exp %147 : vector<8x384xf32>
    %cst_46 = arith.constant 1.000000e+00 : f32
    %149 = vector.broadcast %cst_46 : f32 to vector<8x384xf32>
    %150 = arith.addf %149, %148 : vector<8x384xf32>
    %151 = arith.divf %149, %150 : vector<8x384xf32>
    %152 = vector.extract_strided_slice %151 {offsets = [0, 0], sizes = [8, 128], strides = [1, 1]} : vector<8x384xf32> to vector<8x128xf32>
    %153 = vector.extract_strided_slice %151 {offsets = [0, 128], sizes = [8, 128], strides = [1, 1]} : vector<8x384xf32> to vector<8x128xf32>
    %154 = vector.extract_strided_slice %151 {offsets = [0, 256], sizes = [8, 128], strides = [1, 1]} : vector<8x384xf32> to vector<8x128xf32>
    %155 = vector.extract_strided_slice %145 {offsets = [0, 384], sizes = [8, 128], strides = [1, 1]} : vector<8x512xf32> to vector<8x128xf32>
    %156 = math.tanh %155 : vector<8x128xf32>
    %157 = arith.mulf %153, %135 : vector<8x128xf32>
    %158 = arith.mulf %152, %156 : vector<8x128xf32>
    %159 = arith.addf %157, %158 : vector<8x128xf32>
    %160 = math.tanh %159 : vector<8x128xf32>
    %161 = arith.mulf %154, %160 : vector<8x128xf32>
    %c6_i32 = arith.constant 6 : i32
    %c8_i32_47 = arith.constant 8 : i32
    %162 = arith.muli %c6_i32, %c8_i32_47 : i32
    %163 = tpu.assume_multiple %162, 8 : i32
    %164 = arith.index_cast %163 : i32 to index
    %c0_48 = arith.constant 0 : index
    %165 = vector.load %arg8[%164, %c0_48] : memref<128x512xf32, #tpu.memory_space<vmem>>, vector<8x512xf32>
    %166 = arith.truncf %161 : vector<8x128xf32> to vector<8x128xbf16>
    %c0_49 = arith.constant 0 : index
    %c0_50 = arith.constant 0 : index
    %167 = vector.load %arg3[%c0_49, %c0_50] : memref<128x512xbf16, #tpu.memory_space<vmem>>, vector<128x512xbf16>
    %cst_51 = arith.constant dense<0.000000e+00> : vector<8x512xf32>
    %168 = tpu.matmul %166, %167, %cst_51 {dimension_numbers = #tpu.dot_dimension_numbers<[1], [0], [0], [1], [0, 0, 1, 1], [], []>} : vector<8x128xbf16>, vector<128x512xbf16>, vector<8x512xf32> -> vector<8x512xf32>
    %169 = arith.addf %165, %168 : vector<8x512xf32>
    %170 = vector.extract_strided_slice %169 {offsets = [0, 0], sizes = [8, 384], strides = [1, 1]} : vector<8x512xf32> to vector<8x384xf32>
    %171 = arith.negf %170 : vector<8x384xf32>
    %172 = math.exp %171 : vector<8x384xf32>
    %cst_52 = arith.constant 1.000000e+00 : f32
    %173 = vector.broadcast %cst_52 : f32 to vector<8x384xf32>
    %174 = arith.addf %173, %172 : vector<8x384xf32>
    %175 = arith.divf %173, %174 : vector<8x384xf32>
    %176 = vector.extract_strided_slice %175 {offsets = [0, 0], sizes = [8, 128], strides = [1, 1]} : vector<8x384xf32> to vector<8x128xf32>
    %177 = vector.extract_strided_slice %175 {offsets = [0, 128], sizes = [8, 128], strides = [1, 1]} : vector<8x384xf32> to vector<8x128xf32>
    %178 = vector.extract_strided_slice %175 {offsets = [0, 256], sizes = [8, 128], strides = [1, 1]} : vector<8x384xf32> to vector<8x128xf32>
    %179 = vector.extract_strided_slice %169 {offsets = [0, 384], sizes = [8, 128], strides = [1, 1]} : vector<8x512xf32> to vector<8x128xf32>
    %180 = math.tanh %179 : vector<8x128xf32>
    %181 = arith.mulf %177, %159 : vector<8x128xf32>
    %182 = arith.mulf %176, %180 : vector<8x128xf32>
    %183 = arith.addf %181, %182 : vector<8x128xf32>
    %184 = math.tanh %183 : vector<8x128xf32>
    %185 = arith.mulf %178, %184 : vector<8x128xf32>
    %c7_i32 = arith.constant 7 : i32
    %c8_i32_53 = arith.constant 8 : i32
    %186 = arith.muli %c7_i32, %c8_i32_53 : i32
    %187 = tpu.assume_multiple %186, 8 : i32
    %188 = arith.index_cast %187 : i32 to index
    %c0_54 = arith.constant 0 : index
    %189 = vector.load %arg8[%188, %c0_54] : memref<128x512xf32, #tpu.memory_space<vmem>>, vector<8x512xf32>
    %190 = arith.truncf %185 : vector<8x128xf32> to vector<8x128xbf16>
    %c0_55 = arith.constant 0 : index
    %c0_56 = arith.constant 0 : index
    %191 = vector.load %arg3[%c0_55, %c0_56] : memref<128x512xbf16, #tpu.memory_space<vmem>>, vector<128x512xbf16>
    %cst_57 = arith.constant dense<0.000000e+00> : vector<8x512xf32>
    %192 = tpu.matmul %190, %191, %cst_57 {dimension_numbers = #tpu.dot_dimension_numbers<[1], [0], [0], [1], [0, 0, 1, 1], [], []>} : vector<8x128xbf16>, vector<128x512xbf16>, vector<8x512xf32> -> vector<8x512xf32>
    %193 = arith.addf %189, %192 : vector<8x512xf32>
    %194 = vector.extract_strided_slice %193 {offsets = [0, 0], sizes = [8, 384], strides = [1, 1]} : vector<8x512xf32> to vector<8x384xf32>
    %195 = arith.negf %194 : vector<8x384xf32>
    %196 = math.exp %195 : vector<8x384xf32>
    %cst_58 = arith.constant 1.000000e+00 : f32
    %197 = vector.broadcast %cst_58 : f32 to vector<8x384xf32>
    %198 = arith.addf %197, %196 : vector<8x384xf32>
    %199 = arith.divf %197, %198 : vector<8x384xf32>
    %200 = vector.extract_strided_slice %199 {offsets = [0, 0], sizes = [8, 128], strides = [1, 1]} : vector<8x384xf32> to vector<8x128xf32>
    %201 = vector.extract_strided_slice %199 {offsets = [0, 128], sizes = [8, 128], strides = [1, 1]} : vector<8x384xf32> to vector<8x128xf32>
    %202 = vector.extract_strided_slice %199 {offsets = [0, 256], sizes = [8, 128], strides = [1, 1]} : vector<8x384xf32> to vector<8x128xf32>
    %203 = vector.extract_strided_slice %193 {offsets = [0, 384], sizes = [8, 128], strides = [1, 1]} : vector<8x512xf32> to vector<8x128xf32>
    %204 = math.tanh %203 : vector<8x128xf32>
    %205 = arith.mulf %201, %183 : vector<8x128xf32>
    %206 = arith.mulf %200, %204 : vector<8x128xf32>
    %207 = arith.addf %205, %206 : vector<8x128xf32>
    %208 = math.tanh %207 : vector<8x128xf32>
    %209 = arith.mulf %202, %208 : vector<8x128xf32>
    %c8_i32_59 = arith.constant 8 : i32
    %c8_i32_60 = arith.constant 8 : i32
    %210 = arith.muli %c8_i32_59, %c8_i32_60 : i32
    %211 = tpu.assume_multiple %210, 8 : i32
    %212 = arith.index_cast %211 : i32 to index
    %c0_61 = arith.constant 0 : index
    %213 = vector.load %arg8[%212, %c0_61] : memref<128x512xf32, #tpu.memory_space<vmem>>, vector<8x512xf32>
    %214 = arith.truncf %209 : vector<8x128xf32> to vector<8x128xbf16>
    %c0_62 = arith.constant 0 : index
    %c0_63 = arith.constant 0 : index
    %215 = vector.load %arg3[%c0_62, %c0_63] : memref<128x512xbf16, #tpu.memory_space<vmem>>, vector<128x512xbf16>
    %cst_64 = arith.constant dense<0.000000e+00> : vector<8x512xf32>
    %216 = tpu.matmul %214, %215, %cst_64 {dimension_numbers = #tpu.dot_dimension_numbers<[1], [0], [0], [1], [0, 0, 1, 1], [], []>} : vector<8x128xbf16>, vector<128x512xbf16>, vector<8x512xf32> -> vector<8x512xf32>
    %217 = arith.addf %213, %216 : vector<8x512xf32>
    %218 = vector.extract_strided_slice %217 {offsets = [0, 0], sizes = [8, 384], strides = [1, 1]} : vector<8x512xf32> to vector<8x384xf32>
    %219 = arith.negf %218 : vector<8x384xf32>
    %220 = math.exp %219 : vector<8x384xf32>
    %cst_65 = arith.constant 1.000000e+00 : f32
    %221 = vector.broadcast %cst_65 : f32 to vector<8x384xf32>
    %222 = arith.addf %221, %220 : vector<8x384xf32>
    %223 = arith.divf %221, %222 : vector<8x384xf32>
    %224 = vector.extract_strided_slice %223 {offsets = [0, 0], sizes = [8, 128], strides = [1, 1]} : vector<8x384xf32> to vector<8x128xf32>
    %225 = vector.extract_strided_slice %223 {offsets = [0, 128], sizes = [8, 128], strides = [1, 1]} : vector<8x384xf32> to vector<8x128xf32>
    %226 = vector.extract_strided_slice %223 {offsets = [0, 256], sizes = [8, 128], strides = [1, 1]} : vector<8x384xf32> to vector<8x128xf32>
    %227 = vector.extract_strided_slice %217 {offsets = [0, 384], sizes = [8, 128], strides = [1, 1]} : vector<8x512xf32> to vector<8x128xf32>
    %228 = math.tanh %227 : vector<8x128xf32>
    %229 = arith.mulf %225, %207 : vector<8x128xf32>
    %230 = arith.mulf %224, %228 : vector<8x128xf32>
    %231 = arith.addf %229, %230 : vector<8x128xf32>
    %232 = math.tanh %231 : vector<8x128xf32>
    %233 = arith.mulf %226, %232 : vector<8x128xf32>
    %c9_i32 = arith.constant 9 : i32
    %c8_i32_66 = arith.constant 8 : i32
    %234 = arith.muli %c9_i32, %c8_i32_66 : i32
    %235 = tpu.assume_multiple %234, 8 : i32
    %236 = arith.index_cast %235 : i32 to index
    %c0_67 = arith.constant 0 : index
    %237 = vector.load %arg8[%236, %c0_67] : memref<128x512xf32, #tpu.memory_space<vmem>>, vector<8x512xf32>
    %238 = arith.truncf %233 : vector<8x128xf32> to vector<8x128xbf16>
    %c0_68 = arith.constant 0 : index
    %c0_69 = arith.constant 0 : index
    %239 = vector.load %arg3[%c0_68, %c0_69] : memref<128x512xbf16, #tpu.memory_space<vmem>>, vector<128x512xbf16>
    %cst_70 = arith.constant dense<0.000000e+00> : vector<8x512xf32>
    %240 = tpu.matmul %238, %239, %cst_70 {dimension_numbers = #tpu.dot_dimension_numbers<[1], [0], [0], [1], [0, 0, 1, 1], [], []>} : vector<8x128xbf16>, vector<128x512xbf16>, vector<8x512xf32> -> vector<8x512xf32>
    %241 = arith.addf %237, %240 : vector<8x512xf32>
    %242 = vector.extract_strided_slice %241 {offsets = [0, 0], sizes = [8, 384], strides = [1, 1]} : vector<8x512xf32> to vector<8x384xf32>
    %243 = arith.negf %242 : vector<8x384xf32>
    %244 = math.exp %243 : vector<8x384xf32>
    %cst_71 = arith.constant 1.000000e+00 : f32
    %245 = vector.broadcast %cst_71 : f32 to vector<8x384xf32>
    %246 = arith.addf %245, %244 : vector<8x384xf32>
    %247 = arith.divf %245, %246 : vector<8x384xf32>
    %248 = vector.extract_strided_slice %247 {offsets = [0, 0], sizes = [8, 128], strides = [1, 1]} : vector<8x384xf32> to vector<8x128xf32>
    %249 = vector.extract_strided_slice %247 {offsets = [0, 128], sizes = [8, 128], strides = [1, 1]} : vector<8x384xf32> to vector<8x128xf32>
    %250 = vector.extract_strided_slice %247 {offsets = [0, 256], sizes = [8, 128], strides = [1, 1]} : vector<8x384xf32> to vector<8x128xf32>
    %251 = vector.extract_strided_slice %241 {offsets = [0, 384], sizes = [8, 128], strides = [1, 1]} : vector<8x512xf32> to vector<8x128xf32>
    %252 = math.tanh %251 : vector<8x128xf32>
    %253 = arith.mulf %249, %231 : vector<8x128xf32>
    %254 = arith.mulf %248, %252 : vector<8x128xf32>
    %255 = arith.addf %253, %254 : vector<8x128xf32>
    %256 = math.tanh %255 : vector<8x128xf32>
    %257 = arith.mulf %250, %256 : vector<8x128xf32>
    %c10_i32 = arith.constant 10 : i32
    %c8_i32_72 = arith.constant 8 : i32
    %258 = arith.muli %c10_i32, %c8_i32_72 : i32
    %259 = tpu.assume_multiple %258, 8 : i32
    %260 = arith.index_cast %259 : i32 to index
    %c0_73 = arith.constant 0 : index
    %261 = vector.load %arg8[%260, %c0_73] : memref<128x512xf32, #tpu.memory_space<vmem>>, vector<8x512xf32>
    %262 = arith.truncf %257 : vector<8x128xf32> to vector<8x128xbf16>
    %c0_74 = arith.constant 0 : index
    %c0_75 = arith.constant 0 : index
    %263 = vector.load %arg3[%c0_74, %c0_75] : memref<128x512xbf16, #tpu.memory_space<vmem>>, vector<128x512xbf16>
    %cst_76 = arith.constant dense<0.000000e+00> : vector<8x512xf32>
    %264 = tpu.matmul %262, %263, %cst_76 {dimension_numbers = #tpu.dot_dimension_numbers<[1], [0], [0], [1], [0, 0, 1, 1], [], []>} : vector<8x128xbf16>, vector<128x512xbf16>, vector<8x512xf32> -> vector<8x512xf32>
    %265 = arith.addf %261, %264 : vector<8x512xf32>
    %266 = vector.extract_strided_slice %265 {offsets = [0, 0], sizes = [8, 384], strides = [1, 1]} : vector<8x512xf32> to vector<8x384xf32>
    %267 = arith.negf %266 : vector<8x384xf32>
    %268 = math.exp %267 : vector<8x384xf32>
    %cst_77 = arith.constant 1.000000e+00 : f32
    %269 = vector.broadcast %cst_77 : f32 to vector<8x384xf32>
    %270 = arith.addf %269, %268 : vector<8x384xf32>
    %271 = arith.divf %269, %270 : vector<8x384xf32>
    %272 = vector.extract_strided_slice %271 {offsets = [0, 0], sizes = [8, 128], strides = [1, 1]} : vector<8x384xf32> to vector<8x128xf32>
    %273 = vector.extract_strided_slice %271 {offsets = [0, 128], sizes = [8, 128], strides = [1, 1]} : vector<8x384xf32> to vector<8x128xf32>
    %274 = vector.extract_strided_slice %271 {offsets = [0, 256], sizes = [8, 128], strides = [1, 1]} : vector<8x384xf32> to vector<8x128xf32>
    %275 = vector.extract_strided_slice %265 {offsets = [0, 384], sizes = [8, 128], strides = [1, 1]} : vector<8x512xf32> to vector<8x128xf32>
    %276 = math.tanh %275 : vector<8x128xf32>
    %277 = arith.mulf %273, %255 : vector<8x128xf32>
    %278 = arith.mulf %272, %276 : vector<8x128xf32>
    %279 = arith.addf %277, %278 : vector<8x128xf32>
    %280 = math.tanh %279 : vector<8x128xf32>
    %281 = arith.mulf %274, %280 : vector<8x128xf32>
    %c11_i32 = arith.constant 11 : i32
    %c8_i32_78 = arith.constant 8 : i32
    %282 = arith.muli %c11_i32, %c8_i32_78 : i32
    %283 = tpu.assume_multiple %282, 8 : i32
    %284 = arith.index_cast %283 : i32 to index
    %c0_79 = arith.constant 0 : index
    %285 = vector.load %arg8[%284, %c0_79] : memref<128x512xf32, #tpu.memory_space<vmem>>, vector<8x512xf32>
    %286 = arith.truncf %281 : vector<8x128xf32> to vector<8x128xbf16>
    %c0_80 = arith.constant 0 : index
    %c0_81 = arith.constant 0 : index
    %287 = vector.load %arg3[%c0_80, %c0_81] : memref<128x512xbf16, #tpu.memory_space<vmem>>, vector<128x512xbf16>
    %cst_82 = arith.constant dense<0.000000e+00> : vector<8x512xf32>
    %288 = tpu.matmul %286, %287, %cst_82 {dimension_numbers = #tpu.dot_dimension_numbers<[1], [0], [0], [1], [0, 0, 1, 1], [], []>} : vector<8x128xbf16>, vector<128x512xbf16>, vector<8x512xf32> -> vector<8x512xf32>
    %289 = arith.addf %285, %288 : vector<8x512xf32>
    %290 = vector.extract_strided_slice %289 {offsets = [0, 0], sizes = [8, 384], strides = [1, 1]} : vector<8x512xf32> to vector<8x384xf32>
    %291 = arith.negf %290 : vector<8x384xf32>
    %292 = math.exp %291 : vector<8x384xf32>
    %cst_83 = arith.constant 1.000000e+00 : f32
    %293 = vector.broadcast %cst_83 : f32 to vector<8x384xf32>
    %294 = arith.addf %293, %292 : vector<8x384xf32>
    %295 = arith.divf %293, %294 : vector<8x384xf32>
    %296 = vector.extract_strided_slice %295 {offsets = [0, 0], sizes = [8, 128], strides = [1, 1]} : vector<8x384xf32> to vector<8x128xf32>
    %297 = vector.extract_strided_slice %295 {offsets = [0, 128], sizes = [8, 128], strides = [1, 1]} : vector<8x384xf32> to vector<8x128xf32>
    %298 = vector.extract_strided_slice %295 {offsets = [0, 256], sizes = [8, 128], strides = [1, 1]} : vector<8x384xf32> to vector<8x128xf32>
    %299 = vector.extract_strided_slice %289 {offsets = [0, 384], sizes = [8, 128], strides = [1, 1]} : vector<8x512xf32> to vector<8x128xf32>
    %300 = math.tanh %299 : vector<8x128xf32>
    %301 = arith.mulf %297, %279 : vector<8x128xf32>
    %302 = arith.mulf %296, %300 : vector<8x128xf32>
    %303 = arith.addf %301, %302 : vector<8x128xf32>
    %304 = math.tanh %303 : vector<8x128xf32>
    %305 = arith.mulf %298, %304 : vector<8x128xf32>
    %c12_i32 = arith.constant 12 : i32
    %c8_i32_84 = arith.constant 8 : i32
    %306 = arith.muli %c12_i32, %c8_i32_84 : i32
    %307 = tpu.assume_multiple %306, 8 : i32
    %308 = arith.index_cast %307 : i32 to index
    %c0_85 = arith.constant 0 : index
    %309 = vector.load %arg8[%308, %c0_85] : memref<128x512xf32, #tpu.memory_space<vmem>>, vector<8x512xf32>
    %310 = arith.truncf %305 : vector<8x128xf32> to vector<8x128xbf16>
    %c0_86 = arith.constant 0 : index
    %c0_87 = arith.constant 0 : index
    %311 = vector.load %arg3[%c0_86, %c0_87] : memref<128x512xbf16, #tpu.memory_space<vmem>>, vector<128x512xbf16>
    %cst_88 = arith.constant dense<0.000000e+00> : vector<8x512xf32>
    %312 = tpu.matmul %310, %311, %cst_88 {dimension_numbers = #tpu.dot_dimension_numbers<[1], [0], [0], [1], [0, 0, 1, 1], [], []>} : vector<8x128xbf16>, vector<128x512xbf16>, vector<8x512xf32> -> vector<8x512xf32>
    %313 = arith.addf %309, %312 : vector<8x512xf32>
    %314 = vector.extract_strided_slice %313 {offsets = [0, 0], sizes = [8, 384], strides = [1, 1]} : vector<8x512xf32> to vector<8x384xf32>
    %315 = arith.negf %314 : vector<8x384xf32>
    %316 = math.exp %315 : vector<8x384xf32>
    %cst_89 = arith.constant 1.000000e+00 : f32
    %317 = vector.broadcast %cst_89 : f32 to vector<8x384xf32>
    %318 = arith.addf %317, %316 : vector<8x384xf32>
    %319 = arith.divf %317, %318 : vector<8x384xf32>
    %320 = vector.extract_strided_slice %319 {offsets = [0, 0], sizes = [8, 128], strides = [1, 1]} : vector<8x384xf32> to vector<8x128xf32>
    %321 = vector.extract_strided_slice %319 {offsets = [0, 128], sizes = [8, 128], strides = [1, 1]} : vector<8x384xf32> to vector<8x128xf32>
    %322 = vector.extract_strided_slice %319 {offsets = [0, 256], sizes = [8, 128], strides = [1, 1]} : vector<8x384xf32> to vector<8x128xf32>
    %323 = vector.extract_strided_slice %313 {offsets = [0, 384], sizes = [8, 128], strides = [1, 1]} : vector<8x512xf32> to vector<8x128xf32>
    %324 = math.tanh %323 : vector<8x128xf32>
    %325 = arith.mulf %321, %303 : vector<8x128xf32>
    %326 = arith.mulf %320, %324 : vector<8x128xf32>
    %327 = arith.addf %325, %326 : vector<8x128xf32>
    %328 = math.tanh %327 : vector<8x128xf32>
    %329 = arith.mulf %322, %328 : vector<8x128xf32>
    %c13_i32 = arith.constant 13 : i32
    %c8_i32_90 = arith.constant 8 : i32
    %330 = arith.muli %c13_i32, %c8_i32_90 : i32
    %331 = tpu.assume_multiple %330, 8 : i32
    %332 = arith.index_cast %331 : i32 to index
    %c0_91 = arith.constant 0 : index
    %333 = vector.load %arg8[%332, %c0_91] : memref<128x512xf32, #tpu.memory_space<vmem>>, vector<8x512xf32>
    %334 = arith.truncf %329 : vector<8x128xf32> to vector<8x128xbf16>
    %c0_92 = arith.constant 0 : index
    %c0_93 = arith.constant 0 : index
    %335 = vector.load %arg3[%c0_92, %c0_93] : memref<128x512xbf16, #tpu.memory_space<vmem>>, vector<128x512xbf16>
    %cst_94 = arith.constant dense<0.000000e+00> : vector<8x512xf32>
    %336 = tpu.matmul %334, %335, %cst_94 {dimension_numbers = #tpu.dot_dimension_numbers<[1], [0], [0], [1], [0, 0, 1, 1], [], []>} : vector<8x128xbf16>, vector<128x512xbf16>, vector<8x512xf32> -> vector<8x512xf32>
    %337 = arith.addf %333, %336 : vector<8x512xf32>
    %338 = vector.extract_strided_slice %337 {offsets = [0, 0], sizes = [8, 384], strides = [1, 1]} : vector<8x512xf32> to vector<8x384xf32>
    %339 = arith.negf %338 : vector<8x384xf32>
    %340 = math.exp %339 : vector<8x384xf32>
    %cst_95 = arith.constant 1.000000e+00 : f32
    %341 = vector.broadcast %cst_95 : f32 to vector<8x384xf32>
    %342 = arith.addf %341, %340 : vector<8x384xf32>
    %343 = arith.divf %341, %342 : vector<8x384xf32>
    %344 = vector.extract_strided_slice %343 {offsets = [0, 0], sizes = [8, 128], strides = [1, 1]} : vector<8x384xf32> to vector<8x128xf32>
    %345 = vector.extract_strided_slice %343 {offsets = [0, 128], sizes = [8, 128], strides = [1, 1]} : vector<8x384xf32> to vector<8x128xf32>
    %346 = vector.extract_strided_slice %343 {offsets = [0, 256], sizes = [8, 128], strides = [1, 1]} : vector<8x384xf32> to vector<8x128xf32>
    %347 = vector.extract_strided_slice %337 {offsets = [0, 384], sizes = [8, 128], strides = [1, 1]} : vector<8x512xf32> to vector<8x128xf32>
    %348 = math.tanh %347 : vector<8x128xf32>
    %349 = arith.mulf %345, %327 : vector<8x128xf32>
    %350 = arith.mulf %344, %348 : vector<8x128xf32>
    %351 = arith.addf %349, %350 : vector<8x128xf32>
    %352 = math.tanh %351 : vector<8x128xf32>
    %353 = arith.mulf %346, %352 : vector<8x128xf32>
    %c14_i32 = arith.constant 14 : i32
    %c8_i32_96 = arith.constant 8 : i32
    %354 = arith.muli %c14_i32, %c8_i32_96 : i32
    %355 = tpu.assume_multiple %354, 8 : i32
    %356 = arith.index_cast %355 : i32 to index
    %c0_97 = arith.constant 0 : index
    %357 = vector.load %arg8[%356, %c0_97] : memref<128x512xf32, #tpu.memory_space<vmem>>, vector<8x512xf32>
    %358 = arith.truncf %353 : vector<8x128xf32> to vector<8x128xbf16>
    %c0_98 = arith.constant 0 : index
    %c0_99 = arith.constant 0 : index
    %359 = vector.load %arg3[%c0_98, %c0_99] : memref<128x512xbf16, #tpu.memory_space<vmem>>, vector<128x512xbf16>
    %cst_100 = arith.constant dense<0.000000e+00> : vector<8x512xf32>
    %360 = tpu.matmul %358, %359, %cst_100 {dimension_numbers = #tpu.dot_dimension_numbers<[1], [0], [0], [1], [0, 0, 1, 1], [], []>} : vector<8x128xbf16>, vector<128x512xbf16>, vector<8x512xf32> -> vector<8x512xf32>
    %361 = arith.addf %357, %360 : vector<8x512xf32>
    %362 = vector.extract_strided_slice %361 {offsets = [0, 0], sizes = [8, 384], strides = [1, 1]} : vector<8x512xf32> to vector<8x384xf32>
    %363 = arith.negf %362 : vector<8x384xf32>
    %364 = math.exp %363 : vector<8x384xf32>
    %cst_101 = arith.constant 1.000000e+00 : f32
    %365 = vector.broadcast %cst_101 : f32 to vector<8x384xf32>
    %366 = arith.addf %365, %364 : vector<8x384xf32>
    %367 = arith.divf %365, %366 : vector<8x384xf32>
    %368 = vector.extract_strided_slice %367 {offsets = [0, 0], sizes = [8, 128], strides = [1, 1]} : vector<8x384xf32> to vector<8x128xf32>
    %369 = vector.extract_strided_slice %367 {offsets = [0, 128], sizes = [8, 128], strides = [1, 1]} : vector<8x384xf32> to vector<8x128xf32>
    %370 = vector.extract_strided_slice %367 {offsets = [0, 256], sizes = [8, 128], strides = [1, 1]} : vector<8x384xf32> to vector<8x128xf32>
    %371 = vector.extract_strided_slice %361 {offsets = [0, 384], sizes = [8, 128], strides = [1, 1]} : vector<8x512xf32> to vector<8x128xf32>
    %372 = math.tanh %371 : vector<8x128xf32>
    %373 = arith.mulf %369, %351 : vector<8x128xf32>
    %374 = arith.mulf %368, %372 : vector<8x128xf32>
    %375 = arith.addf %373, %374 : vector<8x128xf32>
    %376 = math.tanh %375 : vector<8x128xf32>
    %377 = arith.mulf %370, %376 : vector<8x128xf32>
    %c15_i32 = arith.constant 15 : i32
    %c8_i32_102 = arith.constant 8 : i32
    %378 = arith.muli %c15_i32, %c8_i32_102 : i32
    %379 = tpu.assume_multiple %378, 8 : i32
    %380 = arith.index_cast %379 : i32 to index
    %c0_103 = arith.constant 0 : index
    %381 = vector.load %arg8[%380, %c0_103] : memref<128x512xf32, #tpu.memory_space<vmem>>, vector<8x512xf32>
    %382 = arith.truncf %377 : vector<8x128xf32> to vector<8x128xbf16>
    %c0_104 = arith.constant 0 : index
    %c0_105 = arith.constant 0 : index
    %383 = vector.load %arg3[%c0_104, %c0_105] : memref<128x512xbf16, #tpu.memory_space<vmem>>, vector<128x512xbf16>
    %cst_106 = arith.constant dense<0.000000e+00> : vector<8x512xf32>
    %384 = tpu.matmul %382, %383, %cst_106 {dimension_numbers = #tpu.dot_dimension_numbers<[1], [0], [0], [1], [0, 0, 1, 1], [], []>} : vector<8x128xbf16>, vector<128x512xbf16>, vector<8x512xf32> -> vector<8x512xf32>
    %385 = arith.addf %381, %384 : vector<8x512xf32>
    %386 = vector.extract_strided_slice %385 {offsets = [0, 0], sizes = [8, 384], strides = [1, 1]} : vector<8x512xf32> to vector<8x384xf32>
    %387 = arith.negf %386 : vector<8x384xf32>
    %388 = math.exp %387 : vector<8x384xf32>
    %cst_107 = arith.constant 1.000000e+00 : f32
    %389 = vector.broadcast %cst_107 : f32 to vector<8x384xf32>
    %390 = arith.addf %389, %388 : vector<8x384xf32>
    %391 = arith.divf %389, %390 : vector<8x384xf32>
    %392 = vector.extract_strided_slice %391 {offsets = [0, 0], sizes = [8, 128], strides = [1, 1]} : vector<8x384xf32> to vector<8x128xf32>
    %393 = vector.extract_strided_slice %391 {offsets = [0, 128], sizes = [8, 128], strides = [1, 1]} : vector<8x384xf32> to vector<8x128xf32>
    %394 = vector.extract_strided_slice %391 {offsets = [0, 256], sizes = [8, 128], strides = [1, 1]} : vector<8x384xf32> to vector<8x128xf32>
    %395 = vector.extract_strided_slice %385 {offsets = [0, 384], sizes = [8, 128], strides = [1, 1]} : vector<8x512xf32> to vector<8x128xf32>
    %396 = math.tanh %395 : vector<8x128xf32>
    %397 = arith.mulf %393, %375 : vector<8x128xf32>
    %398 = arith.mulf %392, %396 : vector<8x128xf32>
    %399 = arith.addf %397, %398 : vector<8x128xf32>
    %400 = math.tanh %399 : vector<8x128xf32>
    %401 = arith.mulf %394, %400 : vector<8x128xf32>
    %c16_i32 = arith.constant 16 : i32
    %402 = arith.truncf %401 : vector<8x128xf32> to vector<8x128xbf16>
    %c0_108 = arith.constant 0 : index
    %c0_109 = arith.constant 0 : index
    %403 = vector.load %arg5[%c0_108, %c0_109] : memref<128x128xbf16, #tpu.memory_space<vmem>>, vector<128x128xbf16>
    %cst_110 = arith.constant dense<0.000000e+00> : vector<8x128xf32>
    %404 = tpu.matmul %402, %403, %cst_110 {dimension_numbers = #tpu.dot_dimension_numbers<[1], [0], [0], [1], [0, 0, 1, 1], [], []>} : vector<8x128xbf16>, vector<128x128xbf16>, vector<8x128xf32> -> vector<8x128xf32>
    %c0_111 = arith.constant 0 : index
    %c0_112 = arith.constant 0 : index
    %405 = vector.load %arg6[%c0_111, %c0_112] : memref<1x128xf32, #tpu.memory_space<vmem>>, vector<1x128xf32>
    %406 = vector.broadcast %405 : vector<1x128xf32> to vector<8x128xf32>
    %407 = arith.addf %404, %406 : vector<8x128xf32>
    %c0_113 = arith.constant 0 : index
    %c0_114 = arith.constant 0 : index
    %408 = vector.load %arg7[%c0_113, %c0_114] : memref<8x128xf32, #tpu.memory_space<vmem>>, vector<8x128xf32>
    tpu.vector_store %arg7[%c0_113, %c0_114], %407 {strides = array<i32>} : memref<8x128xf32, #tpu.memory_space<vmem>>, vector<8x128xf32>,
    return
  }
}

</mosaic_0001>

<bundles_post_ra>
// kernel: tpu_custom_call.1
= control target key start
LH: loop header
LB: loop body
LE: loop exit
PB: predicated region body
PF: predicated region fallthrough
CT: control target
= control target key end

     0   :  { %12 = vsyncpa [#allocation4], 0  ;;  %s5066_s0 = inlined_call_operand.vmem [shape: s32[128,1], index: 0, kind: input, shape index: {}]   ;;  %s5067_s1 = inlined_call_operand.vmem [shape: bf16[32,128], index: 1, kind: input, shape index: {}]   ;;  %s5068_s2 = inlined_call_operand.hbm [shape: bf16[128,512], index: 2, kind: input, shape index: {}]   ;;  %s5069_s3 = inlined_call_operand.hbm [shape: bf16[128,512], index: 3, kind: input, shape index: {}]   ;;  %s5070_s4 = inlined_call_operand.vmem [shape: f32[1,512], index: 4, kind: input, shape index: {}]   ;;  %s5071_s5 = inlined_call_operand.vmem [shape: bf16[128,128], index: 5, kind: input, shape index: {}]   ;;  %s5072_s6 = inlined_call_operand.vmem [shape: f32[1,128], index: 6, kind: input, shape index: {}]   ;;  %s5073_s7 = inlined_call_operand.hbm [shape: f32[8,128], index: 7, kind: output, shape index: {}]  }
   0x1   :  { %13 = vsyncpa [#allocation7], 0 }
   0x2   :  { %14 = vsyncpa [#allocation5], 0  ;;  %s3765_s24 = smov [#allocation3]   ;;  %s3693_s28 = scalar_lea.hbm %s5068_s2, 4096 }
   0x3   :  { %s24_s25 = sshll.u32 %s3765_s24, 4  ;;  %p3694_p0 = scmp.ne.s32.totalorder %s5068_s2, %s3693_s28  ;;  %s25_s25 = int_to_ptr.vmem [resolvable:$true] %s24_s25 }
   0x4   :  { %p3697_p1 = scmp.lt.u32.totalorder %s3693_s28, %s5068_s2 }
   0x6   :  { %p3699_p2 = pnand %p3697_p1, %p3694_p0 }
   0x8   :  { %3702 = shalt.err (!%p3699_p2)
}
   0x9   :  { %s3703_s10 = scalar_lea.vmem %s25_s25, 4096  ;;  %p3708_p4 = scmp.lt.s32.totalorder %s25_s25, %s25_s25 }
   0xa   :  { %p3704_p3 = scmp.ne.s32.totalorder %s25_s25, %s3703_s10  ;;  %p3709_p5 = scmp.lt.s32.totalorder %s3703_s10, %s3703_s10 }
   0xc   :  { %p3710_p6 = por %p3709_p5, %p3708_p4 }
   0xe   :  { %p3711_p7 = pnand %p3710_p6, %p3704_p3 }
  0x10   :  { %3714 = shalt.err (!%p3711_p7)
}
  0x11   :  { %s3766_s11 = smov 256   ;;  %s3767_s12 = smov 16  }
  0x12   :  { %30 = dma.hbm_to_vmem [thread:$0]  %s5068_s2, 4096, %s25_s25, [#allocation4], %s3766_s11, %s3766_s11, %s3767_s12  }
  0x13   :  { %s3768_s15 = smov [#allocation6]   ;;  %s3715_s19 = scalar_lea.hbm %s5069_s3, 4096 }
  0x14   :  { %s36_s16 = sshll.u32 %s3768_s15, 4  ;;  %p3716_p8 = scmp.ne.s32.totalorder %s5069_s3, %s3715_s19  ;;  %s37_s16 = int_to_ptr.vmem [resolvable:$true] %s36_s16 }
  0x15   :  { %p3719_p9 = scmp.lt.u32.totalorder %s3715_s19, %s5069_s3 }
  0x17   :  { %p3721_p10 = pnand %p3719_p9, %p3716_p8 }
  0x19   :  { %3724 = shalt.err (!%p3721_p10)
}
  0x1a   :  { %s3725_s24 = scalar_lea.vmem %s37_s16, 4096  ;;  %p3730_p12 = scmp.lt.s32.totalorder %s37_s16, %s37_s16 }
  0x1b   :  { %p3726_p11 = scmp.ne.s32.totalorder %s37_s16, %s3725_s24  ;;  %p3731_p13 = scmp.lt.s32.totalorder %s3725_s24, %s3725_s24 }
  0x1d   :  { %p3732_p0 = por %p3731_p13, %p3730_p12 }
  0x1f   :  { %p3733_p1 = pnand %p3732_p0, %p3726_p11 }
  0x21   :  { %3736 = shalt.err (!%p3733_p1)
}
  0x22   :  { %42 = dma.hbm_to_vmem [thread:$0]  %s5069_s3, 4096, %s37_s16, [#allocation7], %s3766_s11, %s3766_s11, %s3767_s12  }
  0x23   :  { %3759 = dma.done.wait [#allocation4], 4096  }
  0x24   :  { %3760 = vsyncadd [#allocation4], 4294963200 }
  0x25   :  { %3761 = dma.done.wait [#allocation7], 4096  }
  0x26   :  { %3762 = vsyncadd [#allocation7], 4294963200  ;;  %v5076_v0 = vmov 0   ;;  %v58_v1 = vld [vmem:[%s5066_s0 + $0x10] sm:$0xff]  ;;  %v56_v2 = vld [vmem:[%s5066_s0] sm:$0xff]  ;;  %v72_v34 = vlaneseq  ;;  %vm194_vm4 = vcmask 261120  }
  0x27   :  { %3266 = vset.pattern.permute.xlu1 %v5076_v0  ;;  %3265 = vset.pattern.permute.xlu0 %v5076_v0  ;;  %v59_v3 = vld [vmem:[%s5066_s0 + $0x18] sm:$0xff]  ;;  %v57_v4 = vld [vmem:[%s5066_s0 + $0x8] sm:$0xff]  ;;  %v60_v6 = vld [vmem:[%s5066_s0 + $0x20] sm:$0xff]  ;;  %v5074_v40 = vmov 0.0   ;;  %s3772_s27 = smov [#allocation8]  }
  0x28   :  { %570 = vmatprep.mubr.bf16.mxu1 %v5076_v0  ;;  %81 = vperm.xlu1 %3266, %v58_v1   ;;  %v61_v5 = vld [vmem:[%s5066_s0 + $0x28] sm:$0xff]  ;;  %v3267_v7 = vld [vmem:[%s5067_s1] sm:$0xff]   ;;  %v63_v9 = vld [vmem:[%s5066_s0 + $0x38] sm:$0xff]  ;;  %v3895_v35 = vand.u32 127, %v72_v34  ;;  %s3026_s28 = sshll.u32 %s3772_s27, 4  ;;  %s3027_s28 = int_to_ptr.vmem [resolvable:$true] %s3026_s28 }
  0x29   :  { %75 = vperm.xlu0 %3265, %v56_v2   ;;  %v3268_v8 = vld [vmem:[%s5067_s1 + $0x8] sm:$0xff]   ;;  %v62_v10 = vld [vmem:[%s5066_s0 + $0x30] sm:$0xff]  ;;  %3217 = vmatprep.subr.bf16.mxu0 %v3267_v7  ;;  %v64_v12 = vld [vmem:[%s5066_s0 + $0x40] sm:$0xff]  ;;  %s3737_s29 = scalar_lea.vmem %s3027_s28, 128  ;;  %p3742_p3 = scmp.lt.s32.totalorder %s3027_s28, %s3027_s28 }
  0x2a   :  { %3218 = vmatpush3.bf16.msra.mxu0 %v3267_v7  ;;  %v65_v11 = vld [vmem:[%s5066_s0 + $0x48] sm:$0xff]  ;;  %v67_v13 = vld [vmem:[%s5066_s0 + $0x58] sm:$0xff]  ;;  %v66_v14 = vld [vmem:[%s5066_s0 + $0x50] sm:$0xff]  ;;  %p3738_p2 = scmp.ne.s32.totalorder %s3027_s28, %s3737_s29  ;;  %p3743_p4 = scmp.lt.s32.totalorder %s3737_s29, %s3737_s29 }
  0x2b   :  { %3219 = vmatprep.subr.bf16.mxu0 %v3268_v8  ;;  %v69_v15 = vld [vmem:[%s5066_s0 + $0x68] sm:$0xff]  ;;  %v68_v16 = vld [vmem:[%s5066_s0 + $0x60] sm:$0xff]  ;;  %v71_v17 = vld [vmem:[%s5066_s0 + $0x78] sm:$0xff] }
  0x2c   :  { %84 = vperm.xlu1 %3266, %v59_v3   ;;  %v70_v18 = vld [vmem:[%s5066_s0 + $0x70] sm:$0xff]  ;;  %v3274_v21 = vld [vmem:[#allocation3 + $0xc] ss:$16 sps:$4 sm:$0xff]   ;;  %v3272_v47 = vld [vmem:[#allocation3 + $0x8] ss:$16 sps:$4 sm:$0xff]   ;;  %p3744_p5 = por %p3743_p4, %p3742_p3 }
  0x2d   :  { %78 = vperm.xlu0 %3265, %v57_v4   ;;  %v3269_v19 = vld [vmem:[#allocation3 + $0x4] ss:$16 sps:$4 sm:$0xff]   ;;  %v3271_v20 = vld [vmem:[#allocation3] ss:$16 sps:$4 sm:$0xff]   ;;  %v3280_v50 = vld [vmem:[#allocation3 + $0x2c] ss:$16 sps:$4 sm:$0xff]  }
  0x2e   :  { %3220 = vmatpush3.bf16.msra.mxu0 %v3268_v8  ;;  %v3275_v22 = vld [vmem:[#allocation3 + $0x24] ss:$16 sps:$4 sm:$0xff]   ;;  %538 = vmatprep.subr.bf16.mxu1 %v3269_v19  ;;  %v3277_v23 = vld [vmem:[#allocation3 + $0x20] ss:$16 sps:$4 sm:$0xff]   ;;  %v3278_v54 = vld [vmem:[#allocation3 + $0x28] ss:$16 sps:$4 sm:$0xff]   ;;  %p3745_p6 = pnand %p3744_p5, %p3738_p2 }
  0x2f   :  { %539 = vmatpush1.bf16.msra.mxu1 %v3271_v20  ;;  %651 = vmatprep.subr.bf16.mxu0 %v3274_v21  ;;  %v3281_v24 = vld [vmem:[#allocation3 + $0x44] ss:$16 sps:$4 sm:$0xff]   ;;  %v3283_v25 = vld [vmem:[#allocation3 + $0x40] ss:$16 sps:$4 sm:$0xff]   ;;  %v3286_v57 = vld [vmem:[#allocation3 + $0x4c] ss:$16 sps:$4 sm:$0xff]  }
  0x30   :  { %90 = vperm.xlu1 %3266, %v61_v5   ;;  %540 = vmatprep.subr.bf16.mxu1 %v3275_v22  ;;  %v3287_v26 = vld [vmem:[#allocation3 + $0x64] ss:$16 sps:$4 sm:$0xff]   ;;  %v3289_v27 = vld [vmem:[#allocation3 + $0x60] ss:$16 sps:$4 sm:$0xff]   ;;  %v3284_v61 = vld [vmem:[#allocation3 + $0x48] ss:$16 sps:$4 sm:$0xff]  }
  0x31   :  { %87 = vperm.xlu0 %3265, %v60_v6   ;;  %v3293_v28 = vld [vmem:[#allocation3 + $0x84] ss:$16 sps:$4 sm:$0xff]   ;;  %v3295_v29 = vld [vmem:[#allocation3 + $0x80] ss:$16 sps:$4 sm:$0xff]   ;;  %v3292_v1 = vld [vmem:[#allocation3 + $0x6c] ss:$16 sps:$4 sm:$0xff]  }
  0x32   :  { %v3299_v30 = vld [vmem:[#allocation3 + $0xa4] ss:$16 sps:$4 sm:$0xff]   ;;  %v3301_v31 = vld [vmem:[#allocation3 + $0xa0] ss:$16 sps:$4 sm:$0xff]   ;;  %v3290_v5 = vld [vmem:[#allocation3 + $0x68] ss:$16 sps:$4 sm:$0xff]  }
  0x33   :  { %541 = vmatpush1.bf16.msra.mxu1 %v3277_v23  ;;  %v3305_v32 = vld [vmem:[#allocation3 + $0xc4] ss:$16 sps:$4 sm:$0xff]   ;;  %v3307_v33 = vld [vmem:[#allocation3 + $0xc0] ss:$16 sps:$4 sm:$0xff]   ;;  %v3298_v8 = vld [vmem:[#allocation3 + $0x8c] ss:$16 sps:$4 sm:$0xff]  }
  0x34   :  { %96 = vperm.xlu1 %3266, %v63_v9   ;;  %542 = vmatprep.subr.bf16.mxu1 %v3281_v24  ;;  %v3302_v19 = vld [vmem:[#allocation3 + $0xa8] ss:$16 sps:$4 sm:$0xff]   ;;  %v3310_v22 = vld [vmem:[#allocation3 + $0xcc] ss:$16 sps:$4 sm:$0xff]  }
  0x35   :  { %93 = vperm.xlu0 %3265, %v62_v10  }
  0x37   :  { %543 = vmatpush1.bf16.msra.mxu1 %v3283_v25 }
  0x38   :  { %102 = vperm.xlu1 %3266, %v65_v11   ;;  %544 = vmatprep.subr.bf16.mxu1 %v3287_v26  ;;  %v3308_v26 = vld [vmem:[#allocation3 + $0xc8] ss:$16 sps:$4 sm:$0xff]  }
  0x39   :  { %99 = vperm.xlu0 %3265, %v64_v12   ;;  %v3296_v12 = vld [vmem:[#allocation3 + $0x88] ss:$16 sps:$4 sm:$0xff]  }
  0x3b   :  { %545 = vmatpush1.bf16.msra.mxu1 %v3289_v27  ;;  %v3311_v27 = vld [vmem:[#allocation3 + $0xe4] ss:$16 sps:$4 sm:$0xff]  }
  0x3c   :  { %108 = vperm.xlu1 %3266, %v67_v13   ;;  %546 = vmatprep.subr.bf16.mxu1 %v3293_v28  ;;  %v3316_v28 = vld [vmem:[#allocation3 + $0xec] ss:$16 sps:$4 sm:$0xff]  }
  0x3d   :  { %105 = vperm.xlu0 %3265, %v66_v14  }
  0x3f   :  { %547 = vmatpush1.bf16.msra.mxu1 %v3295_v29  ;;  %v3313_v29 = vld [vmem:[#allocation3 + $0xe0] ss:$16 sps:$4 sm:$0xff]  }
  0x40   :  { %114 = vperm.xlu1 %3266, %v69_v15   ;;  %548 = vmatprep.subr.bf16.mxu1 %v3299_v30  ;;  %v3304_v15 = vld [vmem:[#allocation3 + $0xac] ss:$16 sps:$4 sm:$0xff]   ;;  %v3314_v30 = vld [vmem:[#allocation3 + $0xe8] ss:$16 sps:$4 sm:$0xff]  }
  0x41   :  { %111 = vperm.xlu0 %3265, %v68_v16  }
  0x43   :  { %549 = vmatpush1.bf16.msra.mxu1 %v3301_v31  ;;  %v3938_v31 = vld [vmem:[#allocation6 + $0x4] ss:$16 sps:$4 sm:$0xff]  }
  0x44   :  { %120 = vperm.xlu1 %3266, %v71_v17   ;;  %550 = vmatprep.subr.bf16.mxu1 %v3305_v32  ;;  %v3941_v32 = vld [vmem:[#allocation6 + $0xc] ss:$16 sps:$4 sm:$0xff]  }
  0x45   :  { %117 = vperm.xlu0 %3265, %v70_v18  }
  0x47   :  { %551 = vmatpush1.bf16.msra.mxu1 %v3307_v33 }
  0x48   :  { %552 = vmatprep.subr.bf16.mxu1 %v3311_v27 }
  0x4b   :  { %553 = vmatpush1.bf16.msra.mxu1 %v3313_v29 }
  0x4c   :  { %1027 = vmatprep.subr.bf16.mxu1 %v3938_v31 }
  0xa7   :  { %v82_v36 = vpop.permute.xlu1 %81 }
  0xa8   :  { %v76_v37 = vpop.permute.xlu0 %75  ;;  %vm124_vm0 = vcmp.eq.s32.totalorder %v3895_v35, %v82_v36 }
  0xa9   :  { %vm122_vm1 = vcmp.eq.s32.totalorder %v3895_v35, %v76_v37  ;;  %v3053_v41 = vsel %vm124_vm0, 1.0, %v5074_v40 }
  0xaa   :  { %v3051_v42 = vsel %vm122_vm1, 1.0, %v5074_v40  ;;  %vm3771_vm1 = vmmov 0  }
  0xab   :  { %v85_v38 = vpop.permute.xlu1 %84 }
  0xac   :  { %v79_v39 = vpop.permute.xlu0 %78  ;;  %vm125_vm2 = vcmp.eq.s32.totalorder %v3895_v35, %v85_v38 }
  0xad   :  { %vm123_vm3 = vcmp.eq.s32.totalorder %v3895_v35, %v79_v39  ;;  %v3054_v43 = vsel %vm125_vm2, 1.0, %v5074_v40  ;;  %v3944_v39 = vld [vmem:[#allocation6] ss:$16 sps:$4 sm:$0xff]  }
  0xae   :  { %v3052_v44 = vsel %vm123_vm3, 1.0, %v5074_v40  ;;  %v171_v45 = vpack.c.bf16 %v3054_v43, %v3053_v41  ;;  %v3948_v43 = vld [vmem:[#allocation6 + $0x8] ss:$16 sps:$4 sm:$0xff]  }
  0xaf   :  { %v170_v46 = vpack.c.bf16 %v3052_v44, %v3051_v42  ;;  %v91_v48 = vpop.permute.xlu1 %90  ;;  %v3946_v42 = vld [vmem:[#allocation6 + $0x24] ss:$16 sps:$4 sm:$0xff]   ;;  %v3950_v44 = vld [vmem:[#allocation6 + $0x2c] ss:$16 sps:$4 sm:$0xff]  }
  0xb0   :  { %v88_v49 = vpop.permute.xlu0 %87  ;;  %vm127_vm5 = vcmp.eq.s32.totalorder %v3895_v35, %v91_v48 }
  0xb1   :  { %vm126_vm6 = vcmp.eq.s32.totalorder %v3895_v35, %v88_v49  ;;  %3221 = vmatprep.mubr.msk.bf16.mxu0 %vm194_vm4, %v170_v46  ;;  %v3056_v51 = vsel %vm127_vm5, 1.0, %v5074_v40  ;;  %v3961_v49 = vld [vmem:[#allocation6 + $0x28] ss:$16 sps:$4 sm:$0xff]  }
  0xb2   :  { %v3055_v52 = vsel %vm126_vm6, 1.0, %v5074_v40  ;;  %3222 = vmatmul.mubr.msk.bf16.vlgmr.msra.gmra.mrb[0].mxu0 %vm194_vm4, %v171_v45  ;;  %v3954_v45 = vld [vmem:[#allocation6 + $0x20] ss:$16 sps:$4 sm:$0xff]  }
  0xb3   :  { %v172_v53 = vpack.c.bf16 %v3056_v51, %v3055_v52  ;;  %652 = vmatpush1.bf16.msra.mxu0 %v3272_v47  ;;  %v97_v55 = vpop.permute.xlu1 %96  ;;  %v3958_v47 = vld [vmem:[#allocation6 + $0x44] ss:$16 sps:$4 sm:$0xff]  }
  0xb4   :  { %v94_v56 = vpop.permute.xlu0 %93  ;;  %653 = vmatprep.subr.bf16.mxu0 %v3280_v50  ;;  %vm129_vm7 = vcmp.eq.s32.totalorder %v3895_v35, %v97_v55  ;;  %v3968_v55 = vld [vmem:[#allocation6 + $0x4c] ss:$16 sps:$4 sm:$0xff]  }
  0xb5   :  { %vm128_vm8 = vcmp.eq.s32.totalorder %v3895_v35, %v94_v56  ;;  %3225 = vmatprep.mubr.msk.bf16.mxu0 %vm194_vm4, %v172_v53  ;;  %v3058_v58 = vsel %vm129_vm7, 1.0, %v5074_v40  ;;  %v3970_v56 = vld [vmem:[#allocation6 + $0x64] ss:$16 sps:$4 sm:$0xff]  }
  0xb6   :  { %v3057_v59 = vsel %vm128_vm8, 1.0, %v5074_v40 }
  0xb7   :  { %v173_v60 = vpack.c.bf16 %v3058_v58, %v3057_v59  ;;  %654 = vmatpush1.bf16.msra.mxu0 %v3278_v54  ;;  %v103_v62 = vpop.permute.xlu1 %102  ;;  %v3966_v54 = vld [vmem:[#allocation6 + $0x40] ss:$16 sps:$4 sm:$0xff]   ;;  %v3975_v58 = vld [vmem:[#allocation6 + $0x6c] ss:$16 sps:$4 sm:$0xff]  }
  0xb8   :  { %v100_v63 = vpop.permute.xlu0 %99  ;;  %655 = vmatprep.subr.bf16.mxu0 %v3286_v57  ;;  %vm131_vm9 = vcmp.eq.s32.totalorder %v3895_v35, %v103_v62  ;;  %v3973_v57 = vld [vmem:[#allocation6 + $0x48] ss:$16 sps:$4 sm:$0xff]   ;;  %v3984_v62 = vld [vmem:[#allocation6 + $0x84] ss:$16 sps:$4 sm:$0xff]  }
  0xb9   :  { %vm130_vm10 = vcmp.eq.s32.totalorder %v3895_v35, %v100_v63  ;;  %v3060_v2 = vsel %vm131_vm9, 1.0, %v5074_v40  ;;  %v3987_v63 = vld [vmem:[#allocation6 + $0x68] ss:$16 sps:$4 sm:$0xff]  }
  0xba   :  { %v3059_v3 = vsel %vm130_vm10, 1.0, %v5074_v40  ;;  %3226 = vmatmul.mubr.msk.bf16.gmra.mrb[4].mxu0 %vm194_vm4, %v173_v60  ;;  %v3980_v60 = vld [vmem:[#allocation6 + $0x60] ss:$16 sps:$4 sm:$0xff]  }
  0xbb   :  { %v174_v4 = vpack.c.bf16 %v3060_v2, %v3059_v3  ;;  %656 = vmatpush1.bf16.msra.mxu0 %v3284_v61  ;;  %v109_v6 = vpop.permute.xlu1 %108 }
  0xbc   :  { %v106_v7 = vpop.permute.xlu0 %105  ;;  %657 = vmatprep.subr.bf16.mxu0 %v3292_v1  ;;  %vm133_vm11 = vcmp.eq.s32.totalorder %v3895_v35, %v109_v6  ;;  %v3993_v6 = vld [vmem:[#allocation6 + $0x8c] ss:$16 sps:$4 sm:$0xff]  }
  0xbd   :  { %vm132_vm12 = vcmp.eq.s32.totalorder %v3895_v35, %v106_v7  ;;  %3229 = vmatprep.mubr.msk.bf16.mxu0 %vm194_vm4, %v174_v4  ;;  %v3062_v9 = vsel %vm133_vm11, 1.0, %v5074_v40  ;;  %v3996_v7 = vld [vmem:[#allocation6 + $0xa4] ss:$16 sps:$4 sm:$0xff]  }
  0xbe   :  { %v3061_v10 = vsel %vm132_vm12, 1.0, %v5074_v40 }
  0xbf   :  { %v175_v11 = vpack.c.bf16 %v3062_v9, %v3061_v10  ;;  %658 = vmatpush1.bf16.msra.mxu0 %v3290_v5  ;;  %v115_v13 = vpop.permute.xlu1 %114  ;;  %v3991_v5 = vld [vmem:[#allocation6 + $0x80] ss:$16 sps:$4 sm:$0xff]   ;;  %v4001_v9 = vld [vmem:[#allocation6 + $0xac] ss:$16 sps:$4 sm:$0xff]  }
  0xc0   :  { %v112_v14 = vpop.permute.xlu0 %111  ;;  %659 = vmatprep.subr.bf16.mxu0 %v3298_v8  ;;  %vm135_vm13 = vcmp.eq.s32.totalorder %v3895_v35, %v115_v13  ;;  %v3999_v8 = vld [vmem:[#allocation6 + $0x88] ss:$16 sps:$4 sm:$0xff]   ;;  %v4010_v13 = vld [vmem:[#allocation6 + $0xc4] ss:$16 sps:$4 sm:$0xff]  }
  0xc1   :  { %vm134_vm14 = vcmp.eq.s32.totalorder %v3895_v35, %v112_v14  ;;  %v3064_v16 = vsel %vm135_vm13, 1.0, %v5074_v40  ;;  %v4013_v14 = vld [vmem:[#allocation6 + $0xa8] ss:$16 sps:$4 sm:$0xff]  }
  0xc2   :  { %v3063_v17 = vsel %vm134_vm14, 1.0, %v5074_v40  ;;  %3230 = vmatmul.mubr.msk.bf16.gmra.mrb[8].mxu0 %vm194_vm4, %v175_v11  ;;  %v4006_v11 = vld [vmem:[#allocation6 + $0xa0] ss:$16 sps:$4 sm:$0xff]  }
  0xc3   :  { %v176_v18 = vpack.c.bf16 %v3064_v16, %v3063_v17  ;;  %660 = vmatpush1.bf16.msra.mxu0 %v3296_v12  ;;  %v121_v20 = vpop.permute.xlu1 %120 }
  0xc4   :  { %v118_v21 = vpop.permute.xlu0 %117  ;;  %661 = vmatprep.subr.bf16.mxu0 %v3304_v15  ;;  %vm137_vm15 = vcmp.eq.s32.totalorder %v3895_v35, %v121_v20  ;;  %v4019_v20 = vld [vmem:[#allocation6 + $0xcc] ss:$16 sps:$4 sm:$0xff]  }
  0xc5   :  { %vm136_vm0 = vcmp.eq.s32.totalorder %v3895_v35, %v118_v21  ;;  %3233 = vmatprep.mubr.msk.bf16.mxu0 %vm194_vm4, %v176_v18  ;;  %v3066_v23 = vsel %vm137_vm15, 1.0, %v5074_v40  ;;  %v4023_v21 = vld [vmem:[#allocation6 + $0xe4] ss:$16 sps:$4 sm:$0xff]  }
  0xc6   :  { %v3065_v24 = vsel %vm136_vm0, 1.0, %v5074_v40 }
  0xc7   :  { %v177_v25 = vpack.c.bf16 %v3066_v23, %v3065_v24  ;;  %662 = vmatpush1.bf16.msra.mxu0 %v3302_v19  ;;  %v4017_v19 = vld [vmem:[#allocation6 + $0xc0] ss:$16 sps:$4 sm:$0xff]   ;;  %v4027_v23 = vld [vmem:[#allocation6 + $0xec] ss:$16 sps:$4 sm:$0xff]  }
  0xc8   :  { %663 = vmatprep.subr.bf16.mxu0 %v3310_v22  ;;  %v4025_v22 = vld [vmem:[#allocation6 + $0xc8] ss:$16 sps:$4 sm:$0xff]   ;;  %v4032_v24 = vld [vmem:[#allocation6 + $0xe0] ss:$16 sps:$4 sm:$0xff]  }
  0xca   :  { %3234 = vmatmul.mubr.msk.bf16.gmra.mrb[12].mxu0 %vm194_vm4, %v177_v25  ;;  %v4037_v25 = vld [vmem:[#allocation6 + $0xe8] ss:$16 sps:$4 sm:$0xff]  }
  0xcb   :  { %664 = vmatpush1.bf16.msra.mxu0 %v3308_v26  ;;  %683 = vmatprep.mubr.bf16.mxu0 %v5076_v0  ;;  %v359_v26 = vshrl.u32 %v72_v34, 7 }
  0xcc   :  { %665 = vmatprep.subr.bf16.mxu0 %v3316_v28 }
  0xcd   :  { %v360_v27 = vsub.s32 0, %v359_v26  ;;  %v368_v28 = vsub.s32 2, %v359_v26  ;;  %v364_v29 = vsub.s32 1, %v359_v26 }
  0xcf   :  { %666 = vmatpush1.bf16.msra.mxu0 %v3314_v30  ;;  %v372_v30 = vsub.s32 3, %v359_v26 }
  0xd0   :  { %1068 = vmatprep.subr.bf16.mxu0 %v3941_v32 }
 0x185   :  { %v3223_v33 = vpop.f32.mrb[0].mxu0 }
 0x186   :  { %v253_v35 = vpop.f32.mrb[1].mxu0 }
 0x187   :  { %v3224_v36 = vpop.f32.mrb[2].mxu0 }
 0x188   :  { %v317_v37 = vpack.c.bf16 %v3224_v36, %v3223_v33  ;;  %v256_v38 = vpop.f32.mrb[3].mxu0  ;;  %v356_v33 = vld [vmem:[%s5070_s4] sm:$0xf] }
 0x189   :  { %v316_v41 = vpack.c.bf16 %v256_v38, %v253_v35  ;;  %v4092_v35 = vrot.slane %v356_v33, %v360_v27  ;;  %v4094_v36 = vrot.slane %v356_v33, %v368_v28  ;;  %v4098_v38 = vrot.slane %v356_v33, %v372_v30 }
 0x18b   :  { %571 = vmatmul.mubr.bf16.vlgmr.msra.gmra.mrb[0].mxu1 %v316_v41  ;;  %684 = vmatmul.mubr.bf16.vlgmr.msra.gmra.mrb[16].mxu0 %v316_v41 }
 0x18c   :  { %1028 = vmatpush1.bf16.msra.mxu1 %v3944_v39  ;;  %580 = vmatprep.mubr.bf16.mxu1 %v5076_v0 }
 0x18d   :  { %v3227_v46 = vpop.f32.mrb[4].mxu0  ;;  %693 = vmatprep.mubr.bf16.mxu0 %v5076_v0  ;;  %1029 = vmatprep.subr.bf16.mxu1 %v3946_v42 }
 0x18e   :  { %v269_v48 = vpop.f32.mrb[5].mxu0  ;;  %1069 = vmatpush1.bf16.msra.mxu0 %v3948_v43 }
 0x18f   :  { %v3228_v50 = vpop.f32.mrb[6].mxu0  ;;  %1070 = vmatprep.subr.bf16.mxu0 %v3950_v44 }
 0x190   :  { %v319_v51 = vpack.c.bf16 %v3228_v50, %v3227_v46  ;;  %v272_v52 = vpop.f32.mrb[7].mxu0  ;;  %1030 = vmatpush1.bf16.msra.mxu1 %v3954_v45 }
 0x191   :  { %v318_v53 = vpack.c.bf16 %v272_v52, %v269_v48  ;;  %1031 = vmatprep.subr.bf16.mxu1 %v3958_v47 }
 0x192   :  { %1071 = vmatpush1.bf16.msra.mxu0 %v3961_v49 }
 0x193   :  { %581 = vmatmul.mubr.bf16.gmra.mrb[4].mxu1 %v317_v37  ;;  %694 = vmatmul.mubr.bf16.gmra.mrb[20].mxu0 %v317_v37  ;;  %v4096_v37 = vrot.slane %v356_v33, %v364_v29 }
 0x194   :  { %590 = vmatprep.mubr.bf16.mxu1 %v5076_v0  ;;  %703 = vmatprep.mubr.bf16.mxu0 %v5076_v0 }
 0x195   :  { %v3231_v59 = vpop.f32.mrb[8].mxu0  ;;  %1032 = vmatpush1.bf16.msra.mxu1 %v3966_v54  ;;  %1072 = vmatprep.subr.bf16.mxu0 %v3968_v55 }
 0x196   :  { %v285_v61 = vpop.f32.mrb[9].mxu0  ;;  %1033 = vmatprep.subr.bf16.mxu1 %v3970_v56  ;;  %1073 = vmatpush1.bf16.msra.mxu0 %v3973_v57 }
 0x197   :  { %v3232_v1 = vpop.f32.mrb[10].mxu0  ;;  %1074 = vmatprep.subr.bf16.mxu0 %v3975_v58 }
 0x198   :  { %v321_v2 = vpack.c.bf16 %v3232_v1, %v3231_v59  ;;  %v288_v3 = vpop.f32.mrb[11].mxu0 }
 0x199   :  { %v320_v4 = vpack.c.bf16 %v288_v3, %v285_v61  ;;  %1034 = vmatpush1.bf16.msra.mxu1 %v3980_v60 }
 0x19a   :  { %1035 = vmatprep.subr.bf16.mxu1 %v3984_v62  ;;  %1075 = vmatpush1.bf16.msra.mxu0 %v3987_v63 }
 0x19b   :  { %591 = vmatmul.mubr.bf16.gmra.mrb[8].mxu1 %v318_v53  ;;  %704 = vmatmul.mubr.bf16.gmra.mrb[24].mxu0 %v318_v53 }
 0x19c   :  { %600 = vmatprep.mubr.bf16.mxu1 %v5076_v0  ;;  %713 = vmatprep.mubr.bf16.mxu0 %v5076_v0 }
 0x19d   :  { %v3235_v10 = vpop.f32.mrb[12].mxu0  ;;  %1036 = vmatpush1.bf16.msra.mxu1 %v3991_v5  ;;  %1076 = vmatprep.subr.bf16.mxu0 %v3993_v6 }
 0x19e   :  { %v301_v12 = vpop.f32.mrb[13].mxu0  ;;  %1037 = vmatprep.subr.bf16.mxu1 %v3996_v7  ;;  %1077 = vmatpush1.bf16.msra.mxu0 %v3999_v8 }
 0x19f   :  { %v3236_v15 = vpop.f32.mrb[14].mxu0  ;;  %1078 = vmatprep.subr.bf16.mxu0 %v4001_v9 }
 0x1a0   :  { %v323_v16 = vpack.c.bf16 %v3236_v15, %v3235_v10  ;;  %v304_v17 = vpop.f32.mrb[15].mxu0 }
 0x1a1   :  { %v322_v18 = vpack.c.bf16 %v304_v17, %v301_v12  ;;  %1038 = vmatpush1.bf16.msra.mxu1 %v4006_v11 }
 0x1a2   :  { %1039 = vmatprep.subr.bf16.mxu1 %v4010_v13  ;;  %1079 = vmatpush1.bf16.msra.mxu0 %v4013_v14 }
 0x1a3   :  { %601 = vmatmul.mubr.bf16.gmra.mrb[12].mxu1 %v319_v51  ;;  %714 = vmatmul.mubr.bf16.gmra.mrb[28].mxu0 %v319_v51 }
 0x1a4   :  { %610 = vmatprep.mubr.bf16.mxu1 %v5076_v0  ;;  %723 = vmatprep.mubr.bf16.mxu0 %v5076_v0 }
 0x1a5   :  { %1040 = vmatpush1.bf16.msra.mxu1 %v4017_v19  ;;  %1080 = vmatprep.subr.bf16.mxu0 %v4019_v20 }
 0x1a6   :  { %1041 = vmatprep.subr.bf16.mxu1 %v4023_v21  ;;  %1081 = vmatpush1.bf16.msra.mxu0 %v4025_v22 }
 0x1a7   :  { %1082 = vmatprep.subr.bf16.mxu0 %v4027_v23 }
 0x1a9   :  { %1042 = vmatpush1.bf16.msra.mxu1 %v4032_v24 }
 0x1aa   :  { %1083 = vmatpush1.bf16.msra.mxu0 %v4037_v25  ;;  %1145 = vmatprep.subr.bf16.mxu1 %v3938_v31 }
 0x1ab   :  { %611 = vmatmul.mubr.bf16.gmra.mrb[16].mxu1 %v320_v4  ;;  %724 = vmatmul.mubr.bf16.gmra.mrb[32].mxu0 %v320_v4 }
 0x1ac   :  { %620 = vmatprep.mubr.bf16.mxu1 %v5076_v0  ;;  %733 = vmatprep.mubr.bf16.mxu0 %v5076_v0 }
 0x1ad   :  { %1186 = vmatprep.subr.bf16.mxu0 %v3941_v32 }
 0x1b3   :  { %621 = vmatmul.mubr.bf16.gmra.mrb[20].mxu1 %v321_v2  ;;  %734 = vmatmul.mubr.bf16.gmra.mrb[36].mxu0 %v321_v2 }
 0x1b4   :  { %630 = vmatprep.mubr.bf16.mxu1 %v5076_v0  ;;  %743 = vmatprep.mubr.bf16.mxu0 %v5076_v0 }
 0x1bb   :  { %631 = vmatmul.mubr.bf16.gmra.mrb[24].mxu1 %v322_v18  ;;  %744 = vmatmul.mubr.bf16.gmra.mrb[40].mxu0 %v322_v18 }
 0x1bc   :  { %640 = vmatprep.mubr.bf16.mxu1 %v5076_v0  ;;  %753 = vmatprep.mubr.bf16.mxu0 %v5076_v0 }
 0x1c3   :  { %641 = vmatmul.mubr.bf16.gmra.mrb[28].mxu1 %v323_v16  ;;  %754 = vmatmul.mubr.bf16.gmra.mrb[44].mxu0 %v323_v16 }
 0x1c4   :  { %1059 = vmatprep.mubr.bf16.mxu1 %v5076_v0  ;;  %1100 = vmatprep.mubr.bf16.mxu0 %v5076_v0 }
 0x1cb   :  { %1060 = vmatmul.mubr.bf16.vlgmr.msra.gmra.mrb[32].mxu1 %v5076_v0  ;;  %1101 = vmatmul.mubr.bf16.vlgmr.msra.gmra.mrb[48].mxu0 %v5076_v0 }
 0x1cc   :  { %1146 = vmatpush1.bf16.msra.mxu1 %v3944_v39  ;;  %1187 = vmatpush1.bf16.msra.mxu0 %v3948_v43 }
 0x1cd   :  { %1147 = vmatprep.subr.bf16.mxu1 %v3946_v42  ;;  %1188 = vmatprep.subr.bf16.mxu0 %v3950_v44 }
 0x1ce   :  { %1177 = vmatprep.mubr.bf16.mxu1 %v5076_v0  ;;  %1218 = vmatprep.mubr.bf16.mxu0 %v5076_v0 }
 0x1d0   :  { %1148 = vmatpush1.bf16.msra.mxu1 %v3954_v45  ;;  %1189 = vmatpush1.bf16.msra.mxu0 %v3961_v49 }
 0x1d1   :  { %1149 = vmatprep.subr.bf16.mxu1 %v3958_v47  ;;  %1190 = vmatprep.subr.bf16.mxu0 %v3968_v55 }
 0x1d4   :  { %1150 = vmatpush1.bf16.msra.mxu1 %v3966_v54  ;;  %1191 = vmatpush1.bf16.msra.mxu0 %v3973_v57 }
 0x1d5   :  { %1151 = vmatprep.subr.bf16.mxu1 %v3970_v56  ;;  %1192 = vmatprep.subr.bf16.mxu0 %v3975_v58 }
 0x1d8   :  { %1152 = vmatpush1.bf16.msra.mxu1 %v3980_v60  ;;  %1193 = vmatpush1.bf16.msra.mxu0 %v3987_v63 }
 0x1d9   :  { %1153 = vmatprep.subr.bf16.mxu1 %v3984_v62  ;;  %1194 = vmatprep.subr.bf16.mxu0 %v3993_v6 }
 0x1dc   :  { %1154 = vmatpush1.bf16.msra.mxu1 %v3991_v5  ;;  %1195 = vmatpush1.bf16.msra.mxu0 %v3999_v8 }
 0x1dd   :  { %1155 = vmatprep.subr.bf16.mxu1 %v3996_v7  ;;  %1196 = vmatprep.subr.bf16.mxu0 %v4001_v9 }
 0x1e0   :  { %1156 = vmatpush1.bf16.msra.mxu1 %v4006_v11  ;;  %1197 = vmatpush1.bf16.msra.mxu0 %v4013_v14 }
 0x1e1   :  { %1157 = vmatprep.subr.bf16.mxu1 %v4010_v13  ;;  %1198 = vmatprep.subr.bf16.mxu0 %v4019_v20 }
 0x1e4   :  { %1158 = vmatpush1.bf16.msra.mxu1 %v4017_v19  ;;  %1199 = vmatpush1.bf16.msra.mxu0 %v4025_v22 }
 0x1e5   :  { %1159 = vmatprep.subr.bf16.mxu1 %v4023_v21  ;;  %1200 = vmatprep.subr.bf16.mxu0 %v4027_v23 }
 0x1e8   :  { %1160 = vmatpush1.bf16.msra.mxu1 %v4032_v24  ;;  %1201 = vmatpush1.bf16.msra.mxu0 %v4037_v25 }
 0x1e9   :  { %1263 = vmatprep.subr.bf16.mxu1 %v3938_v31  ;;  %1304 = vmatprep.subr.bf16.mxu0 %v3941_v32 }
 0x25e   :  { %v572_v41 = vpop.f32.mrb[0].mxu1  ;;  %v685_v46 = vpop.f32.mrb[16].mxu0 }
 0x25f   :  { %v4101_v34 = vadd.f32 %v572_v41, %v4092_v35  ;;  %v4104_v48 = vadd.f32 %v685_v46, %v4094_v36  ;;  %v574_v50 = vpop.f32.mrb[1].mxu1  ;;  %v687_v51 = vpop.f32.mrb[17].mxu0 }
 0x260   :  { %v4107_v52 = vadd.f32 %v574_v50, %v4096_v37  ;;  %v4110_v53 = vadd.f32 %v687_v51, %v4098_v38  ;;  %v576_v59 = vpop.f32.mrb[2].mxu1  ;;  %v689_v61 = vpop.f32.mrb[18].mxu0 }
 0x261   :  { %v4113_v1 = vadd.f32 %v576_v59, %v4092_v35  ;;  %v4116_v2 = vadd.f32 %v689_v61, %v4094_v36  ;;  %v578_v3 = vpop.f32.mrb[3].mxu1  ;;  %v691_v4 = vpop.f32.mrb[19].mxu0 }
 0x262   :  { %v4119_v10 = vadd.f32 %v578_v3, %v4096_v37  ;;  %v4122_v12 = vadd.f32 %v691_v4, %v4098_v38 }
 0x266   :  { %v582_v15 = vpop.f32.mrb[4].mxu1  ;;  %v695_v16 = vpop.f32.mrb[20].mxu0 }
 0x267   :  { %v4125_v17 = vadd.f32 %v582_v15, %v4092_v35  ;;  %v4128_v18 = vadd.f32 %v695_v16, %v4094_v36  ;;  %v584_v26 = vpop.f32.mrb[5].mxu1  ;;  %v697_v27 = vpop.f32.mrb[21].mxu0 }
 0x268   :  { %v4131_v28 = vadd.f32 %v584_v26, %v4096_v37  ;;  %v4134_v29 = vadd.f32 %v697_v27, %v4098_v38  ;;  %v586_v30 = vpop.f32.mrb[6].mxu1  ;;  %v699_v33 = vpop.f32.mrb[22].mxu0 }
 0x269   :  { %v4137_v41 = vadd.f32 %v586_v30, %v4092_v35  ;;  %v4140_v46 = vadd.f32 %v699_v33, %v4094_v36  ;;  %v588_v50 = vpop.f32.mrb[7].mxu1  ;;  %v701_v51 = vpop.f32.mrb[23].mxu0 }
 0x26a   :  { %v4143_v59 = vadd.f32 %v588_v50, %v4096_v37  ;;  %v4146_v61 = vadd.f32 %v701_v51, %v4098_v38 }
 0x26c   :  { %5078 = vst [vmem:[#allocation12_spill] sm:$0xff] %v4146_v61 }
 0x26e   :  { %v592_v3 = vpop.f32.mrb[8].mxu1  ;;  %v705_v4 = vpop.f32.mrb[24].mxu0 }
 0x26f   :  { %v4149_v15 = vadd.f32 %v592_v3, %v4092_v35  ;;  %v4152_v16 = vadd.f32 %v705_v4, %v4094_v36  ;;  %v594_v26 = vpop.f32.mrb[9].mxu1  ;;  %v707_v27 = vpop.f32.mrb[25].mxu0 }
 0x270   :  { %v4155_v30 = vadd.f32 %v594_v26, %v4096_v37  ;;  %v4158_v33 = vadd.f32 %v707_v27, %v4098_v38  ;;  %v596_v50 = vpop.f32.mrb[10].mxu1  ;;  %v709_v40 = vpop.f32.mrb[26].mxu0 }
 0x271   :  { %5079 = vst [vmem:[#allocation13_spill] sm:$0xff] %v4149_v15  ;;  %5080 = vst [vmem:[#allocation14_spill] sm:$0xff] %v4152_v16  ;;  %v4161_v51 = vadd.f32 %v596_v50, %v4092_v35  ;;  %v4164_v0 = vadd.f32 %v709_v40, %v4094_v36  ;;  %v598_v3 = vpop.f32.mrb[11].mxu1  ;;  %v711_v15 = vpop.f32.mrb[27].mxu0 }
 0x272   :  { %5081 = vst [vmem:[#allocation15_spill] sm:$0xff] %v4155_v30  ;;  %5082 = vst [vmem:[#allocation16_spill] sm:$0xff] %v4158_v33  ;;  %v4167_v4 = vadd.f32 %v598_v3, %v4096_v37  ;;  %v4170_v16 = vadd.f32 %v711_v15, %v4098_v38 }
 0x273   :  { %5083 = vst [vmem:[#allocation17_spill] sm:$0xff] %v4161_v51  ;;  %5084 = vst [vmem:[#allocation18_spill] sm:$0xff] %v4164_v0 }
 0x274   :  { %5085 = vst [vmem:[#allocation19_spill] sm:$0xff] %v4167_v4  ;;  %5086 = vst [vmem:[#allocation20_spill] sm:$0xff] %v4170_v16 }
 0x276   :  { %v602_v26 = vpop.f32.mrb[12].mxu1  ;;  %v715_v30 = vpop.f32.mrb[28].mxu0 }
 0x277   :  { %v4173_v27 = vadd.f32 %v602_v26, %v4092_v35  ;;  %v4176_v33 = vadd.f32 %v715_v30, %v4094_v36  ;;  %v604_v50 = vpop.f32.mrb[13].mxu1  ;;  %v717_v51 = vpop.f32.mrb[29].mxu0 }
 0x278   :  { %v4179_v40 = vadd.f32 %v604_v50, %v4096_v37  ;;  %v4182_v0 = vadd.f32 %v717_v51, %v4098_v38  ;;  %v606_v3 = vpop.f32.mrb[14].mxu1  ;;  %v719_v4 = vpop.f32.mrb[30].mxu0 }
 0x279   :  { %5087 = vst [vmem:[#allocation21_spill] sm:$0xff] %v4173_v27  ;;  %5088 = vst [vmem:[#allocation22_spill] sm:$0xff] %v4176_v33  ;;  %v4185_v15 = vadd.f32 %v606_v3, %v4092_v35  ;;  %v4188_v16 = vadd.f32 %v719_v4, %v4094_v36  ;;  %v608_v26 = vpop.f32.mrb[15].mxu1  ;;  %v721_v27 = vpop.f32.mrb[31].mxu0 }
 0x27a   :  { %5089 = vst [vmem:[#allocation23_spill] sm:$0xff] %v4179_v40  ;;  %5090 = vst [vmem:[#allocation24_spill] sm:$0xff] %v4182_v0  ;;  %v4191_v30 = vadd.f32 %v608_v26, %v4096_v37  ;;  %v4194_v33 = vadd.f32 %v721_v27, %v4098_v38 }
 0x27b   :  { %5091 = vst [vmem:[#allocation25_spill] sm:$0xff] %v4185_v15  ;;  %5092 = vst [vmem:[#allocation26_spill] sm:$0xff] %v4188_v16 }
 0x27c   :  { %5093 = vst [vmem:[#allocation27_spill] sm:$0xff] %v4191_v30  ;;  %5094 = vst [vmem:[#allocation28_spill] sm:$0xff] %v4194_v33 }
 0x27e   :  { %v612_v50 = vpop.f32.mrb[16].mxu1  ;;  %v725_v40 = vpop.f32.mrb[32].mxu0 }
 0x27f   :  { %v4197_v51 = vadd.f32 %v612_v50, %v4092_v35  ;;  %v4200_v0 = vadd.f32 %v725_v40, %v4094_v36  ;;  %v614_v3 = vpop.f32.mrb[17].mxu1  ;;  %v727_v15 = vpop.f32.mrb[33].mxu0 }
 0x280   :  { %v4203_v4 = vadd.f32 %v614_v3, %v4096_v37  ;;  %v4206_v16 = vadd.f32 %v727_v15, %v4098_v38  ;;  %v616_v26 = vpop.f32.mrb[18].mxu1  ;;  %v729_v30 = vpop.f32.mrb[34].mxu0 }
 0x281   :  { %5095 = vst [vmem:[#allocation29_spill] sm:$0xff] %v4197_v51  ;;  %5096 = vst [vmem:[#allocation30_spill] sm:$0xff] %v4200_v0  ;;  %v4209_v27 = vadd.f32 %v616_v26, %v4092_v35  ;;  %v4212_v33 = vadd.f32 %v729_v30, %v4094_v36  ;;  %v618_v50 = vpop.f32.mrb[19].mxu1  ;;  %v731_v51 = vpop.f32.mrb[35].mxu0 }
 0x282   :  { %5097 = vst [vmem:[#allocation31_spill] sm:$0xff] %v4203_v4  ;;  %5098 = vst [vmem:[#allocation32_spill] sm:$0xff] %v4206_v16  ;;  %v4215_v40 = vadd.f32 %v618_v50, %v4096_v37  ;;  %v4218_v0 = vadd.f32 %v731_v51, %v4098_v38 }
 0x283   :  { %5099 = vst [vmem:[#allocation33_spill] sm:$0xff] %v4209_v27  ;;  %5100 = vst [vmem:[#allocation34_spill] sm:$0xff] %v4212_v33 }
 0x284   :  { %5101 = vst [vmem:[#allocation35_spill] sm:$0xff] %v4215_v40  ;;  %5102 = vst [vmem:[#allocation36_spill] sm:$0xff] %v4218_v0 }
 0x286   :  { %v622_v3 = vpop.f32.mrb[20].mxu1  ;;  %v735_v4 = vpop.f32.mrb[36].mxu0 }
 0x287   :  { %v4221_v15 = vadd.f32 %v622_v3, %v4092_v35  ;;  %v4224_v16 = vadd.f32 %v735_v4, %v4094_v36  ;;  %v624_v26 = vpop.f32.mrb[21].mxu1  ;;  %v737_v27 = vpop.f32.mrb[37].mxu0 }
 0x288   :  { %v4227_v30 = vadd.f32 %v624_v26, %v4096_v37  ;;  %v4230_v33 = vadd.f32 %v737_v27, %v4098_v38  ;;  %v626_v50 = vpop.f32.mrb[22].mxu1  ;;  %v739_v40 = vpop.f32.mrb[38].mxu0 }
 0x289   :  { %5103 = vst [vmem:[#allocation37_spill] sm:$0xff] %v4221_v15  ;;  %5104 = vst [vmem:[#allocation38_spill] sm:$0xff] %v4224_v16  ;;  %v4233_v51 = vadd.f32 %v626_v50, %v4092_v35  ;;  %v4236_v0 = vadd.f32 %v739_v40, %v4094_v36  ;;  %v628_v3 = vpop.f32.mrb[23].mxu1  ;;  %v741_v15 = vpop.f32.mrb[39].mxu0 }
 0x28a   :  { %5105 = vst [vmem:[#allocation39_spill] sm:$0xff] %v4227_v30  ;;  %5106 = vst [vmem:[#allocation40_spill] sm:$0xff] %v4230_v33  ;;  %v4239_v4 = vadd.f32 %v628_v3, %v4096_v37  ;;  %v4242_v16 = vadd.f32 %v741_v15, %v4098_v38 }
 0x28b   :  { %5107 = vst [vmem:[#allocation41_spill] sm:$0xff] %v4233_v51  ;;  %5108 = vst [vmem:[#allocation42_spill] sm:$0xff] %v4236_v0 }
 0x28c   :  { %5109 = vst [vmem:[#allocation43_spill] sm:$0xff] %v4239_v4  ;;  %5110 = vst [vmem:[#allocation44_spill] sm:$0xff] %v4242_v16 }
 0x28e   :  { %v632_v26 = vpop.f32.mrb[24].mxu1  ;;  %v745_v30 = vpop.f32.mrb[40].mxu0 }
 0x28f   :  { %v4245_v27 = vadd.f32 %v632_v26, %v4092_v35  ;;  %v4248_v33 = vadd.f32 %v745_v30, %v4094_v36  ;;  %v634_v50 = vpop.f32.mrb[25].mxu1  ;;  %v747_v51 = vpop.f32.mrb[41].mxu0 }
 0x290   :  { %v4251_v40 = vadd.f32 %v634_v50, %v4096_v37  ;;  %v4254_v0 = vadd.f32 %v747_v51, %v4098_v38  ;;  %v636_v3 = vpop.f32.mrb[26].mxu1  ;;  %v749_v4 = vpop.f32.mrb[42].mxu0 }
 0x291   :  { %5111 = vst [vmem:[#allocation45_spill] sm:$0xff] %v4245_v27  ;;  %5112 = vst [vmem:[#allocation46_spill] sm:$0xff] %v4248_v33  ;;  %v4257_v15 = vadd.f32 %v636_v3, %v4092_v35  ;;  %v4260_v16 = vadd.f32 %v749_v4, %v4094_v36  ;;  %v638_v26 = vpop.f32.mrb[27].mxu1  ;;  %v751_v27 = vpop.f32.mrb[43].mxu0 }
 0x292   :  { %5113 = vst [vmem:[#allocation47_spill] sm:$0xff] %v4251_v40  ;;  %5114 = vst [vmem:[#allocation48_spill] sm:$0xff] %v4254_v0  ;;  %v4263_v30 = vadd.f32 %v638_v26, %v4096_v37  ;;  %v4266_v33 = vadd.f32 %v751_v27, %v4098_v38 }
 0x293   :  { %5115 = vst [vmem:[#allocation49_spill] sm:$0xff] %v4257_v15  ;;  %5116 = vst [vmem:[#allocation50_spill] sm:$0xff] %v4260_v16 }
 0x294   :  { %5117 = vst [vmem:[#allocation51_spill] sm:$0xff] %v4263_v30  ;;  %5118 = vst [vmem:[#allocation52_spill] sm:$0xff] %v4266_v33 }
 0x296   :  { %v642_v50 = vpop.f32.mrb[28].mxu1  ;;  %v755_v40 = vpop.f32.mrb[44].mxu0 }
 0x297   :  { %v4269_v51 = vadd.f32 %v642_v50, %v4092_v35  ;;  %v4272_v0 = vadd.f32 %v755_v40, %v4094_v36  ;;  %v644_v3 = vpop.f32.mrb[29].mxu1  ;;  %v757_v15 = vpop.f32.mrb[45].mxu0 }
 0x298   :  { %v4275_v4 = vadd.f32 %v644_v3, %v4096_v37  ;;  %v4278_v16 = vadd.f32 %v757_v15, %v4098_v38  ;;  %v646_v26 = vpop.f32.mrb[30].mxu1  ;;  %v759_v30 = vpop.f32.mrb[46].mxu0 }
 0x299   :  { %5119 = vst [vmem:[#allocation53_spill] sm:$0xff] %v4269_v51  ;;  %5120 = vst [vmem:[#allocation54_spill] sm:$0xff] %v4272_v0  ;;  %v4281_v27 = vadd.f32 %v646_v26, %v4092_v35  ;;  %v4284_v33 = vadd.f32 %v759_v30, %v4094_v36  ;;  %v648_v50 = vpop.f32.mrb[31].mxu1  ;;  %v761_v51 = vpop.f32.mrb[47].mxu0 }
 0x29a   :  { %5121 = vst [vmem:[#allocation55_spill] sm:$0xff] %v4275_v4  ;;  %5122 = vst [vmem:[#allocation56_spill] sm:$0xff] %v4278_v16  ;;  %v4287_v40 = vadd.f32 %v648_v50, %v4096_v37  ;;  %v4290_v0 = vadd.f32 %v761_v51, %v4098_v38 }
 0x29b   :  { %5123 = vst [vmem:[#allocation57_spill] sm:$0xff] %v4281_v27  ;;  %5124 = vst [vmem:[#allocation58_spill] sm:$0xff] %v4284_v33 }
 0x29c   :  { %5125 = vst [vmem:[#allocation59_spill] sm:$0xff] %v4287_v40  ;;  %5126 = vst [vmem:[#allocation60_spill] sm:$0xff] %v4290_v0 }
 0x29e   :  { %v1061_v3 = vpop.f32.mrb[32].mxu1  ;;  %v1102_v4 = vpop.f32.mrb[48].mxu0 }
 0x29f   :  { %v1109_v15 = vadd.f32 %v1061_v3, %v4101_v34  ;;  %v1111_v16 = vadd.f32 %v1102_v4, %v4104_v48  ;;  %v1063_v61 = vpop.f32.mrb[33].mxu1  ;;  %v1104_v35 = vpop.f32.mrb[49].mxu0 }
 0x2a0   :  { %v1110_v26 = vadd.f32 %v1063_v61, %v4107_v52  ;;  %v1112_v36 = vadd.f32 %v1104_v35, %v4110_v53  ;;  %v1065_v30 = vpop.f32.mrb[34].mxu1  ;;  %v1106_v33 = vpop.f32.mrb[50].mxu0 }
 0x2a1   :  { %v3141_v27 = vmul.f32 -1.442695, %v1109_v15  ;;  %v1066_v37 = vpop.f32.mrb[35].mxu1  ;;  %v1107_v50 = vpop.f32.mrb[51].mxu0  ;;  %v3143_v38 = vmul.f32 -1.442695, %v1111_v16 }
 0x2a2   :  { %v3142_v40 = vmul.f32 -1.442695, %v1110_v26 }
 0x2a3   :  { %3373 = vpow2.f32 %v3141_v27 }
 0x2a4   :  { %3375 = vpow2.f32 %v3142_v40 }
 0x2a5   :  { %3377 = vtanh.f32 %v1112_v36 }
 0x2a6   :  { %3379 = vpow2.f32 %v3143_v38 }
 0x2ad   :  { %v3374_v51 = vpop.eup %3373 }
 0x2ae   :  { %v1122_v0 = vadd.f32 1.0, %v3374_v51  ;;  %v3376_v34 = vpop.eup %3375 }
 0x2af   :  { %v1123_v48 = vadd.f32 1.0, %v3376_v34  ;;  %v3378_v52 = vpop.eup %3377 }
 0x2b0   :  { %3381 = vrcp.f32 %v1122_v0  ;;  %v3380_v61 = vpop.eup %3379  ;;  %v5127_v0 = vmov 0  }
 0x2b1   :  { %3383 = vrcp.f32 %v1123_v48  ;;  %v1124_v3 = vadd.f32 1.0, %v3380_v61 }
 0x2b3   :  { %3385 = vrcp.f32 %v1124_v3 }
 0x2ba   :  { %v3382_v53 = vpop.eup %3381 }
 0x2bb   :  { %v1133_v4 = vmul.f32 %v3382_v53, %v3378_v52  ;;  %v3384_v33 = vpop.eup %3383 }
 0x2bc   :  { %v1132_v15 = vmul.f32 0.0, %v3384_v33 }
 0x2bd   :  { %v3386_v16 = vpop.eup %3385 }
 0x2be   :  { %v4296_v35 = vadd.f32 %v1133_v4, %v1132_v15 }
 0x2c0   :  { %3387 = vtanh.f32 %v4296_v35 }
 0x2ca   :  { %v3388_v27 = vpop.eup %3387 }
 0x2cb   :  { %v1136_v40 = vmul.f32 %v3388_v27, %v3386_v16 }
 0x2cd   :  { %v1144_v26 = vpack.c.bf16 %v1136_v40, %v1136_v40 }
 0x2cf   :  { %1178 = vmatmul.mubr.bf16.vlgmr.msra.gmra.mrb[36].mxu1 %v1144_v26  ;;  %1219 = vmatmul.mubr.bf16.vlgmr.msra.gmra.mrb[52].mxu0 %v1144_v26 }
 0x2d0   :  { %1264 = vmatpush1.bf16.msra.mxu1 %v3944_v39  ;;  %1305 = vmatpush1.bf16.msra.mxu0 %v3948_v43 }
 0x2d1   :  { %1265 = vmatprep.subr.bf16.mxu1 %v3946_v42  ;;  %1306 = vmatprep.subr.bf16.mxu0 %v3950_v44 }
 0x2d2   :  { %1295 = vmatprep.mubr.bf16.mxu1 %v5127_v0  ;;  %1336 = vmatprep.mubr.bf16.mxu0 %v5127_v0 }
 0x2d4   :  { %1266 = vmatpush1.bf16.msra.mxu1 %v3954_v45  ;;  %1307 = vmatpush1.bf16.msra.mxu0 %v3961_v49 }
 0x2d5   :  { %1267 = vmatprep.subr.bf16.mxu1 %v3958_v47  ;;  %1308 = vmatprep.subr.bf16.mxu0 %v3968_v55 }
 0x2d8   :  { %1268 = vmatpush1.bf16.msra.mxu1 %v3966_v54  ;;  %1309 = vmatpush1.bf16.msra.mxu0 %v3973_v57 }
 0x2d9   :  { %1269 = vmatprep.subr.bf16.mxu1 %v3970_v56  ;;  %1310 = vmatprep.subr.bf16.mxu0 %v3975_v58 }
 0x2dc   :  { %1270 = vmatpush1.bf16.msra.mxu1 %v3980_v60  ;;  %1311 = vmatpush1.bf16.msra.mxu0 %v3987_v63 }
 0x2dd   :  { %1271 = vmatprep.subr.bf16.mxu1 %v3984_v62  ;;  %1312 = vmatprep.subr.bf16.mxu0 %v3993_v6 }
 0x2e0   :  { %1272 = vmatpush1.bf16.msra.mxu1 %v3991_v5  ;;  %1313 = vmatpush1.bf16.msra.mxu0 %v3999_v8 }
 0x2e1   :  { %1273 = vmatprep.subr.bf16.mxu1 %v3996_v7  ;;  %1314 = vmatprep.subr.bf16.mxu0 %v4001_v9 }
 0x2e4   :  { %1274 = vmatpush1.bf16.msra.mxu1 %v4006_v11  ;;  %1315 = vmatpush1.bf16.msra.mxu0 %v4013_v14 }
 0x2e5   :  { %1275 = vmatprep.subr.bf16.mxu1 %v4010_v13  ;;  %1316 = vmatprep.subr.bf16.mxu0 %v4019_v20 }
 0x2e8   :  { %1276 = vmatpush1.bf16.msra.mxu1 %v4017_v19  ;;  %1317 = vmatpush1.bf16.msra.mxu0 %v4025_v22 }
 0x2e9   :  { %1277 = vmatprep.subr.bf16.mxu1 %v4023_v21  ;;  %1318 = vmatprep.subr.bf16.mxu0 %v4027_v23 }
 0x2ec   :  { %1278 = vmatpush1.bf16.msra.mxu1 %v4032_v24  ;;  %1319 = vmatpush1.bf16.msra.mxu0 %v4037_v25 }
 0x2ed   :  { %1381 = vmatprep.subr.bf16.mxu1 %v3938_v31  ;;  %1422 = vmatprep.subr.bf16.mxu0 %v3941_v32 }
 0x3a2   :  { %v1179_v36 = vpop.f32.mrb[36].mxu1  ;;  %v1220_v30 = vpop.f32.mrb[52].mxu0 }
 0x3a3   :  { %v1227_v37 = vadd.f32 %v1179_v36, %v4113_v1  ;;  %v1229_v50 = vadd.f32 %v1220_v30, %v4116_v2  ;;  %v1181_v38 = vpop.f32.mrb[37].mxu1  ;;  %v1222_v51 = vpop.f32.mrb[53].mxu0 }
 0x3a4   :  { %v1228_v34 = vadd.f32 %v1181_v38, %v4119_v10  ;;  %v1230_v48 = vadd.f32 %v1222_v51, %v4122_v12  ;;  %v1183_v52 = vpop.f32.mrb[38].mxu1  ;;  %v1224_v61 = vpop.f32.mrb[54].mxu0 }
 0x3a5   :  { %v3144_v53 = vmul.f32 -1.442695, %v1227_v37  ;;  %v1184_v4 = vpop.f32.mrb[39].mxu1  ;;  %v1225_v33 = vpop.f32.mrb[55].mxu0  ;;  %v3146_v15 = vmul.f32 -1.442695, %v1229_v50 }
 0x3a6   :  { %v3145_v3 = vmul.f32 -1.442695, %v1228_v34 }
 0x3a7   :  { %3389 = vpow2.f32 %v3144_v53 }
 0x3a8   :  { %3391 = vpow2.f32 %v3145_v3 }
 0x3a9   :  { %3393 = vtanh.f32 %v1230_v48 }
 0x3aa   :  { %3395 = vpow2.f32 %v3146_v15 }
 0x3b1   :  { %v3390_v16 = vpop.eup %3389 }
 0x3b2   :  { %v1240_v27 = vadd.f32 1.0, %v3390_v16  ;;  %v3392_v1 = vpop.eup %3391 }
 0x3b3   :  { %v1241_v2 = vadd.f32 1.0, %v3392_v1  ;;  %v3394_v10 = vpop.eup %3393 }
 0x3b4   :  { %3397 = vrcp.f32 %v1240_v27  ;;  %v3396_v40 = vpop.eup %3395 }
 0x3b5   :  { %3399 = vrcp.f32 %v1241_v2  ;;  %v1242_v30 = vadd.f32 1.0, %v3396_v40 }
 0x3b7   :  { %3401 = vrcp.f32 %v1242_v30 }
 0x3be   :  { %v3398_v12 = vpop.eup %3397 }
 0x3bf   :  { %v1251_v26 = vmul.f32 %v3398_v12, %v3394_v10  ;;  %v3400_v36 = vpop.eup %3399 }
 0x3c0   :  { %v1250_v37 = vmul.f32 %v3400_v36, %v4296_v35 }
 0x3c1   :  { %v3402_v50 = vpop.eup %3401 }
 0x3c2   :  { %v4338_v38 = vadd.f32 %v1251_v26, %v1250_v37 }
 0x3c4   :  { %3403 = vtanh.f32 %v4338_v38 }
 0x3ce   :  { %v3404_v51 = vpop.eup %3403 }
 0x3cf   :  { %v1254_v34 = vmul.f32 %v3404_v51, %v3402_v50 }
 0x3d1   :  { %v1262_v48 = vpack.c.bf16 %v1254_v34, %v1254_v34 }
 0x3d3   :  { %1296 = vmatmul.mubr.bf16.vlgmr.msra.gmra.mrb[40].mxu1 %v1262_v48  ;;  %1337 = vmatmul.mubr.bf16.vlgmr.msra.gmra.mrb[56].mxu0 %v1262_v48 }
 0x3d4   :  { %1382 = vmatpush1.bf16.msra.mxu1 %v3944_v39  ;;  %1423 = vmatpush1.bf16.msra.mxu0 %v3948_v43 }
 0x3d5   :  { %1383 = vmatprep.subr.bf16.mxu1 %v3946_v42  ;;  %1424 = vmatprep.subr.bf16.mxu0 %v3950_v44 }
 0x3d6   :  { %1413 = vmatprep.mubr.bf16.mxu1 %v5127_v0  ;;  %1454 = vmatprep.mubr.bf16.mxu0 %v5127_v0 }
 0x3d8   :  { %1384 = vmatpush1.bf16.msra.mxu1 %v3954_v45  ;;  %1425 = vmatpush1.bf16.msra.mxu0 %v3961_v49 }
 0x3d9   :  { %1385 = vmatprep.subr.bf16.mxu1 %v3958_v47  ;;  %1426 = vmatprep.subr.bf16.mxu0 %v3968_v55 }
 0x3dc   :  { %1386 = vmatpush1.bf16.msra.mxu1 %v3966_v54  ;;  %1427 = vmatpush1.bf16.msra.mxu0 %v3973_v57 }
 0x3dd   :  { %1387 = vmatprep.subr.bf16.mxu1 %v3970_v56  ;;  %1428 = vmatprep.subr.bf16.mxu0 %v3975_v58 }
 0x3e0   :  { %1388 = vmatpush1.bf16.msra.mxu1 %v3980_v60  ;;  %1429 = vmatpush1.bf16.msra.mxu0 %v3987_v63 }
 0x3e1   :  { %1389 = vmatprep.subr.bf16.mxu1 %v3984_v62  ;;  %1430 = vmatprep.subr.bf16.mxu0 %v3993_v6 }
 0x3e4   :  { %1390 = vmatpush1.bf16.msra.mxu1 %v3991_v5  ;;  %1431 = vmatpush1.bf16.msra.mxu0 %v3999_v8 }
 0x3e5   :  { %1391 = vmatprep.subr.bf16.mxu1 %v3996_v7  ;;  %1432 = vmatprep.subr.bf16.mxu0 %v4001_v9 }
 0x3e8   :  { %1392 = vmatpush1.bf16.msra.mxu1 %v4006_v11  ;;  %1433 = vmatpush1.bf16.msra.mxu0 %v4013_v14 }
 0x3e9   :  { %1393 = vmatprep.subr.bf16.mxu1 %v4010_v13  ;;  %1434 = vmatprep.subr.bf16.mxu0 %v4019_v20 }
 0x3ec   :  { %1394 = vmatpush1.bf16.msra.mxu1 %v4017_v19  ;;  %1435 = vmatpush1.bf16.msra.mxu0 %v4025_v22 }
 0x3ed   :  { %1395 = vmatprep.subr.bf16.mxu1 %v4023_v21  ;;  %1436 = vmatprep.subr.bf16.mxu0 %v4027_v23 }
 0x3f0   :  { %1396 = vmatpush1.bf16.msra.mxu1 %v4032_v24  ;;  %1437 = vmatpush1.bf16.msra.mxu0 %v4037_v25 }
 0x3f1   :  { %1499 = vmatprep.subr.bf16.mxu1 %v3938_v31  ;;  %1540 = vmatprep.subr.bf16.mxu0 %v3941_v32 }
 0x4a6   :  { %v1297_v35 = vpop.f32.mrb[40].mxu1  ;;  %v1338_v52 = vpop.f32.mrb[56].mxu0 }
 0x4a7   :  { %v1345_v61 = vadd.f32 %v1297_v35, %v4125_v17  ;;  %v1347_v53 = vadd.f32 %v1338_v52, %v4128_v18  ;;  %v1299_v4 = vpop.f32.mrb[41].mxu1  ;;  %v1340_v33 = vpop.f32.mrb[57].mxu0 }
 0x4a8   :  { %v1346_v3 = vadd.f32 %v1299_v4, %v4131_v28  ;;  %v1348_v15 = vadd.f32 %v1340_v33, %v4134_v29  ;;  %v1301_v16 = vpop.f32.mrb[42].mxu1  ;;  %v1342_v27 = vpop.f32.mrb[58].mxu0 }
 0x4a9   :  { %v3147_v1 = vmul.f32 -1.442695, %v1345_v61  ;;  %v1302_v2 = vpop.f32.mrb[43].mxu1  ;;  %v1343_v10 = vpop.f32.mrb[59].mxu0  ;;  %v3149_v32 = vmul.f32 -1.442695, %v1347_v53 }
 0x4aa   :  { %v3148_v31 = vmul.f32 -1.442695, %v1346_v3  ;;  %v4429_v2 = vld [vmem:[#allocation6] ss:$16 sps:$4 sm:$0xff]   ;;  %v4432_v10 = vld [vmem:[#allocation6 + $0x8] ss:$16 sps:$4 sm:$0xff]  }
 0x4ab   :  { %3405 = vpow2.f32 %v3147_v1 }
 0x4ac   :  { %3407 = vpow2.f32 %v3148_v31  ;;  %v4435_v31 = vld [vmem:[#allocation6 + $0x24] ss:$16 sps:$4 sm:$0xff]  }
 0x4ad   :  { %3409 = vtanh.f32 %v1348_v15 }
 0x4ae   :  { %3411 = vpow2.f32 %v3149_v32  ;;  %v4438_v32 = vld [vmem:[#allocation6 + $0x2c] ss:$16 sps:$4 sm:$0xff]  }
 0x4b5   :  { %v3406_v40 = vpop.eup %3405 }
 0x4b6   :  { %v1358_v12 = vadd.f32 1.0, %v3406_v40  ;;  %v3408_v17 = vpop.eup %3407  ;;  %v4443_v40 = vld [vmem:[#allocation6 + $0x20] ss:$16 sps:$4 sm:$0xff]  }
 0x4b7   :  { %v1359_v18 = vadd.f32 1.0, %v3408_v17  ;;  %v3410_v28 = vpop.eup %3409  ;;  %v4449_v17 = vld [vmem:[#allocation6 + $0x44] ss:$16 sps:$4 sm:$0xff]  }
 0x4b8   :  { %3413 = vrcp.f32 %v1358_v12  ;;  %v3412_v26 = vpop.eup %3411  ;;  %v4446_v12 = vld [vmem:[#allocation6 + $0x28] ss:$16 sps:$4 sm:$0xff]  }
 0x4b9   :  { %3415 = vrcp.f32 %v1359_v18  ;;  %v1360_v37 = vadd.f32 1.0, %v3412_v26  ;;  %v4452_v18 = vld [vmem:[#allocation6 + $0x4c] ss:$16 sps:$4 sm:$0xff]   ;;  %v4458_v26 = vld [vmem:[#allocation6 + $0x48] ss:$16 sps:$4 sm:$0xff]  }
 0x4bb   :  { %3417 = vrcp.f32 %v1360_v37  ;;  %v4470_v37 = vld [vmem:[#allocation6 + $0x68] ss:$16 sps:$4 sm:$0xff]  }
 0x4c2   :  { %v3414_v29 = vpop.eup %3413 }
 0x4c3   :  { %v1369_v36 = vmul.f32 %v3414_v29, %v3410_v28  ;;  %v3416_v30 = vpop.eup %3415  ;;  %v4455_v28 = vld [vmem:[#allocation6 + $0x40] ss:$16 sps:$4 sm:$0xff]   ;;  %v4461_v29 = vld [vmem:[#allocation6 + $0x64] ss:$16 sps:$4 sm:$0xff]  }
 0x4c4   :  { %v1368_v50 = vmul.f32 %v3416_v30, %v4338_v38  ;;  %v4467_v30 = vld [vmem:[#allocation6 + $0x60] ss:$16 sps:$4 sm:$0xff]  }
 0x4c5   :  { %v3418_v34 = vpop.eup %3417 }
 0x4c6   :  { %v4380_v51 = vadd.f32 %v1369_v36, %v1368_v50  ;;  %v4464_v36 = vld [vmem:[#allocation6 + $0x6c] ss:$16 sps:$4 sm:$0xff]   ;;  %v4473_v50 = vld [vmem:[#allocation6 + $0x84] ss:$16 sps:$4 sm:$0xff]  }
 0x4c8   :  { %3419 = vtanh.f32 %v4380_v51 }
 0x4d2   :  { %v3420_v48 = vpop.eup %3419 }
 0x4d3   :  { %v1372_v35 = vmul.f32 %v3420_v48, %v3418_v34  ;;  %v4479_v34 = vld [vmem:[#allocation6 + $0x80] ss:$16 sps:$4 sm:$0xff]   ;;  %v4482_v48 = vld [vmem:[#allocation6 + $0x88] ss:$16 sps:$4 sm:$0xff]  }
 0x4d5   :  { %v1380_v52 = vpack.c.bf16 %v1372_v35, %v1372_v35  ;;  %v4485_v35 = vld [vmem:[#allocation6 + $0xa4] ss:$16 sps:$4 sm:$0xff]  }
 0x4d7   :  { %1414 = vmatmul.mubr.bf16.vlgmr.msra.gmra.mrb[44].mxu1 %v1380_v52  ;;  %1455 = vmatmul.mubr.bf16.vlgmr.msra.gmra.mrb[60].mxu0 %v1380_v52  ;;  %v4488_v52 = vld [vmem:[#allocation6 + $0xac] ss:$16 sps:$4 sm:$0xff]  }
 0x4d8   :  { %1500 = vmatpush1.bf16.msra.mxu1 %v3944_v39  ;;  %1541 = vmatpush1.bf16.msra.mxu0 %v3948_v43  ;;  %v4415_v39 = vld [vmem:[#allocation6 + $0x4] ss:$16 sps:$4 sm:$0xff]  }
 0x4d9   :  { %1501 = vmatprep.subr.bf16.mxu1 %v3946_v42  ;;  %1542 = vmatprep.subr.bf16.mxu0 %v3950_v44  ;;  %v4418_v42 = vld [vmem:[#allocation6 + $0xc] ss:$16 sps:$4 sm:$0xff]  }
 0x4da   :  { %1531 = vmatprep.mubr.bf16.mxu1 %v5127_v0  ;;  %1572 = vmatprep.mubr.bf16.mxu0 %v5127_v0 }
 0x4dc   :  { %1502 = vmatpush1.bf16.msra.mxu1 %v3954_v45  ;;  %1543 = vmatpush1.bf16.msra.mxu0 %v3961_v49 }
 0x4dd   :  { %1503 = vmatprep.subr.bf16.mxu1 %v3958_v47  ;;  %1544 = vmatprep.subr.bf16.mxu0 %v3968_v55 }
 0x4e0   :  { %1504 = vmatpush1.bf16.msra.mxu1 %v3966_v54  ;;  %1545 = vmatpush1.bf16.msra.mxu0 %v3973_v57 }
 0x4e1   :  { %1505 = vmatprep.subr.bf16.mxu1 %v3970_v56  ;;  %1546 = vmatprep.subr.bf16.mxu0 %v3975_v58  ;;  %v5128_v56 = vld [vmem:[#allocation12_spill] sm:$0xff] }
 0x4e4   :  { %1506 = vmatpush1.bf16.msra.mxu1 %v3980_v60  ;;  %1547 = vmatpush1.bf16.msra.mxu0 %v3987_v63 }
 0x4e5   :  { %1507 = vmatprep.subr.bf16.mxu1 %v3984_v62  ;;  %1548 = vmatprep.subr.bf16.mxu0 %v3993_v6 }
 0x4e8   :  { %1508 = vmatpush1.bf16.msra.mxu1 %v3991_v5  ;;  %1549 = vmatpush1.bf16.msra.mxu0 %v3999_v8 }
 0x4e9   :  { %1509 = vmatprep.subr.bf16.mxu1 %v3996_v7  ;;  %1550 = vmatprep.subr.bf16.mxu0 %v4001_v9 }
 0x4ec   :  { %1510 = vmatpush1.bf16.msra.mxu1 %v4006_v11  ;;  %1551 = vmatpush1.bf16.msra.mxu0 %v4013_v14 }
 0x4ed   :  { %1511 = vmatprep.subr.bf16.mxu1 %v4010_v13  ;;  %1552 = vmatprep.subr.bf16.mxu0 %v4019_v20 }
 0x4f0   :  { %1512 = vmatpush1.bf16.msra.mxu1 %v4017_v19  ;;  %1553 = vmatpush1.bf16.msra.mxu0 %v4025_v22 }
 0x4f1   :  { %1513 = vmatprep.subr.bf16.mxu1 %v4023_v21  ;;  %1554 = vmatprep.subr.bf16.mxu0 %v4027_v23 }
 0x4f4   :  { %1514 = vmatpush1.bf16.msra.mxu1 %v4032_v24  ;;  %1555 = vmatpush1.bf16.msra.mxu0 %v4037_v25 }
 0x4f5   :  { %1617 = vmatprep.subr.bf16.mxu1 %v4415_v39  ;;  %1658 = vmatprep.subr.bf16.mxu0 %v4418_v42 }
 0x5aa   :  { %v1415_v43 = vpop.f32.mrb[44].mxu1  ;;  %v1456_v44 = vpop.f32.mrb[60].mxu0 }
 0x5ab   :  { %v1463_v45 = vadd.f32 %v1415_v43, %v4137_v41  ;;  %v1465_v47 = vadd.f32 %v1456_v44, %v4140_v46  ;;  %v1417_v49 = vpop.f32.mrb[45].mxu1  ;;  %v1458_v54 = vpop.f32.mrb[61].mxu0  ;;  %v4491_v43 = vld [vmem:[#allocation6 + $0xa0] ss:$16 sps:$4 sm:$0xff]  }
 0x5ac   :  { %v1464_v55 = vadd.f32 %v1417_v49, %v4143_v59  ;;  %v1466_v57 = vadd.f32 %v1458_v54, %v5128_v56  ;;  %v1419_v58 = vpop.f32.mrb[46].mxu1  ;;  %v1460_v60 = vpop.f32.mrb[62].mxu0  ;;  %v5129_v44 = vld [vmem:[#allocation13_spill] sm:$0xff]  ;;  %v5131_v49 = vld [vmem:[#allocation15_spill] sm:$0xff]  ;;  %v5132_v54 = vld [vmem:[#allocation16_spill] sm:$0xff] }
 0x5ad   :  { %v3150_v62 = vmul.f32 -1.442695, %v1463_v45  ;;  %v1420_v63 = vpop.f32.mrb[47].mxu1  ;;  %v1461_v5 = vpop.f32.mrb[63].mxu0  ;;  %v3152_v7 = vmul.f32 -1.442695, %v1465_v47 }
 0x5ae   :  { %v3151_v6 = vmul.f32 -1.442695, %v1464_v55  ;;  %v5130_v45 = vld [vmem:[#allocation14_spill] sm:$0xff] }
 0x5af   :  { %3421 = vpow2.f32 %v3150_v62 }
 0x5b0   :  { %3423 = vpow2.f32 %v3151_v6 }
 0x5b1   :  { %3425 = vtanh.f32 %v1466_v57 }
 0x5b2   :  { %3427 = vpow2.f32 %v3152_v7 }
 0x5b9   :  { %v3422_v8 = vpop.eup %3421 }
 0x5ba   :  { %v1476_v9 = vadd.f32 1.0, %v3422_v8  ;;  %v3424_v11 = vpop.eup %3423 }
 0x5bb   :  { %v1477_v41 = vadd.f32 1.0, %v3424_v11  ;;  %v3426_v46 = vpop.eup %3425 }
 0x5bc   :  { %3429 = vrcp.f32 %v1476_v9  ;;  %v3428_v59 = vpop.eup %3427 }
 0x5bd   :  { %3431 = vrcp.f32 %v1477_v41  ;;  %v1478_v4 = vadd.f32 1.0, %v3428_v59 }
 0x5bf   :  { %3433 = vrcp.f32 %v1478_v4 }
 0x5c6   :  { %v3430_v38 = vpop.eup %3429 }
 0x5c7   :  { %v1487_v61 = vmul.f32 %v3430_v38, %v3426_v46  ;;  %v3432_v53 = vpop.eup %3431 }
 0x5c8   :  { %v1486_v33 = vmul.f32 %v3432_v53, %v4380_v51  ;;  %v4476_v51 = vld [vmem:[#allocation6 + $0x8c] ss:$16 sps:$4 sm:$0xff]  }
 0x5c9   :  { %v3434_v15 = vpop.eup %3433 }
 0x5ca   :  { %v4426_v3 = vadd.f32 %v1487_v61, %v1486_v33 }
 0x5cc   :  { %3435 = vtanh.f32 %v4426_v3 }
 0x5d6   :  { %v3436_v16 = vpop.eup %3435 }
 0x5d7   :  { %v1490_v27 = vmul.f32 %v3436_v16, %v3434_v15  ;;  %v4539_v15 = vld [vmem:[#allocation6 + $0xc4] ss:$16 sps:$4 sm:$0xff]   ;;  %v4542_v16 = vld [vmem:[#allocation6 + $0xcc] ss:$16 sps:$4 sm:$0xff]  }
 0x5d9   :  { %v1498_v1 = vpack.c.bf16 %v1490_v27, %v1490_v27  ;;  %v4545_v27 = vld [vmem:[#allocation6 + $0xc0] ss:$16 sps:$4 sm:$0xff]  }
 0x5db   :  { %1532 = vmatmul.mubr.bf16.vlgmr.msra.gmra.mrb[48].mxu1 %v1498_v1  ;;  %1573 = vmatmul.mubr.bf16.vlgmr.msra.gmra.mrb[64].mxu0 %v1498_v1  ;;  %v4548_v1 = vld [vmem:[#allocation6 + $0xc8] ss:$16 sps:$4 sm:$0xff]  }
 0x5dc   :  { %1618 = vmatpush1.bf16.msra.mxu1 %v4429_v2  ;;  %1659 = vmatpush1.bf16.msra.mxu0 %v4432_v10 }
 0x5dd   :  { %1619 = vmatprep.subr.bf16.mxu1 %v4435_v31  ;;  %1660 = vmatprep.subr.bf16.mxu0 %v4438_v32 }
 0x5de   :  { %1649 = vmatprep.mubr.bf16.mxu1 %v5127_v0  ;;  %1690 = vmatprep.mubr.bf16.mxu0 %v5127_v0 }
 0x5e0   :  { %1620 = vmatpush1.bf16.msra.mxu1 %v4443_v40  ;;  %1661 = vmatpush1.bf16.msra.mxu0 %v4446_v12 }
 0x5e1   :  { %1621 = vmatprep.subr.bf16.mxu1 %v4449_v17  ;;  %1662 = vmatprep.subr.bf16.mxu0 %v4452_v18 }
 0x5e4   :  { %1622 = vmatpush1.bf16.msra.mxu1 %v4455_v28  ;;  %1663 = vmatpush1.bf16.msra.mxu0 %v4458_v26 }
 0x5e5   :  { %1623 = vmatprep.subr.bf16.mxu1 %v4461_v29  ;;  %1664 = vmatprep.subr.bf16.mxu0 %v4464_v36 }
 0x5e8   :  { %1624 = vmatpush1.bf16.msra.mxu1 %v4467_v30  ;;  %1665 = vmatpush1.bf16.msra.mxu0 %v4470_v37 }
 0x5e9   :  { %1625 = vmatprep.subr.bf16.mxu1 %v4473_v50  ;;  %1666 = vmatprep.subr.bf16.mxu0 %v4476_v51 }
 0x5ec   :  { %1626 = vmatpush1.bf16.msra.mxu1 %v4479_v34  ;;  %1667 = vmatpush1.bf16.msra.mxu0 %v4482_v48 }
 0x5ed   :  { %1627 = vmatprep.subr.bf16.mxu1 %v4485_v35  ;;  %1668 = vmatprep.subr.bf16.mxu0 %v4488_v52 }
 0x5f0   :  { %1628 = vmatpush1.bf16.msra.mxu1 %v4491_v43  ;;  %1669 = vmatpush1.bf16.msra.mxu0 %v4013_v14 }
 0x5f1   :  { %1629 = vmatprep.subr.bf16.mxu1 %v4010_v13  ;;  %1670 = vmatprep.subr.bf16.mxu0 %v4019_v20 }
 0x5f4   :  { %1630 = vmatpush1.bf16.msra.mxu1 %v4017_v19  ;;  %1671 = vmatpush1.bf16.msra.mxu0 %v4025_v22 }
 0x5f5   :  { %1631 = vmatprep.subr.bf16.mxu1 %v4023_v21  ;;  %1672 = vmatprep.subr.bf16.mxu0 %v4027_v23 }
 0x5f8   :  { %1632 = vmatpush1.bf16.msra.mxu1 %v4032_v24  ;;  %1673 = vmatpush1.bf16.msra.mxu0 %v4037_v25 }
 0x5f9   :  { %1735 = vmatprep.subr.bf16.mxu1 %v4415_v39  ;;  %1776 = vmatprep.subr.bf16.mxu0 %v4418_v42 }
 0x6ae   :  { %v1533_v14 = vpop.f32.mrb[48].mxu1  ;;  %v1574_v13 = vpop.f32.mrb[64].mxu0 }
 0x6af   :  { %v1581_v20 = vadd.f32 %v1533_v14, %v5129_v44  ;;  %v1583_v19 = vadd.f32 %v1574_v13, %v5130_v45  ;;  %v1535_v47 = vpop.f32.mrb[49].mxu1  ;;  %v1576_v22 = vpop.f32.mrb[65].mxu0  ;;  %v4551_v14 = vld [vmem:[#allocation6 + $0xe4] ss:$16 sps:$4 sm:$0xff]   ;;  %v4554_v13 = vld [vmem:[#allocation6 + $0xec] ss:$16 sps:$4 sm:$0xff]  }
 0x6b0   :  { %v1582_v21 = vadd.f32 %v1535_v47, %v5131_v49  ;;  %v1584_v23 = vadd.f32 %v1576_v22, %v5132_v54  ;;  %v1537_v55 = vpop.f32.mrb[50].mxu1  ;;  %v1578_v24 = vpop.f32.mrb[66].mxu0  ;;  %v4557_v44 = vld [vmem:[#allocation6 + $0xe0] ss:$16 sps:$4 sm:$0xff]   ;;  %v5134_v49 = vld [vmem:[#allocation18_spill] sm:$0xff] }
 0x6b1   :  { %v3153_v56 = vmul.f32 -1.442695, %v1581_v20  ;;  %v1538_v25 = vpop.f32.mrb[51].mxu1  ;;  %v1579_v57 = vpop.f32.mrb[67].mxu0  ;;  %v3155_v60 = vmul.f32 -1.442695, %v1583_v19 }
 0x6b2   :  { %v3154_v58 = vmul.f32 -1.442695, %v1582_v21  ;;  %v4560_v20 = vld [vmem:[#allocation6 + $0xe8] ss:$16 sps:$4 sm:$0xff]   ;;  %v5133_v47 = vld [vmem:[#allocation17_spill] sm:$0xff]  ;;  %v5135_v55 = vld [vmem:[#allocation19_spill] sm:$0xff] }
 0x6b3   :  { %3437 = vpow2.f32 %v3153_v56  ;;  %v5136_v56 = vld [vmem:[#allocation20_spill] sm:$0xff] }
 0x6b4   :  { %3439 = vpow2.f32 %v3154_v58 }
 0x6b5   :  { %3441 = vtanh.f32 %v1584_v23 }
 0x6b6   :  { %3443 = vpow2.f32 %v3155_v60 }
 0x6bd   :  { %v3438_v62 = vpop.eup %3437 }
 0x6be   :  { %v1594_v63 = vadd.f32 1.0, %v3438_v62  ;;  %v3440_v5 = vpop.eup %3439 }
 0x6bf   :  { %v1595_v6 = vadd.f32 1.0, %v3440_v5  ;;  %v3442_v7 = vpop.eup %3441 }
 0x6c0   :  { %3445 = vrcp.f32 %v1594_v63  ;;  %v3444_v8 = vpop.eup %3443 }
 0x6c1   :  { %3447 = vrcp.f32 %v1595_v6  ;;  %v1596_v46 = vadd.f32 1.0, %v3444_v8 }
 0x6c3   :  { %3449 = vrcp.f32 %v1596_v46 }
 0x6ca   :  { %v3446_v9 = vpop.eup %3445 }
 0x6cb   :  { %v1605_v11 = vmul.f32 %v3446_v9, %v3442_v7  ;;  %v3448_v41 = vpop.eup %3447 }
 0x6cc   :  { %v1604_v59 = vmul.f32 %v3448_v41, %v4426_v3  ;;  %v4536_v3 = vld [vmem:[#allocation6 + $0xa8] ss:$16 sps:$4 sm:$0xff]  }
 0x6cd   :  { %v3450_v61 = vpop.eup %3449 }
 0x6ce   :  { %v4510_v38 = vadd.f32 %v1605_v11, %v1604_v59 }
 0x6d0   :  { %3451 = vtanh.f32 %v4510_v38 }
 0x6da   :  { %v3452_v53 = vpop.eup %3451 }
 0x6db   :  { %v1608_v4 = vmul.f32 %v3452_v53, %v3450_v61 }
 0x6dd   :  { %v1616_v33 = vpack.c.bf16 %v1608_v4, %v1608_v4 }
 0x6df   :  { %1650 = vmatmul.mubr.bf16.vlgmr.msra.gmra.mrb[52].mxu1 %v1616_v33  ;;  %1691 = vmatmul.mubr.bf16.vlgmr.msra.gmra.mrb[68].mxu0 %v1616_v33 }
 0x6e0   :  { %1736 = vmatpush1.bf16.msra.mxu1 %v4429_v2  ;;  %1777 = vmatpush1.bf16.msra.mxu0 %v4432_v10 }
 0x6e1   :  { %1737 = vmatprep.subr.bf16.mxu1 %v4435_v31  ;;  %1778 = vmatprep.subr.bf16.mxu0 %v4438_v32 }
 0x6e2   :  { %1767 = vmatprep.mubr.bf16.mxu1 %v5127_v0  ;;  %1808 = vmatprep.mubr.bf16.mxu0 %v5127_v0 }
 0x6e4   :  { %1738 = vmatpush1.bf16.msra.mxu1 %v4443_v40  ;;  %1779 = vmatpush1.bf16.msra.mxu0 %v4446_v12 }
 0x6e5   :  { %1739 = vmatprep.subr.bf16.mxu1 %v4449_v17  ;;  %1780 = vmatprep.subr.bf16.mxu0 %v4452_v18 }
 0x6e8   :  { %1740 = vmatpush1.bf16.msra.mxu1 %v4455_v28  ;;  %1781 = vmatpush1.bf16.msra.mxu0 %v4458_v26 }
 0x6e9   :  { %1741 = vmatprep.subr.bf16.mxu1 %v4461_v29  ;;  %1782 = vmatprep.subr.bf16.mxu0 %v4464_v36 }
 0x6ec   :  { %1742 = vmatpush1.bf16.msra.mxu1 %v4467_v30  ;;  %1783 = vmatpush1.bf16.msra.mxu0 %v4470_v37 }
 0x6ed   :  { %1743 = vmatprep.subr.bf16.mxu1 %v4473_v50  ;;  %1784 = vmatprep.subr.bf16.mxu0 %v4476_v51 }
 0x6f0   :  { %1744 = vmatpush1.bf16.msra.mxu1 %v4479_v34  ;;  %1785 = vmatpush1.bf16.msra.mxu0 %v4482_v48 }
 0x6f1   :  { %1745 = vmatprep.subr.bf16.mxu1 %v4485_v35  ;;  %1786 = vmatprep.subr.bf16.mxu0 %v4488_v52 }
 0x6f4   :  { %1746 = vmatpush1.bf16.msra.mxu1 %v4491_v43  ;;  %1787 = vmatpush1.bf16.msra.mxu0 %v4536_v3 }
 0x6f5   :  { %1747 = vmatprep.subr.bf16.mxu1 %v4539_v15  ;;  %1788 = vmatprep.subr.bf16.mxu0 %v4542_v16 }
 0x6f8   :  { %1748 = vmatpush1.bf16.msra.mxu1 %v4545_v27  ;;  %1789 = vmatpush1.bf16.msra.mxu0 %v4548_v1 }
 0x6f9   :  { %1749 = vmatprep.subr.bf16.mxu1 %v4551_v14  ;;  %1790 = vmatprep.subr.bf16.mxu0 %v4554_v13 }
 0x6fc   :  { %1750 = vmatpush1.bf16.msra.mxu1 %v4557_v44  ;;  %1791 = vmatpush1.bf16.msra.mxu0 %v4560_v20 }
 0x6fd   :  { %1853 = vmatprep.subr.bf16.mxu1 %v4415_v39  ;;  %1894 = vmatprep.subr.bf16.mxu0 %v4418_v42 }
 0x7b2   :  { %v1651_v45 = vpop.f32.mrb[52].mxu1  ;;  %v1692_v19 = vpop.f32.mrb[68].mxu0 }
 0x7b3   :  { %v1699_v22 = vadd.f32 %v1651_v45, %v5133_v47  ;;  %v1701_v21 = vadd.f32 %v1692_v19, %v5134_v49  ;;  %v1653_v54 = vpop.f32.mrb[53].mxu1  ;;  %v1694_v23 = vpop.f32.mrb[69].mxu0 }
 0x7b4   :  { %v1700_v24 = vadd.f32 %v1653_v54, %v5135_v55  ;;  %v1702_v25 = vadd.f32 %v1694_v23, %v5136_v56  ;;  %v1655_v57 = vpop.f32.mrb[54].mxu1  ;;  %v1696_v58 = vpop.f32.mrb[70].mxu0  ;;  %v5137_v54 = vld [vmem:[#allocation21_spill] sm:$0xff]  ;;  %v5138_v55 = vld [vmem:[#allocation22_spill] sm:$0xff] }
 0x7b5   :  { %v3156_v60 = vmul.f32 -1.442695, %v1699_v22  ;;  %v1656_v62 = vpop.f32.mrb[55].mxu1  ;;  %v1697_v63 = vpop.f32.mrb[71].mxu0  ;;  %v3158_v6 = vmul.f32 -1.442695, %v1701_v21 }
 0x7b6   :  { %v3157_v5 = vmul.f32 -1.442695, %v1700_v24  ;;  %v5139_v57 = vld [vmem:[#allocation23_spill] sm:$0xff] }
 0x7b7   :  { %3453 = vpow2.f32 %v3156_v60  ;;  %v5140_v60 = vld [vmem:[#allocation24_spill] sm:$0xff] }
 0x7b8   :  { %3455 = vpow2.f32 %v3157_v5 }
 0x7b9   :  { %3457 = vtanh.f32 %v1702_v25 }
 0x7ba   :  { %3459 = vpow2.f32 %v3158_v6 }
 0x7c1   :  { %v3454_v7 = vpop.eup %3453 }
 0x7c2   :  { %v1712_v8 = vadd.f32 1.0, %v3454_v7  ;;  %v3456_v9 = vpop.eup %3455 }
 0x7c3   :  { %v1713_v11 = vadd.f32 1.0, %v3456_v9  ;;  %v3458_v41 = vpop.eup %3457 }
 0x7c4   :  { %3461 = vrcp.f32 %v1712_v8  ;;  %v3460_v46 = vpop.eup %3459 }
 0x7c5   :  { %3463 = vrcp.f32 %v1713_v11  ;;  %v1714_v4 = vadd.f32 1.0, %v3460_v46 }
 0x7c7   :  { %3465 = vrcp.f32 %v1714_v4 }
 0x7ce   :  { %v3462_v59 = vpop.eup %3461 }
 0x7cf   :  { %v1723_v61 = vmul.f32 %v3462_v59, %v3458_v41  ;;  %v3464_v53 = vpop.eup %3463 }
 0x7d0   :  { %v1722_v33 = vmul.f32 %v3464_v53, %v4510_v38 }
 0x7d1   :  { %v3466_v19 = vpop.eup %3465 }
 0x7d2   :  { %v4570_v45 = vadd.f32 %v1723_v61, %v1722_v33 }
 0x7d4   :  { %3467 = vtanh.f32 %v4570_v45 }
 0x7de   :  { %v3468_v47 = vpop.eup %3467 }
 0x7df   :  { %v1726_v22 = vmul.f32 %v3468_v47, %v3466_v19 }
 0x7e1   :  { %v1734_v49 = vpack.c.bf16 %v1726_v22, %v1726_v22 }
 0x7e3   :  { %1768 = vmatmul.mubr.bf16.vlgmr.msra.gmra.mrb[56].mxu1 %v1734_v49  ;;  %1809 = vmatmul.mubr.bf16.vlgmr.msra.gmra.mrb[72].mxu0 %v1734_v49 }
 0x7e4   :  { %1854 = vmatpush1.bf16.msra.mxu1 %v4429_v2  ;;  %1895 = vmatpush1.bf16.msra.mxu0 %v4432_v10 }
 0x7e5   :  { %1855 = vmatprep.subr.bf16.mxu1 %v4435_v31  ;;  %1896 = vmatprep.subr.bf16.mxu0 %v4438_v32 }
 0x7e6   :  { %1885 = vmatprep.mubr.bf16.mxu1 %v5127_v0  ;;  %1926 = vmatprep.mubr.bf16.mxu0 %v5127_v0 }
 0x7e8   :  { %1856 = vmatpush1.bf16.msra.mxu1 %v4443_v40  ;;  %1897 = vmatpush1.bf16.msra.mxu0 %v4446_v12 }
 0x7e9   :  { %1857 = vmatprep.subr.bf16.mxu1 %v4449_v17  ;;  %1898 = vmatprep.subr.bf16.mxu0 %v4452_v18 }
 0x7ec   :  { %1858 = vmatpush1.bf16.msra.mxu1 %v4455_v28  ;;  %1899 = vmatpush1.bf16.msra.mxu0 %v4458_v26 }
 0x7ed   :  { %1859 = vmatprep.subr.bf16.mxu1 %v4461_v29  ;;  %1900 = vmatprep.subr.bf16.mxu0 %v4464_v36 }
 0x7f0   :  { %1860 = vmatpush1.bf16.msra.mxu1 %v4467_v30  ;;  %1901 = vmatpush1.bf16.msra.mxu0 %v4470_v37 }
 0x7f1   :  { %1861 = vmatprep.subr.bf16.mxu1 %v4473_v50  ;;  %1902 = vmatprep.subr.bf16.mxu0 %v4476_v51 }
 0x7f4   :  { %1862 = vmatpush1.bf16.msra.mxu1 %v4479_v34  ;;  %1903 = vmatpush1.bf16.msra.mxu0 %v4482_v48 }
 0x7f5   :  { %1863 = vmatprep.subr.bf16.mxu1 %v4485_v35  ;;  %1904 = vmatprep.subr.bf16.mxu0 %v4488_v52 }
 0x7f8   :  { %1864 = vmatpush1.bf16.msra.mxu1 %v4491_v43  ;;  %1905 = vmatpush1.bf16.msra.mxu0 %v4536_v3 }
 0x7f9   :  { %1865 = vmatprep.subr.bf16.mxu1 %v4539_v15  ;;  %1906 = vmatprep.subr.bf16.mxu0 %v4542_v16 }
 0x7fc   :  { %1866 = vmatpush1.bf16.msra.mxu1 %v4545_v27  ;;  %1907 = vmatpush1.bf16.msra.mxu0 %v4548_v1 }
 0x7fd   :  { %1867 = vmatprep.subr.bf16.mxu1 %v4551_v14  ;;  %1908 = vmatprep.subr.bf16.mxu0 %v4554_v13 }
 0x800   :  { %1868 = vmatpush1.bf16.msra.mxu1 %v4557_v44  ;;  %1909 = vmatpush1.bf16.msra.mxu0 %v4560_v20 }
 0x801   :  { %1971 = vmatprep.subr.bf16.mxu1 %v4415_v39  ;;  %2012 = vmatprep.subr.bf16.mxu0 %v4418_v42 }
 0x8b6   :  { %v1769_v38 = vpop.f32.mrb[56].mxu1  ;;  %v1810_v21 = vpop.f32.mrb[72].mxu0 }
 0x8b7   :  { %v1817_v23 = vadd.f32 %v1769_v38, %v5137_v54  ;;  %v1819_v24 = vadd.f32 %v1810_v21, %v5138_v55  ;;  %v1771_v56 = vpop.f32.mrb[57].mxu1  ;;  %v1812_v25 = vpop.f32.mrb[73].mxu0 }
 0x8b8   :  { %v1818_v58 = vadd.f32 %v1771_v56, %v5139_v57  ;;  %v1820_v62 = vadd.f32 %v1812_v25, %v5140_v60  ;;  %v1773_v63 = vpop.f32.mrb[58].mxu1  ;;  %v1814_v5 = vpop.f32.mrb[74].mxu0  ;;  %v5141_v56 = vld [vmem:[#allocation25_spill] sm:$0xff]  ;;  %v5142_v57 = vld [vmem:[#allocation26_spill] sm:$0xff] }
 0x8b9   :  { %v3159_v6 = vmul.f32 -1.442695, %v1817_v23  ;;  %v1774_v7 = vpop.f32.mrb[59].mxu1  ;;  %v1815_v8 = vpop.f32.mrb[75].mxu0  ;;  %v3161_v11 = vmul.f32 -1.442695, %v1819_v24 }
 0x8ba   :  { %v3160_v9 = vmul.f32 -1.442695, %v1818_v58  ;;  %v5143_v63 = vld [vmem:[#allocation27_spill] sm:$0xff] }
 0x8bb   :  { %3469 = vpow2.f32 %v3159_v6  ;;  %v5144_v6 = vld [vmem:[#allocation28_spill] sm:$0xff] }
 0x8bc   :  { %3471 = vpow2.f32 %v3160_v9 }
 0x8bd   :  { %3473 = vtanh.f32 %v1820_v62 }
 0x8be   :  { %3475 = vpow2.f32 %v3161_v11 }
 0x8c5   :  { %v3470_v41 = vpop.eup %3469 }
 0x8c6   :  { %v1830_v46 = vadd.f32 1.0, %v3470_v41  ;;  %v3472_v59 = vpop.eup %3471 }
 0x8c7   :  { %v1831_v61 = vadd.f32 1.0, %v3472_v59  ;;  %v3474_v53 = vpop.eup %3473 }
 0x8c8   :  { %3477 = vrcp.f32 %v1830_v46  ;;  %v3476_v4 = vpop.eup %3475 }
 0x8c9   :  { %3479 = vrcp.f32 %v1831_v61  ;;  %v1832_v22 = vadd.f32 1.0, %v3476_v4 }
 0x8cb   :  { %3481 = vrcp.f32 %v1832_v22 }
 0x8d2   :  { %v3478_v33 = vpop.eup %3477 }
 0x8d3   :  { %v1841_v19 = vmul.f32 %v3478_v33, %v3474_v53  ;;  %v3480_v47 = vpop.eup %3479 }
 0x8d4   :  { %v1840_v49 = vmul.f32 %v3480_v47, %v4570_v45 }
 0x8d5   :  { %v3482_v21 = vpop.eup %3481 }
 0x8d6   :  { %v4612_v38 = vadd.f32 %v1841_v19, %v1840_v49 }
 0x8d8   :  { %3483 = vtanh.f32 %v4612_v38 }
 0x8e2   :  { %v3484_v54 = vpop.eup %3483 }
 0x8e3   :  { %v1844_v23 = vmul.f32 %v3484_v54, %v3482_v21 }
 0x8e5   :  { %v1852_v55 = vpack.c.bf16 %v1844_v23, %v1844_v23 }
 0x8e7   :  { %1886 = vmatmul.mubr.bf16.vlgmr.msra.gmra.mrb[60].mxu1 %v1852_v55  ;;  %1927 = vmatmul.mubr.bf16.vlgmr.msra.gmra.mrb[76].mxu0 %v1852_v55 }
 0x8e8   :  { %1972 = vmatpush1.bf16.msra.mxu1 %v4429_v2  ;;  %2013 = vmatpush1.bf16.msra.mxu0 %v4432_v10 }
 0x8e9   :  { %1973 = vmatprep.subr.bf16.mxu1 %v4435_v31  ;;  %2014 = vmatprep.subr.bf16.mxu0 %v4438_v32 }
 0x8ea   :  { %2003 = vmatprep.mubr.bf16.mxu1 %v5127_v0  ;;  %2044 = vmatprep.mubr.bf16.mxu0 %v5127_v0 }
 0x8ec   :  { %1974 = vmatpush1.bf16.msra.mxu1 %v4443_v40  ;;  %2015 = vmatpush1.bf16.msra.mxu0 %v4446_v12 }
 0x8ed   :  { %1975 = vmatprep.subr.bf16.mxu1 %v4449_v17  ;;  %2016 = vmatprep.subr.bf16.mxu0 %v4452_v18 }
 0x8f0   :  { %1976 = vmatpush1.bf16.msra.mxu1 %v4455_v28  ;;  %2017 = vmatpush1.bf16.msra.mxu0 %v4458_v26 }
 0x8f1   :  { %1977 = vmatprep.subr.bf16.mxu1 %v4461_v29  ;;  %2018 = vmatprep.subr.bf16.mxu0 %v4464_v36 }
 0x8f4   :  { %1978 = vmatpush1.bf16.msra.mxu1 %v4467_v30  ;;  %2019 = vmatpush1.bf16.msra.mxu0 %v4470_v37 }
 0x8f5   :  { %1979 = vmatprep.subr.bf16.mxu1 %v4473_v50  ;;  %2020 = vmatprep.subr.bf16.mxu0 %v4476_v51 }
 0x8f8   :  { %1980 = vmatpush1.bf16.msra.mxu1 %v4479_v34  ;;  %2021 = vmatpush1.bf16.msra.mxu0 %v4482_v48 }
 0x8f9   :  { %1981 = vmatprep.subr.bf16.mxu1 %v4485_v35  ;;  %2022 = vmatprep.subr.bf16.mxu0 %v4488_v52 }
 0x8fc   :  { %1982 = vmatpush1.bf16.msra.mxu1 %v4491_v43  ;;  %2023 = vmatpush1.bf16.msra.mxu0 %v4536_v3 }
 0x8fd   :  { %1983 = vmatprep.subr.bf16.mxu1 %v4539_v15  ;;  %2024 = vmatprep.subr.bf16.mxu0 %v4542_v16 }
 0x900   :  { %1984 = vmatpush1.bf16.msra.mxu1 %v4545_v27  ;;  %2025 = vmatpush1.bf16.msra.mxu0 %v4548_v1 }
 0x901   :  { %1985 = vmatprep.subr.bf16.mxu1 %v4551_v14  ;;  %2026 = vmatprep.subr.bf16.mxu0 %v4554_v13 }
 0x904   :  { %1986 = vmatpush1.bf16.msra.mxu1 %v4557_v44  ;;  %2027 = vmatpush1.bf16.msra.mxu0 %v4560_v20 }
 0x905   :  { %2089 = vmatprep.subr.bf16.mxu1 %v4415_v39  ;;  %2130 = vmatprep.subr.bf16.mxu0 %v4418_v42 }
 0x9ba   :  { %v1887_v45 = vpop.f32.mrb[60].mxu1  ;;  %v1928_v24 = vpop.f32.mrb[76].mxu0 }
 0x9bb   :  { %v1935_v25 = vadd.f32 %v1887_v45, %v5141_v56  ;;  %v1937_v58 = vadd.f32 %v1928_v24, %v5142_v57  ;;  %v1889_v60 = vpop.f32.mrb[61].mxu1  ;;  %v1930_v62 = vpop.f32.mrb[77].mxu0 }
 0x9bc   :  { %v1936_v5 = vadd.f32 %v1889_v60, %v5143_v63  ;;  %v1938_v7 = vadd.f32 %v1930_v62, %v5144_v6  ;;  %v1891_v8 = vpop.f32.mrb[62].mxu1  ;;  %v1932_v9 = vpop.f32.mrb[78].mxu0  ;;  %v5145_v60 = vld [vmem:[#allocation29_spill] sm:$0xff]  ;;  %v5146_v63 = vld [vmem:[#allocation30_spill] sm:$0xff] }
 0x9bd   :  { %v3162_v11 = vmul.f32 -1.442695, %v1935_v25  ;;  %v1892_v41 = vpop.f32.mrb[63].mxu1  ;;  %v1933_v46 = vpop.f32.mrb[79].mxu0  ;;  %v3164_v61 = vmul.f32 -1.442695, %v1937_v58 }
 0x9be   :  { %v3163_v59 = vmul.f32 -1.442695, %v1936_v5  ;;  %v5147_v8 = vld [vmem:[#allocation31_spill] sm:$0xff] }
 0x9bf   :  { %3485 = vpow2.f32 %v3162_v11  ;;  %v5148_v11 = vld [vmem:[#allocation32_spill] sm:$0xff] }
 0x9c0   :  { %3487 = vpow2.f32 %v3163_v59 }
 0x9c1   :  { %3489 = vtanh.f32 %v1938_v7 }
 0x9c2   :  { %3491 = vpow2.f32 %v3164_v61 }
 0x9c9   :  { %v3486_v53 = vpop.eup %3485 }
 0x9ca   :  { %v1948_v4 = vadd.f32 1.0, %v3486_v53  ;;  %v3488_v33 = vpop.eup %3487 }
 0x9cb   :  { %v1949_v19 = vadd.f32 1.0, %v3488_v33  ;;  %v3490_v47 = vpop.eup %3489 }
 0x9cc   :  { %3493 = vrcp.f32 %v1948_v4  ;;  %v3492_v22 = vpop.eup %3491 }
 0x9cd   :  { %3495 = vrcp.f32 %v1949_v19  ;;  %v1950_v23 = vadd.f32 1.0, %v3492_v22 }
 0x9cf   :  { %3497 = vrcp.f32 %v1950_v23 }
 0x9d6   :  { %v3494_v49 = vpop.eup %3493 }
 0x9d7   :  { %v1959_v21 = vmul.f32 %v3494_v49, %v3490_v47  ;;  %v3496_v54 = vpop.eup %3495 }
 0x9d8   :  { %v1958_v55 = vmul.f32 %v3496_v54, %v4612_v38 }
 0x9d9   :  { %v3498_v24 = vpop.eup %3497 }
 0x9da   :  { %v4654_v45 = vadd.f32 %v1959_v21, %v1958_v55 }
 0x9dc   :  { %3499 = vtanh.f32 %v4654_v45 }
 0x9e6   :  { %v3500_v56 = vpop.eup %3499 }
 0x9e7   :  { %v1962_v25 = vmul.f32 %v3500_v56, %v3498_v24 }
 0x9e9   :  { %v1970_v57 = vpack.c.bf16 %v1962_v25, %v1962_v25 }
 0x9eb   :  { %2004 = vmatmul.mubr.bf16.vlgmr.msra.gmra.mrb[64].mxu1 %v1970_v57  ;;  %2045 = vmatmul.mubr.bf16.vlgmr.msra.gmra.mrb[80].mxu0 %v1970_v57 }
 0x9ec   :  { %2090 = vmatpush1.bf16.msra.mxu1 %v4429_v2  ;;  %2131 = vmatpush1.bf16.msra.mxu0 %v4432_v10 }
 0x9ed   :  { %2091 = vmatprep.subr.bf16.mxu1 %v4435_v31  ;;  %2132 = vmatprep.subr.bf16.mxu0 %v4438_v32 }
 0x9ee   :  { %2121 = vmatprep.mubr.bf16.mxu1 %v5127_v0  ;;  %2162 = vmatprep.mubr.bf16.mxu0 %v5127_v0 }
 0x9f0   :  { %2092 = vmatpush1.bf16.msra.mxu1 %v4443_v40  ;;  %2133 = vmatpush1.bf16.msra.mxu0 %v4446_v12 }
 0x9f1   :  { %2093 = vmatprep.subr.bf16.mxu1 %v4449_v17  ;;  %2134 = vmatprep.subr.bf16.mxu0 %v4452_v18 }
 0x9f4   :  { %2094 = vmatpush1.bf16.msra.mxu1 %v4455_v28  ;;  %2135 = vmatpush1.bf16.msra.mxu0 %v4458_v26 }
 0x9f5   :  { %2095 = vmatprep.subr.bf16.mxu1 %v4461_v29  ;;  %2136 = vmatprep.subr.bf16.mxu0 %v4464_v36 }
 0x9f8   :  { %2096 = vmatpush1.bf16.msra.mxu1 %v4467_v30  ;;  %2137 = vmatpush1.bf16.msra.mxu0 %v4470_v37 }
 0x9f9   :  { %2097 = vmatprep.subr.bf16.mxu1 %v4473_v50  ;;  %2138 = vmatprep.subr.bf16.mxu0 %v4476_v51 }
 0x9fc   :  { %2098 = vmatpush1.bf16.msra.mxu1 %v4479_v34  ;;  %2139 = vmatpush1.bf16.msra.mxu0 %v4482_v48 }
 0x9fd   :  { %2099 = vmatprep.subr.bf16.mxu1 %v4485_v35  ;;  %2140 = vmatprep.subr.bf16.mxu0 %v4488_v52 }
 0xa00   :  { %2100 = vmatpush1.bf16.msra.mxu1 %v4491_v43  ;;  %2141 = vmatpush1.bf16.msra.mxu0 %v4536_v3 }
 0xa01   :  { %2101 = vmatprep.subr.bf16.mxu1 %v4539_v15  ;;  %2142 = vmatprep.subr.bf16.mxu0 %v4542_v16 }
 0xa04   :  { %2102 = vmatpush1.bf16.msra.mxu1 %v4545_v27  ;;  %2143 = vmatpush1.bf16.msra.mxu0 %v4548_v1 }
 0xa05   :  { %2103 = vmatprep.subr.bf16.mxu1 %v4551_v14  ;;  %2144 = vmatprep.subr.bf16.mxu0 %v4554_v13 }
 0xa08   :  { %2104 = vmatpush1.bf16.msra.mxu1 %v4557_v44  ;;  %2145 = vmatpush1.bf16.msra.mxu0 %v4560_v20 }
 0xa09   :  { %2207 = vmatprep.subr.bf16.mxu1 %v4415_v39  ;;  %2248 = vmatprep.subr.bf16.mxu0 %v4418_v42 }
 0xabe   :  { %v2005_v38 = vpop.f32.mrb[64].mxu1  ;;  %v2046_v58 = vpop.f32.mrb[80].mxu0 }
 0xabf   :  { %v2053_v62 = vadd.f32 %v2005_v38, %v5145_v60  ;;  %v2055_v5 = vadd.f32 %v2046_v58, %v5146_v63  ;;  %v2007_v6 = vpop.f32.mrb[65].mxu1  ;;  %v2048_v7 = vpop.f32.mrb[81].mxu0 }
 0xac0   :  { %v2054_v9 = vadd.f32 %v2007_v6, %v5147_v8  ;;  %v2056_v41 = vadd.f32 %v2048_v7, %v5148_v11  ;;  %v2009_v46 = vpop.f32.mrb[66].mxu1  ;;  %v2050_v59 = vpop.f32.mrb[82].mxu0  ;;  %v5149_v6 = vld [vmem:[#allocation33_spill] sm:$0xff]  ;;  %v5150_v8 = vld [vmem:[#allocation34_spill] sm:$0xff] }
 0xac1   :  { %v3165_v61 = vmul.f32 -1.442695, %v2053_v62  ;;  %v2010_v53 = vpop.f32.mrb[67].mxu1  ;;  %v2051_v4 = vpop.f32.mrb[83].mxu0  ;;  %v3167_v19 = vmul.f32 -1.442695, %v2055_v5 }
 0xac2   :  { %v3166_v33 = vmul.f32 -1.442695, %v2054_v9  ;;  %v5151_v46 = vld [vmem:[#allocation35_spill] sm:$0xff] }
 0xac3   :  { %3501 = vpow2.f32 %v3165_v61  ;;  %v5152_v61 = vld [vmem:[#allocation36_spill] sm:$0xff] }
 0xac4   :  { %3503 = vpow2.f32 %v3166_v33 }
 0xac5   :  { %3505 = vtanh.f32 %v2056_v41 }
 0xac6   :  { %3507 = vpow2.f32 %v3167_v19 }
 0xacd   :  { %v3502_v47 = vpop.eup %3501 }
 0xace   :  { %v2066_v22 = vadd.f32 1.0, %v3502_v47  ;;  %v3504_v49 = vpop.eup %3503 }
 0xacf   :  { %v2067_v21 = vadd.f32 1.0, %v3504_v49  ;;  %v3506_v54 = vpop.eup %3505 }
 0xad0   :  { %3509 = vrcp.f32 %v2066_v22  ;;  %v3508_v23 = vpop.eup %3507 }
 0xad1   :  { %3511 = vrcp.f32 %v2067_v21  ;;  %v2068_v25 = vadd.f32 1.0, %v3508_v23 }
 0xad3   :  { %3513 = vrcp.f32 %v2068_v25 }
 0xada   :  { %v3510_v55 = vpop.eup %3509 }
 0xadb   :  { %v2077_v24 = vmul.f32 %v3510_v55, %v3506_v54  ;;  %v3512_v56 = vpop.eup %3511 }
 0xadc   :  { %v2076_v57 = vmul.f32 %v3512_v56, %v4654_v45 }
 0xadd   :  { %v3514_v58 = vpop.eup %3513 }
 0xade   :  { %v4696_v38 = vadd.f32 %v2077_v24, %v2076_v57 }
 0xae0   :  { %3515 = vtanh.f32 %v4696_v38 }
 0xaea   :  { %v3516_v60 = vpop.eup %3515 }
 0xaeb   :  { %v2080_v62 = vmul.f32 %v3516_v60, %v3514_v58 }
 0xaed   :  { %v2088_v63 = vpack.c.bf16 %v2080_v62, %v2080_v62 }
 0xaef   :  { %2122 = vmatmul.mubr.bf16.vlgmr.msra.gmra.mrb[68].mxu1 %v2088_v63  ;;  %2163 = vmatmul.mubr.bf16.vlgmr.msra.gmra.mrb[84].mxu0 %v2088_v63 }
 0xaf0   :  { %2208 = vmatpush1.bf16.msra.mxu1 %v4429_v2  ;;  %2249 = vmatpush1.bf16.msra.mxu0 %v4432_v10 }
 0xaf1   :  { %2209 = vmatprep.subr.bf16.mxu1 %v4435_v31  ;;  %2250 = vmatprep.subr.bf16.mxu0 %v4438_v32 }
 0xaf2   :  { %2239 = vmatprep.mubr.bf16.mxu1 %v5127_v0  ;;  %2280 = vmatprep.mubr.bf16.mxu0 %v5127_v0 }
 0xaf4   :  { %2210 = vmatpush1.bf16.msra.mxu1 %v4443_v40  ;;  %2251 = vmatpush1.bf16.msra.mxu0 %v4446_v12 }
 0xaf5   :  { %2211 = vmatprep.subr.bf16.mxu1 %v4449_v17  ;;  %2252 = vmatprep.subr.bf16.mxu0 %v4452_v18 }
 0xaf8   :  { %2212 = vmatpush1.bf16.msra.mxu1 %v4455_v28  ;;  %2253 = vmatpush1.bf16.msra.mxu0 %v4458_v26 }
 0xaf9   :  { %2213 = vmatprep.subr.bf16.mxu1 %v4461_v29  ;;  %2254 = vmatprep.subr.bf16.mxu0 %v4464_v36 }
 0xafc   :  { %2214 = vmatpush1.bf16.msra.mxu1 %v4467_v30  ;;  %2255 = vmatpush1.bf16.msra.mxu0 %v4470_v37 }
 0xafd   :  { %2215 = vmatprep.subr.bf16.mxu1 %v4473_v50  ;;  %2256 = vmatprep.subr.bf16.mxu0 %v4476_v51 }
 0xb00   :  { %2216 = vmatpush1.bf16.msra.mxu1 %v4479_v34  ;;  %2257 = vmatpush1.bf16.msra.mxu0 %v4482_v48 }
 0xb01   :  { %2217 = vmatprep.subr.bf16.mxu1 %v4485_v35  ;;  %2258 = vmatprep.subr.bf16.mxu0 %v4488_v52 }
 0xb04   :  { %2218 = vmatpush1.bf16.msra.mxu1 %v4491_v43  ;;  %2259 = vmatpush1.bf16.msra.mxu0 %v4536_v3 }
 0xb05   :  { %2219 = vmatprep.subr.bf16.mxu1 %v4539_v15  ;;  %2260 = vmatprep.subr.bf16.mxu0 %v4542_v16 }
 0xb08   :  { %2220 = vmatpush1.bf16.msra.mxu1 %v4545_v27  ;;  %2261 = vmatpush1.bf16.msra.mxu0 %v4548_v1 }
 0xb09   :  { %2221 = vmatprep.subr.bf16.mxu1 %v4551_v14  ;;  %2262 = vmatprep.subr.bf16.mxu0 %v4554_v13 }
 0xb0c   :  { %2222 = vmatpush1.bf16.msra.mxu1 %v4557_v44  ;;  %2263 = vmatpush1.bf16.msra.mxu0 %v4560_v20 }
 0xb0d   :  { %2325 = vmatprep.subr.bf16.mxu1 %v4415_v39  ;;  %2366 = vmatprep.subr.bf16.mxu0 %v4418_v42 }
 0xbc2   :  { %v2123_v45 = vpop.f32.mrb[68].mxu1  ;;  %v2164_v5 = vpop.f32.mrb[84].mxu0 }
 0xbc3   :  { %v2171_v7 = vadd.f32 %v2123_v45, %v5149_v6  ;;  %v2173_v9 = vadd.f32 %v2164_v5, %v5150_v8  ;;  %v2125_v11 = vpop.f32.mrb[69].mxu1  ;;  %v2166_v41 = vpop.f32.mrb[85].mxu0 }
 0xbc4   :  { %v2172_v59 = vadd.f32 %v2125_v11, %v5151_v46  ;;  %v2174_v53 = vadd.f32 %v2166_v41, %v5152_v61  ;;  %v2127_v4 = vpop.f32.mrb[70].mxu1  ;;  %v2168_v33 = vpop.f32.mrb[86].mxu0 }
 0xbc5   :  { %v3168_v19 = vmul.f32 -1.442695, %v2171_v7  ;;  %v2128_v47 = vpop.f32.mrb[71].mxu1  ;;  %v2169_v22 = vpop.f32.mrb[87].mxu0  ;;  %v3170_v42 = vmul.f32 -1.442695, %v2173_v9 }
 0xbc6   :  { %v3169_v39 = vmul.f32 -1.442695, %v2172_v59 }
 0xbc7   :  { %3517 = vpow2.f32 %v3168_v19 }
 0xbc8   :  { %3519 = vpow2.f32 %v3169_v39 }
 0xbc9   :  { %3521 = vtanh.f32 %v2174_v53 }
 0xbca   :  { %3523 = vpow2.f32 %v3170_v42  ;;  %v4787_v42 = vld [vmem:[#allocation6] ss:$16 sps:$4 sm:$0xff]  }
 0xbd1   :  { %v3518_v49 = vpop.eup %3517 }
 0xbd2   :  { %v2184_v21 = vadd.f32 1.0, %v3518_v49  ;;  %v3520_v54 = vpop.eup %3519  ;;  %v4790_v49 = vld [vmem:[#allocation6 + $0x8] ss:$16 sps:$4 sm:$0xff]  }
 0xbd3   :  { %v2185_v23 = vadd.f32 1.0, %v3520_v54  ;;  %v3522_v55 = vpop.eup %3521  ;;  %v4796_v54 = vld [vmem:[#allocation6 + $0x2c] ss:$16 sps:$4 sm:$0xff]  }
 0xbd4   :  { %3525 = vrcp.f32 %v2184_v21  ;;  %v3524_v24 = vpop.eup %3523  ;;  %v4793_v21 = vld [vmem:[#allocation6 + $0x24] ss:$16 sps:$4 sm:$0xff]  }
 0xbd5   :  { %3527 = vrcp.f32 %v2185_v23  ;;  %v2186_v58 = vadd.f32 1.0, %v3524_v24  ;;  %v4801_v23 = vld [vmem:[#allocation6 + $0x20] ss:$16 sps:$4 sm:$0xff]   ;;  %v4807_v24 = vld [vmem:[#allocation6 + $0x44] ss:$16 sps:$4 sm:$0xff]  }
 0xbd7   :  { %3529 = vrcp.f32 %v2186_v58  ;;  %v4819_v58 = vld [vmem:[#allocation6 + $0x64] ss:$16 sps:$4 sm:$0xff]  }
 0xbde   :  { %v3526_v56 = vpop.eup %3525 }
 0xbdf   :  { %v2195_v25 = vmul.f32 %v3526_v56, %v3522_v55  ;;  %v3528_v57 = vpop.eup %3527  ;;  %v4804_v55 = vld [vmem:[#allocation6 + $0x28] ss:$16 sps:$4 sm:$0xff]   ;;  %v4810_v56 = vld [vmem:[#allocation6 + $0x4c] ss:$16 sps:$4 sm:$0xff]  }
 0xbe0   :  { %v2194_v60 = vmul.f32 %v3528_v57, %v4696_v38  ;;  %v4816_v57 = vld [vmem:[#allocation6 + $0x48] ss:$16 sps:$4 sm:$0xff]  }
 0xbe1   :  { %v3530_v63 = vpop.eup %3529 }
 0xbe2   :  { %v4738_v62 = vadd.f32 %v2195_v25, %v2194_v60  ;;  %v4813_v25 = vld [vmem:[#allocation6 + $0x40] ss:$16 sps:$4 sm:$0xff]   ;;  %v4822_v60 = vld [vmem:[#allocation6 + $0x6c] ss:$16 sps:$4 sm:$0xff]  }
 0xbe4   :  { %3531 = vtanh.f32 %v4738_v62 }
 0xbee   :  { %v3532_v45 = vpop.eup %3531 }
 0xbef   :  { %v2198_v5 = vmul.f32 %v3532_v45, %v3530_v63  ;;  %v4828_v63 = vld [vmem:[#allocation6 + $0x68] ss:$16 sps:$4 sm:$0xff]   ;;  %v4831_v45 = vld [vmem:[#allocation6 + $0x84] ss:$16 sps:$4 sm:$0xff]  }
 0xbf1   :  { %v2206_v6 = vpack.c.bf16 %v2198_v5, %v2198_v5  ;;  %v4834_v5 = vld [vmem:[#allocation6 + $0x8c] ss:$16 sps:$4 sm:$0xff]  }
 0xbf3   :  { %2240 = vmatmul.mubr.bf16.vlgmr.msra.gmra.mrb[72].mxu1 %v2206_v6  ;;  %2281 = vmatmul.mubr.bf16.vlgmr.msra.gmra.mrb[88].mxu0 %v2206_v6  ;;  %v4837_v6 = vld [vmem:[#allocation6 + $0x80] ss:$16 sps:$4 sm:$0xff]  }
 0xbf4   :  { %2326 = vmatpush1.bf16.msra.mxu1 %v4429_v2  ;;  %2367 = vmatpush1.bf16.msra.mxu0 %v4432_v10  ;;  %v4773_v2 = vld [vmem:[#allocation6 + $0x4] ss:$16 sps:$4 sm:$0xff]   ;;  %v4776_v10 = vld [vmem:[#allocation6 + $0xc] ss:$16 sps:$4 sm:$0xff]  }
 0xbf5   :  { %2327 = vmatprep.subr.bf16.mxu1 %v4435_v31  ;;  %2368 = vmatprep.subr.bf16.mxu0 %v4438_v32 }
 0xbf6   :  { %2357 = vmatprep.mubr.bf16.mxu1 %v5127_v0  ;;  %2398 = vmatprep.mubr.bf16.mxu0 %v5127_v0 }
 0xbf8   :  { %2328 = vmatpush1.bf16.msra.mxu1 %v4443_v40  ;;  %2369 = vmatpush1.bf16.msra.mxu0 %v4446_v12  ;;  %v5153_v40 = vld [vmem:[#allocation37_spill] sm:$0xff] }
 0xbf9   :  { %2329 = vmatprep.subr.bf16.mxu1 %v4449_v17  ;;  %2370 = vmatprep.subr.bf16.mxu0 %v4452_v18  ;;  %v5154_v17 = vld [vmem:[#allocation38_spill] sm:$0xff] }
 0xbfc   :  { %2330 = vmatpush1.bf16.msra.mxu1 %v4455_v28  ;;  %2371 = vmatpush1.bf16.msra.mxu0 %v4458_v26 }
 0xbfd   :  { %2331 = vmatprep.subr.bf16.mxu1 %v4461_v29  ;;  %2372 = vmatprep.subr.bf16.mxu0 %v4464_v36  ;;  %v5155_v29 = vld [vmem:[#allocation39_spill] sm:$0xff] }
 0xc00   :  { %2332 = vmatpush1.bf16.msra.mxu1 %v4467_v30  ;;  %2373 = vmatpush1.bf16.msra.mxu0 %v4470_v37  ;;  %v5156_v30 = vld [vmem:[#allocation40_spill] sm:$0xff] }
 0xc01   :  { %2333 = vmatprep.subr.bf16.mxu1 %v4473_v50  ;;  %2374 = vmatprep.subr.bf16.mxu0 %v4476_v51 }
 0xc04   :  { %2334 = vmatpush1.bf16.msra.mxu1 %v4479_v34  ;;  %2375 = vmatpush1.bf16.msra.mxu0 %v4482_v48 }
 0xc05   :  { %2335 = vmatprep.subr.bf16.mxu1 %v4485_v35  ;;  %2376 = vmatprep.subr.bf16.mxu0 %v4488_v52 }
 0xc08   :  { %2336 = vmatpush1.bf16.msra.mxu1 %v4491_v43  ;;  %2377 = vmatpush1.bf16.msra.mxu0 %v4536_v3 }
 0xc09   :  { %2337 = vmatprep.subr.bf16.mxu1 %v4539_v15  ;;  %2378 = vmatprep.subr.bf16.mxu0 %v4542_v16 }
 0xc0c   :  { %2338 = vmatpush1.bf16.msra.mxu1 %v4545_v27  ;;  %2379 = vmatpush1.bf16.msra.mxu0 %v4548_v1 }
 0xc0d   :  { %2339 = vmatprep.subr.bf16.mxu1 %v4551_v14  ;;  %2380 = vmatprep.subr.bf16.mxu0 %v4554_v13 }
 0xc10   :  { %2340 = vmatpush1.bf16.msra.mxu1 %v4557_v44  ;;  %2381 = vmatpush1.bf16.msra.mxu0 %v4560_v20 }
 0xc11   :  { %2443 = vmatprep.subr.bf16.mxu1 %v4773_v2  ;;  %2484 = vmatprep.subr.bf16.mxu0 %v4776_v10 }
 0xcc6   :  { %v2241_v31 = vpop.f32.mrb[72].mxu1  ;;  %v2282_v32 = vpop.f32.mrb[88].mxu0 }
 0xcc7   :  { %v2289_v12 = vadd.f32 %v2241_v31, %v5153_v40  ;;  %v2291_v18 = vadd.f32 %v2282_v32, %v5154_v17  ;;  %v2243_v28 = vpop.f32.mrb[73].mxu1  ;;  %v2284_v26 = vpop.f32.mrb[89].mxu0  ;;  %v4840_v31 = vld [vmem:[#allocation6 + $0x88] ss:$16 sps:$4 sm:$0xff]   ;;  %v4843_v32 = vld [vmem:[#allocation6 + $0xa4] ss:$16 sps:$4 sm:$0xff]  }
 0xcc8   :  { %v2290_v36 = vadd.f32 %v2243_v28, %v5155_v29  ;;  %v2292_v37 = vadd.f32 %v2284_v26, %v5156_v30  ;;  %v2245_v50 = vpop.f32.mrb[74].mxu1  ;;  %v2286_v51 = vpop.f32.mrb[90].mxu0  ;;  %v4846_v40 = vld [vmem:[#allocation6 + $0xac] ss:$16 sps:$4 sm:$0xff]   ;;  %v5157_v17 = vld [vmem:[#allocation41_spill] sm:$0xff]  ;;  %v5159_v26 = vld [vmem:[#allocation43_spill] sm:$0xff] }
 0xcc9   :  { %v3171_v34 = vmul.f32 -1.442695, %v2289_v12  ;;  %v2246_v48 = vpop.f32.mrb[75].mxu1  ;;  %v2287_v35 = vpop.f32.mrb[91].mxu0  ;;  %v3173_v43 = vmul.f32 -1.442695, %v2291_v18 }
 0xcca   :  { %v3172_v52 = vmul.f32 -1.442695, %v2290_v36  ;;  %v4849_v12 = vld [vmem:[#allocation6 + $0xa0] ss:$16 sps:$4 sm:$0xff]   ;;  %v5158_v18 = vld [vmem:[#allocation42_spill] sm:$0xff]  ;;  %v5160_v29 = vld [vmem:[#allocation44_spill] sm:$0xff] }
 0xccb   :  { %3533 = vpow2.f32 %v3171_v34 }
 0xccc   :  { %3535 = vpow2.f32 %v3172_v52 }
 0xccd   :  { %3537 = vtanh.f32 %v2292_v37 }
 0xcce   :  { %3539 = vpow2.f32 %v3173_v43 }
 0xcd5   :  { %v3534_v38 = vpop.eup %3533 }
 0xcd6   :  { %v2302_v7 = vadd.f32 1.0, %v3534_v38  ;;  %v3536_v8 = vpop.eup %3535 }
 0xcd7   :  { %v2303_v9 = vadd.f32 1.0, %v3536_v8  ;;  %v3538_v11 = vpop.eup %3537 }
 0xcd8   :  { %3541 = vrcp.f32 %v2302_v7  ;;  %v3540_v41 = vpop.eup %3539 }
 0xcd9   :  { %3543 = vrcp.f32 %v2303_v9  ;;  %v2304_v53 = vadd.f32 1.0, %v3540_v41 }
 0xcdb   :  { %3545 = vrcp.f32 %v2304_v53 }
 0xce2   :  { %v3542_v46 = vpop.eup %3541 }
 0xce3   :  { %v2313_v59 = vmul.f32 %v3542_v46, %v3538_v11  ;;  %v3544_v61 = vpop.eup %3543 }
 0xce4   :  { %v2312_v4 = vmul.f32 %v3544_v61, %v4738_v62  ;;  %v4825_v62 = vld [vmem:[#allocation6 + $0x60] ss:$16 sps:$4 sm:$0xff]  }
 0xce5   :  { %v3546_v19 = vpop.eup %3545 }
 0xce6   :  { %v4784_v33 = vadd.f32 %v2313_v59, %v2312_v4 }
 0xce8   :  { %3547 = vtanh.f32 %v4784_v33 }
 0xcf2   :  { %v3548_v47 = vpop.eup %3547 }
 0xcf3   :  { %v2316_v22 = vmul.f32 %v3548_v47, %v3546_v19  ;;  %v4897_v19 = vld [vmem:[#allocation6 + $0xc4] ss:$16 sps:$4 sm:$0xff]   ;;  %v4900_v47 = vld [vmem:[#allocation6 + $0xcc] ss:$16 sps:$4 sm:$0xff]  }
 0xcf5   :  { %v2324_v39 = vpack.c.bf16 %v2316_v22, %v2316_v22  ;;  %v4903_v22 = vld [vmem:[#allocation6 + $0xc0] ss:$16 sps:$4 sm:$0xff]  }
 0xcf7   :  { %2358 = vmatmul.mubr.bf16.vlgmr.msra.gmra.mrb[76].mxu1 %v2324_v39  ;;  %2399 = vmatmul.mubr.bf16.vlgmr.msra.gmra.mrb[92].mxu0 %v2324_v39  ;;  %v4906_v39 = vld [vmem:[#allocation6 + $0xc8] ss:$16 sps:$4 sm:$0xff]  }
 0xcf8   :  { %2444 = vmatpush1.bf16.msra.mxu1 %v4787_v42  ;;  %2485 = vmatpush1.bf16.msra.mxu0 %v4790_v49 }
 0xcf9   :  { %2445 = vmatprep.subr.bf16.mxu1 %v4793_v21  ;;  %2486 = vmatprep.subr.bf16.mxu0 %v4796_v54 }
 0xcfa   :  { %2475 = vmatprep.mubr.bf16.mxu1 %v5127_v0  ;;  %2516 = vmatprep.mubr.bf16.mxu0 %v5127_v0 }
 0xcfc   :  { %2446 = vmatpush1.bf16.msra.mxu1 %v4801_v23  ;;  %2487 = vmatpush1.bf16.msra.mxu0 %v4804_v55 }
 0xcfd   :  { %2447 = vmatprep.subr.bf16.mxu1 %v4807_v24  ;;  %2488 = vmatprep.subr.bf16.mxu0 %v4810_v56 }
 0xd00   :  { %2448 = vmatpush1.bf16.msra.mxu1 %v4813_v25  ;;  %2489 = vmatpush1.bf16.msra.mxu0 %v4816_v57 }
 0xd01   :  { %2449 = vmatprep.subr.bf16.mxu1 %v4819_v58  ;;  %2490 = vmatprep.subr.bf16.mxu0 %v4822_v60 }
 0xd04   :  { %2450 = vmatpush1.bf16.msra.mxu1 %v4825_v62  ;;  %2491 = vmatpush1.bf16.msra.mxu0 %v4828_v63 }
 0xd05   :  { %2451 = vmatprep.subr.bf16.mxu1 %v4831_v45  ;;  %2492 = vmatprep.subr.bf16.mxu0 %v4834_v5 }
 0xd08   :  { %2452 = vmatpush1.bf16.msra.mxu1 %v4837_v6  ;;  %2493 = vmatpush1.bf16.msra.mxu0 %v4840_v31 }
 0xd09   :  { %2453 = vmatprep.subr.bf16.mxu1 %v4843_v32  ;;  %2494 = vmatprep.subr.bf16.mxu0 %v4846_v40 }
 0xd0c   :  { %2454 = vmatpush1.bf16.msra.mxu1 %v4849_v12  ;;  %2495 = vmatpush1.bf16.msra.mxu0 %v4536_v3 }
 0xd0d   :  { %2455 = vmatprep.subr.bf16.mxu1 %v4539_v15  ;;  %2496 = vmatprep.subr.bf16.mxu0 %v4542_v16 }
 0xd10   :  { %2456 = vmatpush1.bf16.msra.mxu1 %v4545_v27  ;;  %2497 = vmatpush1.bf16.msra.mxu0 %v4548_v1 }
 0xd11   :  { %2457 = vmatprep.subr.bf16.mxu1 %v4551_v14  ;;  %2498 = vmatprep.subr.bf16.mxu0 %v4554_v13 }
 0xd14   :  { %2458 = vmatpush1.bf16.msra.mxu1 %v4557_v44  ;;  %2499 = vmatpush1.bf16.msra.mxu0 %v4560_v20 }
 0xd15   :  { %2561 = vmatprep.subr.bf16.mxu1 %v4773_v2  ;;  %2602 = vmatprep.subr.bf16.mxu0 %v4776_v10 }
 0xdca   :  { %v2359_v3 = vpop.f32.mrb[76].mxu1  ;;  %v2400_v15 = vpop.f32.mrb[92].mxu0 }
 0xdcb   :  { %v2407_v16 = vadd.f32 %v2359_v3, %v5157_v17  ;;  %v2409_v27 = vadd.f32 %v2400_v15, %v5158_v18  ;;  %v2361_v28 = vpop.f32.mrb[77].mxu1  ;;  %v2402_v1 = vpop.f32.mrb[93].mxu0  ;;  %v4909_v3 = vld [vmem:[#allocation6 + $0xe4] ss:$16 sps:$4 sm:$0xff]   ;;  %v4912_v15 = vld [vmem:[#allocation6 + $0xec] ss:$16 sps:$4 sm:$0xff]  }
 0xdcc   :  { %v2408_v14 = vadd.f32 %v2361_v28, %v5159_v26  ;;  %v2410_v13 = vadd.f32 %v2402_v1, %v5160_v29  ;;  %v2363_v36 = vpop.f32.mrb[78].mxu1  ;;  %v2404_v44 = vpop.f32.mrb[94].mxu0  ;;  %v4915_v17 = vld [vmem:[#allocation6 + $0xe0] ss:$16 sps:$4 sm:$0xff]   ;;  %v5162_v26 = vld [vmem:[#allocation46_spill] sm:$0xff] }
 0xdcd   :  { %v3174_v30 = vmul.f32 -1.442695, %v2407_v16  ;;  %v2364_v20 = vpop.f32.mrb[79].mxu1  ;;  %v2405_v37 = vpop.f32.mrb[95].mxu0  ;;  %v3176_v51 = vmul.f32 -1.442695, %v2409_v27 }
 0xdce   :  { %v3175_v50 = vmul.f32 -1.442695, %v2408_v14  ;;  %v4918_v16 = vld [vmem:[#allocation6 + $0xe8] ss:$16 sps:$4 sm:$0xff]   ;;  %v5161_v28 = vld [vmem:[#allocation45_spill] sm:$0xff]  ;;  %v5163_v36 = vld [vmem:[#allocation47_spill] sm:$0xff] }
 0xdcf   :  { %3549 = vpow2.f32 %v3174_v30  ;;  %v5164_v30 = vld [vmem:[#allocation48_spill] sm:$0xff] }
 0xdd0   :  { %3551 = vpow2.f32 %v3175_v50 }
 0xdd1   :  { %3553 = vtanh.f32 %v2410_v13 }
 0xdd2   :  { %3555 = vpow2.f32 %v3176_v51 }
 0xdd9   :  { %v3550_v34 = vpop.eup %3549 }
 0xdda   :  { %v2420_v48 = vadd.f32 1.0, %v3550_v34  ;;  %v3552_v35 = vpop.eup %3551 }
 0xddb   :  { %v2421_v52 = vadd.f32 1.0, %v3552_v35  ;;  %v3554_v43 = vpop.eup %3553 }
 0xddc   :  { %3557 = vrcp.f32 %v2420_v48  ;;  %v3556_v38 = vpop.eup %3555 }
 0xddd   :  { %3559 = vrcp.f32 %v2421_v52  ;;  %v2422_v11 = vadd.f32 1.0, %v3556_v38 }
 0xddf   :  { %3561 = vrcp.f32 %v2422_v11 }
 0xde6   :  { %v3558_v7 = vpop.eup %3557 }
 0xde7   :  { %v2431_v8 = vmul.f32 %v3558_v7, %v3554_v43  ;;  %v3560_v9 = vpop.eup %3559 }
 0xde8   :  { %v2430_v41 = vmul.f32 %v3560_v9, %v4784_v33  ;;  %v4894_v33 = vld [vmem:[#allocation6 + $0xa8] ss:$16 sps:$4 sm:$0xff]  }
 0xde9   :  { %v3562_v59 = vpop.eup %3561 }
 0xdea   :  { %v4868_v46 = vadd.f32 %v2431_v8, %v2430_v41 }
 0xdec   :  { %3563 = vtanh.f32 %v4868_v46 }
 0xdf6   :  { %v3564_v61 = vpop.eup %3563 }
 0xdf7   :  { %v2434_v53 = vmul.f32 %v3564_v61, %v3562_v59 }
 0xdf9   :  { %v2442_v4 = vpack.c.bf16 %v2434_v53, %v2434_v53 }
 0xdfb   :  { %2476 = vmatmul.mubr.bf16.vlgmr.msra.gmra.mrb[80].mxu1 %v2442_v4  ;;  %2517 = vmatmul.mubr.bf16.vlgmr.msra.gmra.mrb[96].mxu0 %v2442_v4 }
 0xdfc   :  { %2562 = vmatpush1.bf16.msra.mxu1 %v4787_v42  ;;  %2603 = vmatpush1.bf16.msra.mxu0 %v4790_v49 }
 0xdfd   :  { %2563 = vmatprep.subr.bf16.mxu1 %v4793_v21  ;;  %2604 = vmatprep.subr.bf16.mxu0 %v4796_v54 }
 0xdfe   :  { %2593 = vmatprep.mubr.bf16.mxu1 %v5127_v0  ;;  %2634 = vmatprep.mubr.bf16.mxu0 %v5127_v0 }
 0xe00   :  { %2564 = vmatpush1.bf16.msra.mxu1 %v4801_v23  ;;  %2605 = vmatpush1.bf16.msra.mxu0 %v4804_v55 }
 0xe01   :  { %2565 = vmatprep.subr.bf16.mxu1 %v4807_v24  ;;  %2606 = vmatprep.subr.bf16.mxu0 %v4810_v56 }
 0xe04   :  { %2566 = vmatpush1.bf16.msra.mxu1 %v4813_v25  ;;  %2607 = vmatpush1.bf16.msra.mxu0 %v4816_v57 }
 0xe05   :  { %2567 = vmatprep.subr.bf16.mxu1 %v4819_v58  ;;  %2608 = vmatprep.subr.bf16.mxu0 %v4822_v60 }
 0xe08   :  { %2568 = vmatpush1.bf16.msra.mxu1 %v4825_v62  ;;  %2609 = vmatpush1.bf16.msra.mxu0 %v4828_v63 }
 0xe09   :  { %2569 = vmatprep.subr.bf16.mxu1 %v4831_v45  ;;  %2610 = vmatprep.subr.bf16.mxu0 %v4834_v5 }
 0xe0c   :  { %2570 = vmatpush1.bf16.msra.mxu1 %v4837_v6  ;;  %2611 = vmatpush1.bf16.msra.mxu0 %v4840_v31 }
 0xe0d   :  { %2571 = vmatprep.subr.bf16.mxu1 %v4843_v32  ;;  %2612 = vmatprep.subr.bf16.mxu0 %v4846_v40 }
 0xe10   :  { %2572 = vmatpush1.bf16.msra.mxu1 %v4849_v12  ;;  %2613 = vmatpush1.bf16.msra.mxu0 %v4894_v33 }
 0xe11   :  { %2573 = vmatprep.subr.bf16.mxu1 %v4897_v19  ;;  %2614 = vmatprep.subr.bf16.mxu0 %v4900_v47 }
 0xe14   :  { %2574 = vmatpush1.bf16.msra.mxu1 %v4903_v22  ;;  %2615 = vmatpush1.bf16.msra.mxu0 %v4906_v39 }
 0xe15   :  { %2575 = vmatprep.subr.bf16.mxu1 %v4909_v3  ;;  %2616 = vmatprep.subr.bf16.mxu0 %v4912_v15 }
 0xe18   :  { %2576 = vmatpush1.bf16.msra.mxu1 %v4915_v17  ;;  %2617 = vmatpush1.bf16.msra.mxu0 %v4918_v16 }
 0xe19   :  { %2679 = vmatprep.subr.bf16.mxu1 %v4773_v2  ;;  %2720 = vmatprep.subr.bf16.mxu0 %v4776_v10 }
 0xece   :  { %v2477_v18 = vpop.f32.mrb[80].mxu1  ;;  %v2518_v27 = vpop.f32.mrb[96].mxu0 }
 0xecf   :  { %v2525_v1 = vadd.f32 %v2477_v18, %v5161_v28  ;;  %v2527_v14 = vadd.f32 %v2518_v27, %v5162_v26  ;;  %v2479_v29 = vpop.f32.mrb[81].mxu1  ;;  %v2520_v13 = vpop.f32.mrb[97].mxu0 }
 0xed0   :  { %v2526_v44 = vadd.f32 %v2479_v29, %v5163_v36  ;;  %v2528_v20 = vadd.f32 %v2520_v13, %v5164_v30  ;;  %v2481_v37 = vpop.f32.mrb[82].mxu1  ;;  %v2522_v50 = vpop.f32.mrb[98].mxu0  ;;  %v5165_v29 = vld [vmem:[#allocation49_spill] sm:$0xff]  ;;  %v5166_v36 = vld [vmem:[#allocation50_spill] sm:$0xff] }
 0xed1   :  { %v3177_v51 = vmul.f32 -1.442695, %v2525_v1  ;;  %v2482_v34 = vpop.f32.mrb[83].mxu1  ;;  %v2523_v48 = vpop.f32.mrb[99].mxu0  ;;  %v3179_v52 = vmul.f32 -1.442695, %v2527_v14 }
 0xed2   :  { %v3178_v35 = vmul.f32 -1.442695, %v2526_v44  ;;  %v5167_v37 = vld [vmem:[#allocation51_spill] sm:$0xff] }
 0xed3   :  { %3565 = vpow2.f32 %v3177_v51  ;;  %v5168_v51 = vld [vmem:[#allocation52_spill] sm:$0xff] }
 0xed4   :  { %3567 = vpow2.f32 %v3178_v35 }
 0xed5   :  { %3569 = vtanh.f32 %v2528_v20 }
 0xed6   :  { %3571 = vpow2.f32 %v3179_v52 }
 0xedd   :  { %v3566_v43 = vpop.eup %3565 }
 0xede   :  { %v2538_v38 = vadd.f32 1.0, %v3566_v43  ;;  %v3568_v7 = vpop.eup %3567 }
 0xedf   :  { %v2539_v8 = vadd.f32 1.0, %v3568_v7  ;;  %v3570_v9 = vpop.eup %3569 }
 0xee0   :  { %3573 = vrcp.f32 %v2538_v38  ;;  %v3572_v11 = vpop.eup %3571 }
 0xee1   :  { %3575 = vrcp.f32 %v2539_v8  ;;  %v2540_v53 = vadd.f32 1.0, %v3572_v11 }
 0xee3   :  { %3577 = vrcp.f32 %v2540_v53 }
 0xeea   :  { %v3574_v41 = vpop.eup %3573 }
 0xeeb   :  { %v2549_v59 = vmul.f32 %v3574_v41, %v3570_v9  ;;  %v3576_v61 = vpop.eup %3575 }
 0xeec   :  { %v2548_v4 = vmul.f32 %v3576_v61, %v4868_v46 }
 0xeed   :  { %v3578_v27 = vpop.eup %3577 }
 0xeee   :  { %v4928_v18 = vadd.f32 %v2549_v59, %v2548_v4 }
 0xef0   :  { %3579 = vtanh.f32 %v4928_v18 }
 0xefa   :  { %v3580_v28 = vpop.eup %3579 }
 0xefb   :  { %v2552_v1 = vmul.f32 %v3580_v28, %v3578_v27 }
 0xefd   :  { %v2560_v26 = vpack.c.bf16 %v2552_v1, %v2552_v1 }
 0xeff   :  { %2594 = vmatmul.mubr.bf16.vlgmr.msra.gmra.mrb[84].mxu1 %v2560_v26  ;;  %2635 = vmatmul.mubr.bf16.vlgmr.msra.gmra.mrb[100].mxu0 %v2560_v26 }
 0xf00   :  { %2680 = vmatpush1.bf16.msra.mxu1 %v4787_v42  ;;  %2721 = vmatpush1.bf16.msra.mxu0 %v4790_v49 }
 0xf01   :  { %2681 = vmatprep.subr.bf16.mxu1 %v4793_v21  ;;  %2722 = vmatprep.subr.bf16.mxu0 %v4796_v54 }
 0xf02   :  { %2711 = vmatprep.mubr.bf16.mxu1 %v5127_v0  ;;  %2752 = vmatprep.mubr.bf16.mxu0 %v5127_v0 }
 0xf04   :  { %2682 = vmatpush1.bf16.msra.mxu1 %v4801_v23  ;;  %2723 = vmatpush1.bf16.msra.mxu0 %v4804_v55 }
 0xf05   :  { %2683 = vmatprep.subr.bf16.mxu1 %v4807_v24  ;;  %2724 = vmatprep.subr.bf16.mxu0 %v4810_v56 }
 0xf08   :  { %2684 = vmatpush1.bf16.msra.mxu1 %v4813_v25  ;;  %2725 = vmatpush1.bf16.msra.mxu0 %v4816_v57 }
 0xf09   :  { %2685 = vmatprep.subr.bf16.mxu1 %v4819_v58  ;;  %2726 = vmatprep.subr.bf16.mxu0 %v4822_v60 }
 0xf0c   :  { %2686 = vmatpush1.bf16.msra.mxu1 %v4825_v62  ;;  %2727 = vmatpush1.bf16.msra.mxu0 %v4828_v63 }
 0xf0d   :  { %2687 = vmatprep.subr.bf16.mxu1 %v4831_v45  ;;  %2728 = vmatprep.subr.bf16.mxu0 %v4834_v5 }
 0xf10   :  { %2688 = vmatpush1.bf16.msra.mxu1 %v4837_v6  ;;  %2729 = vmatpush1.bf16.msra.mxu0 %v4840_v31 }
 0xf11   :  { %2689 = vmatprep.subr.bf16.mxu1 %v4843_v32  ;;  %2730 = vmatprep.subr.bf16.mxu0 %v4846_v40 }
 0xf14   :  { %2690 = vmatpush1.bf16.msra.mxu1 %v4849_v12  ;;  %2731 = vmatpush1.bf16.msra.mxu0 %v4894_v33 }
 0xf15   :  { %2691 = vmatprep.subr.bf16.mxu1 %v4897_v19  ;;  %2732 = vmatprep.subr.bf16.mxu0 %v4900_v47 }
 0xf18   :  { %2692 = vmatpush1.bf16.msra.mxu1 %v4903_v22  ;;  %2733 = vmatpush1.bf16.msra.mxu0 %v4906_v39 }
 0xf19   :  { %2693 = vmatprep.subr.bf16.mxu1 %v4909_v3  ;;  %2734 = vmatprep.subr.bf16.mxu0 %v4912_v15 }
 0xf1c   :  { %2694 = vmatpush1.bf16.msra.mxu1 %v4915_v17  ;;  %2735 = vmatpush1.bf16.msra.mxu0 %v4918_v16 }
 0xf1d   :  { %2797 = vmatprep.subr.bf16.mxu1 %v4773_v2  ;;  %2838 = vmatprep.subr.bf16.mxu0 %v4776_v10 }
 0xfd2   :  { %v2595_v46 = vpop.f32.mrb[84].mxu1  ;;  %v2636_v14 = vpop.f32.mrb[100].mxu0 }
 0xfd3   :  { %v2643_v13 = vadd.f32 %v2595_v46, %v5165_v29  ;;  %v2645_v44 = vadd.f32 %v2636_v14, %v5166_v36  ;;  %v2597_v30 = vpop.f32.mrb[85].mxu1  ;;  %v2638_v20 = vpop.f32.mrb[101].mxu0 }
 0xfd4   :  { %v2644_v50 = vadd.f32 %v2597_v30, %v5167_v37  ;;  %v2646_v34 = vadd.f32 %v2638_v20, %v5168_v51  ;;  %v2599_v48 = vpop.f32.mrb[86].mxu1  ;;  %v2640_v35 = vpop.f32.mrb[102].mxu0  ;;  %v3365_v20 = vld [vmem:[%s5071_s5] sm:$0xff]   ;;  %v3366_v37 = vld [vmem:[%s5071_s5 + $0x8] sm:$0xff]   ;;  %v3368_v51 = vld [vmem:[%s5071_s5 + $0x18] sm:$0xff]  }
 0xfd5   :  { %v3180_v52 = vmul.f32 -1.442695, %v2643_v13  ;;  %v2600_v43 = vpop.f32.mrb[87].mxu1  ;;  %v2641_v38 = vpop.f32.mrb[103].mxu0  ;;  %v3182_v10 = vmul.f32 -1.442695, %v2645_v44 }
 0xfd6   :  { %v3181_v2 = vmul.f32 -1.442695, %v2644_v50  ;;  %v3367_v50 = vld [vmem:[%s5071_s5 + $0x10] sm:$0xff]   ;;  %v3370_v48 = vld [vmem:[%s5071_s5 + $0x28] sm:$0xff]  }
 0xfd7   :  { %3581 = vpow2.f32 %v3180_v52  ;;  %v3371_v35 = vld [vmem:[%s5071_s5 + $0x30] sm:$0xff]   ;;  %v3372_v52 = vld [vmem:[%s5071_s5 + $0x38] sm:$0xff]  }
 0xfd8   :  { %3583 = vpow2.f32 %v3181_v2  ;;  %v5174_v2 = vld [vmem:[#allocation57_spill] sm:$0xff] }
 0xfd9   :  { %3585 = vtanh.f32 %v2646_v34  ;;  %v3369_v34 = vld [vmem:[%s5071_s5 + $0x20] sm:$0xff]  }
 0xfda   :  { %3587 = vpow2.f32 %v3182_v10 }
 0xfe1   :  { %v3582_v7 = vpop.eup %3581 }
 0xfe2   :  { %v2656_v8 = vadd.f32 1.0, %v3582_v7  ;;  %v3584_v9 = vpop.eup %3583  ;;  %v5175_v7 = vld [vmem:[#allocation58_spill] sm:$0xff] }
 0xfe3   :  { %v2657_v11 = vadd.f32 1.0, %v3584_v9  ;;  %v3586_v41 = vpop.eup %3585 }
 0xfe4   :  { %3589 = vrcp.f32 %v2656_v8  ;;  %v3588_v59 = vpop.eup %3587 }
 0xfe5   :  { %3591 = vrcp.f32 %v2657_v11  ;;  %v2658_v27 = vadd.f32 1.0, %v3588_v59 }
 0xfe7   :  { %3593 = vrcp.f32 %v2658_v27 }
 0xfee   :  { %v3590_v61 = vpop.eup %3589 }
 0xfef   :  { %v2667_v53 = vmul.f32 %v3590_v61, %v3586_v41  ;;  %v3592_v4 = vpop.eup %3591  ;;  %v5176_v41 = vld [vmem:[#allocation59_spill] sm:$0xff]  ;;  %v5177_v61 = vld [vmem:[#allocation60_spill] sm:$0xff] }
 0xff0   :  { %v2666_v28 = vmul.f32 %v3592_v4, %v4928_v18 }
 0xff1   :  { %v3594_v26 = vpop.eup %3593 }
 0xff2   :  { %v4970_v1 = vadd.f32 %v2667_v53, %v2666_v28 }
 0xff4   :  { %3595 = vtanh.f32 %v4970_v1 }
 0xffe   :  { %v3596_v46 = vpop.eup %3595 }
 0xfff   :  { %v2670_v14 = vmul.f32 %v3596_v46, %v3594_v26 }
0x1001   :  { %v2678_v29 = vpack.c.bf16 %v2670_v14, %v2670_v14 }
0x1003   :  { %2712 = vmatmul.mubr.bf16.vlgmr.msra.gmra.mrb[88].mxu1 %v2678_v29  ;;  %2753 = vmatmul.mubr.bf16.vlgmr.msra.gmra.mrb[104].mxu0 %v2678_v29 }
0x1004   :  { %2798 = vmatpush1.bf16.msra.mxu1 %v4787_v42  ;;  %2839 = vmatpush1.bf16.msra.mxu0 %v4790_v49 }
0x1005   :  { %2799 = vmatprep.subr.bf16.mxu1 %v4793_v21  ;;  %2840 = vmatprep.subr.bf16.mxu0 %v4796_v54  ;;  %v5170_v21 = vld [vmem:[#allocation53_spill] sm:$0xff] }
0x1006   :  { %2829 = vmatprep.mubr.bf16.mxu1 %v5127_v0  ;;  %2870 = vmatprep.mubr.bf16.mxu0 %v5127_v0  ;;  %v5169_v0 = vmov 0.0  }
0x1008   :  { %2800 = vmatpush1.bf16.msra.mxu1 %v4801_v23  ;;  %2841 = vmatpush1.bf16.msra.mxu0 %v4804_v55  ;;  %v5171_v23 = vld [vmem:[#allocation54_spill] sm:$0xff] }
0x1009   :  { %2801 = vmatprep.subr.bf16.mxu1 %v4807_v24  ;;  %2842 = vmatprep.subr.bf16.mxu0 %v4810_v56 }
0x100c   :  { %2802 = vmatpush1.bf16.msra.mxu1 %v4813_v25  ;;  %2843 = vmatpush1.bf16.msra.mxu0 %v4816_v57  ;;  %v5172_v25 = vld [vmem:[#allocation55_spill] sm:$0xff] }
0x100d   :  { %2803 = vmatprep.subr.bf16.mxu1 %v4819_v58  ;;  %2844 = vmatprep.subr.bf16.mxu0 %v4822_v60  ;;  %v5173_v58 = vld [vmem:[#allocation56_spill] sm:$0xff] }
0x1010   :  { %2804 = vmatpush1.bf16.msra.mxu1 %v4825_v62  ;;  %2845 = vmatpush1.bf16.msra.mxu0 %v4828_v63 }
0x1011   :  { %2805 = vmatprep.subr.bf16.mxu1 %v4831_v45  ;;  %2846 = vmatprep.subr.bf16.mxu0 %v4834_v5 }
0x1014   :  { %2806 = vmatpush1.bf16.msra.mxu1 %v4837_v6  ;;  %2847 = vmatpush1.bf16.msra.mxu0 %v4840_v31 }
0x1015   :  { %2807 = vmatprep.subr.bf16.mxu1 %v4843_v32  ;;  %2848 = vmatprep.subr.bf16.mxu0 %v4846_v40 }
0x1018   :  { %2808 = vmatpush1.bf16.msra.mxu1 %v4849_v12  ;;  %2849 = vmatpush1.bf16.msra.mxu0 %v4894_v33 }
0x1019   :  { %2809 = vmatprep.subr.bf16.mxu1 %v4897_v19  ;;  %2850 = vmatprep.subr.bf16.mxu0 %v4900_v47 }
0x101c   :  { %2810 = vmatpush1.bf16.msra.mxu1 %v4903_v22  ;;  %2851 = vmatpush1.bf16.msra.mxu0 %v4906_v39 }
0x101d   :  { %2811 = vmatprep.subr.bf16.mxu1 %v4909_v3  ;;  %2852 = vmatprep.subr.bf16.mxu0 %v4912_v15 }
0x1020   :  { %2812 = vmatpush1.bf16.msra.mxu1 %v4915_v17  ;;  %2853 = vmatpush1.bf16.msra.mxu0 %v4918_v16 }
0x1021   :  { %3237 = vmatprep.subr.bf16.mxu1 %v5169_v0 }
0x10d6   :  { %v2713_v42 = vpop.f32.mrb[88].mxu1  ;;  %v2754_v49 = vpop.f32.mrb[104].mxu0 }
0x10d7   :  { %v2761_v54 = vadd.f32 %v2713_v42, %v5170_v21  ;;  %v2763_v55 = vadd.f32 %v2754_v49, %v5171_v23  ;;  %v2715_v24 = vpop.f32.mrb[89].mxu1  ;;  %v2756_v56 = vpop.f32.mrb[105].mxu0 }
0x10d8   :  { %v2762_v57 = vadd.f32 %v2715_v24, %v5172_v25  ;;  %v2764_v60 = vadd.f32 %v2756_v56, %v5173_v58  ;;  %v2717_v62 = vpop.f32.mrb[90].mxu1  ;;  %v2758_v63 = vpop.f32.mrb[106].mxu0 }
0x10d9   :  { %v3183_v45 = vmul.f32 -1.442695, %v2761_v54  ;;  %v2718_v5 = vpop.f32.mrb[91].mxu1  ;;  %v2759_v6 = vpop.f32.mrb[107].mxu0  ;;  %v3185_v32 = vmul.f32 -1.442695, %v2763_v55 }
0x10da   :  { %v3184_v31 = vmul.f32 -1.442695, %v2762_v57 }
0x10db   :  { %3597 = vpow2.f32 %v3183_v45  ;;  %v3189_v45 = vld [vmem:[%s5072_s6] ss:$0 sm:$0xff] }
0x10dc   :  { %3599 = vpow2.f32 %v3184_v31 }
0x10dd   :  { %3601 = vtanh.f32 %v2764_v60 }
0x10de   :  { %3603 = vpow2.f32 %v3185_v32 }
0x10e5   :  { %v3598_v40 = vpop.eup %3597 }
0x10e6   :  { %v2774_v12 = vadd.f32 1.0, %v3598_v40  ;;  %v3600_v33 = vpop.eup %3599 }
0x10e7   :  { %v2775_v19 = vadd.f32 1.0, %v3600_v33  ;;  %v3602_v47 = vpop.eup %3601 }
0x10e8   :  { %3605 = vrcp.f32 %v2774_v12  ;;  %v3604_v22 = vpop.eup %3603 }
0x10e9   :  { %3607 = vrcp.f32 %v2775_v19  ;;  %v2776_v17 = vadd.f32 1.0, %v3604_v22 }
0x10eb   :  { %3609 = vrcp.f32 %v2776_v17 }
0x10f2   :  { %v3606_v39 = vpop.eup %3605 }
0x10f3   :  { %v2785_v3 = vmul.f32 %v3606_v39, %v3602_v47  ;;  %v3608_v15 = vpop.eup %3607 }
0x10f4   :  { %v2784_v16 = vmul.f32 %v3608_v15, %v4970_v1 }
0x10f5   :  { %v3610_v13 = vpop.eup %3609 }
0x10f6   :  { %v5011_v18 = vadd.f32 %v2785_v3, %v2784_v16 }
0x10f8   :  { %3611 = vtanh.f32 %v5011_v18 }
0x1102   :  { %v3612_v36 = vpop.eup %3611 }
0x1103   :  { %v2788_v44 = vmul.f32 %v3612_v36, %v3610_v13 }
0x1105   :  { %v2796_v30 = vpack.c.bf16 %v2788_v44, %v2788_v44 }
0x1107   :  { %2830 = vmatmul.mubr.bf16.vlgmr.msra.gmra.mrb[92].mxu1 %v2796_v30  ;;  %2871 = vmatmul.mubr.bf16.vlgmr.msra.gmra.mrb[108].mxu0 %v2796_v30 }
0x1108   :  { %3238 = vmatpush3.bf16.msra.mxu1 %v3365_v20  ;;  %3253 = vmatprep.mubr.msk.bf16.mxu1 %vm3771_vm1, %v5169_v0 }
0x1109   :  { %3239 = vmatprep.subr.bf16.mxu1 %v5169_v0 }
0x110c   :  { %3240 = vmatpush3.bf16.msra.mxu1 %v3366_v37 }
0x110d   :  { %3241 = vmatprep.subr.bf16.mxu1 %v5169_v0 }
0x1110   :  { %3242 = vmatpush3.bf16.msra.mxu1 %v3367_v50 }
0x1111   :  { %3243 = vmatprep.subr.bf16.mxu1 %v5169_v0 }
0x1114   :  { %3244 = vmatpush3.bf16.msra.mxu1 %v3368_v51 }
0x1115   :  { %3245 = vmatprep.subr.bf16.mxu1 %v5169_v0 }
0x1118   :  { %3246 = vmatpush3.bf16.msra.mxu1 %v3369_v34 }
0x1119   :  { %3247 = vmatprep.subr.bf16.mxu1 %v5169_v0 }
0x111c   :  { %3248 = vmatpush3.bf16.msra.mxu1 %v3370_v48 }
0x111d   :  { %3249 = vmatprep.subr.bf16.mxu1 %v5169_v0 }
0x1120   :  { %3250 = vmatpush3.bf16.msra.mxu1 %v3371_v35 }
0x1121   :  { %3251 = vmatprep.subr.bf16.mxu1 %v5169_v0 }
0x1124   :  { %3252 = vmatpush3.bf16.msra.mxu1 %v3372_v52 }
0x11da   :  { %v2831_v43 = vpop.f32.mrb[92].mxu1  ;;  %v2872_v38 = vpop.f32.mrb[108].mxu0 }
0x11db   :  { %v2879_v10 = vadd.f32 %v2831_v43, %v5174_v2  ;;  %v2881_v8 = vadd.f32 %v2872_v38, %v5175_v7  ;;  %v2833_v9 = vpop.f32.mrb[93].mxu1  ;;  %v2874_v11 = vpop.f32.mrb[109].mxu0 }
0x11dc   :  { %v2880_v59 = vadd.f32 %v2833_v9, %v5176_v41  ;;  %v2882_v53 = vadd.f32 %v2874_v11, %v5177_v61  ;;  %v2835_v4 = vpop.f32.mrb[94].mxu1  ;;  %v2876_v27 = vpop.f32.mrb[110].mxu0 }
0x11dd   :  { %v3186_v28 = vmul.f32 -1.442695, %v2879_v10  ;;  %v2836_v1 = vpop.f32.mrb[95].mxu1  ;;  %v2877_v26 = vpop.f32.mrb[111].mxu0  ;;  %v3188_v14 = vmul.f32 -1.442695, %v2881_v8 }
0x11de   :  { %v3187_v46 = vmul.f32 -1.442695, %v2880_v59 }
0x11df   :  { %3613 = vpow2.f32 %v3186_v28 }
0x11e0   :  { %3615 = vpow2.f32 %v3187_v46 }
0x11e1   :  { %3617 = vtanh.f32 %v2882_v53 }
0x11e2   :  { %3619 = vpow2.f32 %v3188_v14 }
0x11e9   :  { %v3614_v29 = vpop.eup %3613 }
0x11ea   :  { %v2892_v0 = vadd.f32 1.0, %v3614_v29  ;;  %v3616_v42 = vpop.eup %3615 }
0x11eb   :  { %v2893_v49 = vadd.f32 1.0, %v3616_v42  ;;  %v3618_v21 = vpop.eup %3617 }
0x11ec   :  { %3621 = vrcp.f32 %v2892_v0  ;;  %v3620_v54 = vpop.eup %3619 }
0x11ed   :  { %3623 = vrcp.f32 %v2893_v49  ;;  %v2894_v56 = vadd.f32 1.0, %v3620_v54 }
0x11ef   :  { %3625 = vrcp.f32 %v2894_v56 }
0x11f6   :  { %v3622_v23 = vpop.eup %3621 }
0x11f7   :  { %v2903_v55 = vmul.f32 %v3622_v23, %v3618_v21  ;;  %v3624_v24 = vpop.eup %3623 }
0x11f8   :  { %v2902_v25 = vmul.f32 %v3624_v24, %v5011_v18 }
0x11f9   :  { %v3626_v58 = vpop.eup %3625 }
0x11fa   :  { %v2904_v57 = vadd.f32 %v2903_v55, %v2902_v25 }
0x11fc   :  { %3627 = vtanh.f32 %v2904_v57 }
0x1206   :  { %v3628_v60 = vpop.eup %3627 }
0x1207   :  { %v2906_v62 = vmul.f32 %v3628_v60, %v3626_v58 }
0x1209   :  { %v2907_v63 = vpack.c.bf16 %v2906_v62, %v2906_v62 }
0x120b   :  { %3254 = vmatmul.mubr.bf16.vlgmr.msra.gmra.mrb[96].mxu1 %v2907_v63 }
0x12de   :  { %v3013_v5 = vpop.f32.mrb[96].mxu1 }
0x12df   :  { %v3014_v6 = vadd.f32 %v3189_v45, %v3013_v5  ;;  %v3255_v31 = vpop.f32.mrb[97].mxu1 }
0x12e0   :  { %v3016_v32 = vpop.f32.mrb[98].mxu1 }
0x12e1   :  { %3019 = vst [vmem:[#allocation8] sm:$0xff] %v3014_v6  ;;  %v3256_v40 = vpop.f32.mrb[99].mxu1 }
0x12e2   :  { %3748 = shalt.err (!%p3745_p6)
}
0x12e3   :  { %s3749_s6 = scalar_lea.hbm %s5073_s7, 128 }
0x12e4   :  { %p3750_p7 = scmp.ne.s32.totalorder %s5073_s7, %s3749_s6  ;;  %p3753_p8 = scmp.lt.u32.totalorder %s3749_s6, %s5073_s7 }
0x12e6   :  { %p3755_p9 = pnand %p3753_p8, %p3750_p7 }
0x12e8   :  { %3758 = shalt.err (!%p3755_p9)
}
0x12e9   :  { %3029 = dma.vmem_to_hbm [thread:$0]  %s3027_s28, 128, %s5073_s7, [#allocation5]  }
0x12ea   :  { %3763 = dma.done.wait [#allocation5], 128  }
0x12eb   :  { %3764 = vsyncadd [#allocation5], 4294967168 }
0x12ec   :  { %3033 = vsyncpa [#allocation4], 1 }
0x12ed   :  { %3034 = vsyncpa [#allocation7], 1 }
0x12ee   :  { %3035 = vsyncpa [#allocation5], 1 }

</bundles_post_ra>
